<compile_context>
chip_gen: v6e
topology: v6e:2x2x1
jax: 0.10.0
libtpu: 0.0.40
codegen_flags: <defaults>
</compile_context>

<pallas_src>
import jax
import jax.numpy as jnp
from jax import lax
from jax.experimental import pallas as pl
from jax.experimental.pallas import tpu as pltpu
import numpy as np


# ----------------------------------------------------------------------------
# Pallas kernel factory
# ----------------------------------------------------------------------------
def make_conv2d_kernel(KH, KW, Cin, Ho, Wo, Coutp, stride, has_bias):
    """Returns a kernel computing one image's conv2d into a (1,Ho,Wo,Coutp) block."""

    def body(x_ref, w_ref, b_ref, out_ref, acc_ref):
        # x_ref  : (1, Hp, Wp, Cin)      bf16 (already zero-padded spatially)
        # w_ref  : (KH, KW, Cin, Coutp)  bf16 (Cout zero-padded to lane multiple)
        # acc_ref: (Ho*Wo, Coutp)        f32 VMEM accumulator
        for kh in range(KH):
            for kw in range(KW):
                if stride == 1:
                    patch = x_ref[0, pl.ds(kh, Ho), pl.ds(kw, Wo), :]
                else:
                    # TODO(synk): stride > 1 path (contiguous load + static
                    # strided value slice) is implemented but not exercised in
                    # the demo below; only stride == 1 is benchmarked.
                    hspan = (Ho - 1) * stride + 1
                    wspan = (Wo - 1) * stride + 1
                    win = x_ref[0, pl.ds(kh, hspan), pl.ds(kw, wspan), :]
                    patch = win[::stride, ::stride, :]
                contrib = jnp.dot(patch.reshape(Ho * Wo, Cin), w_ref[kh, kw],
                                  preferred_element_type=jnp.float32)
                if kh == 0 and kw == 0:
                    acc_ref[...] = contrib          # first tap: no zero-init
                else:
                    acc_ref[...] += contrib

        result = acc_ref[...]
        if has_bias:
            result = result + b_ref[...]            # f32 epilogue on the VPU
        out_ref[0] = result.reshape(Ho, Wo, Coutp)

    if has_bias:
        def kernel(x_ref, w_ref, b_ref, out_ref, acc_ref):
            body(x_ref, w_ref, b_ref, out_ref, acc_ref)
    else:
        def kernel(x_ref, w_ref, out_ref, acc_ref):
            body(x_ref, w_ref, None, out_ref, acc_ref)
    return kernel


# ----------------------------------------------------------------------------
# Wrapper: layout plumbing + pallas_call
# ----------------------------------------------------------------------------
def conv2d_forward(x_nchw, weight_oihw, bias=None, stride=1, padding=0):
    N, Cin, H, W = x_nchw.shape
    Cout, Cin_w, KH, KW = weight_oihw.shape
    assert Cin_w == Cin, "weight in_channels mismatch"

    Ho = (H + 2 * padding - KH) // stride + 1
    Wo = (W + 2 * padding - KW) // stride + 1
    Coutp = ((Cout + 127) // 128) * 128            # lane-dense output channels
    Hp, Wp = H + 2 * padding, W + 2 * padding
    has_bias = bias is not None

    # NCHW f32 -> NHWC bf16, spatial zero-pad done once here (no kernel scratch).
    x = jnp.transpose(x_nchw, (0, 2, 3, 1)).astype(jnp.bfloat16)
    if padding > 0:
        x = jnp.pad(x, ((0, 0), (padding, padding), (padding, padding), (0, 0)))

    # OIHW -> (KH, KW, Cin, Coutp) bf16, output channels zero-padded to 128-mult.
    w = jnp.transpose(weight_oihw, (2, 3, 1, 0)).astype(jnp.bfloat16)
    w = jnp.pad(w, ((0, 0), (0, 0), (0, 0), (0, Coutp - Cout)))

    args = [x, w]
    in_specs = [
        pl.BlockSpec((1, Hp, Wp, Cin), lambda n: (n, 0, 0, 0)),      # x (per image)
        pl.BlockSpec((KH, KW, Cin, Coutp), lambda n: (0, 0, 0, 0)),  # weights
    ]
    bytes_accessed = x.size * 2 + w.size * 2 + N * Ho * Wo * Coutp * 4
    if has_bias:
        b = jnp.pad(bias.astype(jnp.float32), (0, Coutp - Cout)).reshape(1, Coutp)
        args.append(b)
        in_specs.append(pl.BlockSpec((1, Coutp), lambda n: (0, 0)))
        bytes_accessed += b.size * 4

    kernel = make_conv2d_kernel(KH, KW, Cin, Ho, Wo, Coutp, stride, has_bias)

    cost = pl.CostEstimate(
        flops=2 * N * Ho * Wo * KH * KW * Cin * Cout,
        transcendentals=0,
        bytes_accessed=bytes_accessed,
    )

    # TODO(synk): for large images add a spatial (Ho) grid axis with a halo
    # (manual DMA or Element-indexed blocks) so v7x's two TensorCores stay busy
    # at batch 1; whole-image blocks are fine at these demo sizes.
    out = pl.pallas_call(
        kernel,
        out_shape=jax.ShapeDtypeStruct((N, Ho, Wo, Coutp), jnp.float32),
        grid_spec=pltpu.PrefetchScalarGridSpec(
            num_scalar_prefetch=0,
            grid=(N,),
            in_specs=in_specs,
            out_specs=pl.BlockSpec((1, Ho, Wo, Coutp), lambda n: (n, 0, 0, 0)),
            scratch_shapes=[pltpu.VMEM((Ho * Wo, Coutp), jnp.float32)],
        ),
        compiler_params=pltpu.CompilerParams(
            dimension_semantics=("parallel",),
            vmem_limit_bytes=32 * 1024 * 1024,
        ),
        cost_estimate=cost,
    )(*args)

    out = out[..., :Cout]                          # drop lane padding
    return jnp.transpose(out, (0, 3, 1, 2))        # back to NCHW, f32


# ----------------------------------------------------------------------------
# Conv module equivalent (bn_before / bn_after are unused in forward, as in torch)
# ----------------------------------------------------------------------------
class Conv:
    def __init__(self, in_planes, planes, kernel_size, stride=1, padding=0,
                 bias=False, bn_before=None, bn_after=None, *, key):
        kw_, kb_ = jax.random.split(key)
        self.weight = 0.2 * jax.random.normal(
            kw_, (planes, in_planes, kernel_size, kernel_size), jnp.float32)
        self.bias = (0.1 * jax.random.normal(kb_, (planes,), jnp.float32)
                     if bias else None)
        self.stride = stride
        self.padding = padding
        self.bn_before = [bn_before]   # stored but not applied (matches torch forward)
        self.bn_after = [bn_after]

    def __call__(self, x):
        return conv2d_forward(x, self.weight, self.bias,
                              stride=self.stride, padding=self.padding)


# ----------------------------------------------------------------------------
# Pure-JAX reference (same bf16 input rounding, exact f32 accumulation)
# ----------------------------------------------------------------------------
def reference_conv(x, w, b, stride, padding):
    xb = x.astype(jnp.bfloat16).astype(jnp.float32)
    wb = w.astype(jnp.bfloat16).astype(jnp.float32)
    out = lax.conv_general_dilated(
        xb, wb, window_strides=(stride, stride),
        padding=[(padding, padding), (padding, padding)],
        dimension_numbers=('NCHW', 'OIHW', 'NCHW'),
        precision=jax.lax.Precision.HIGHEST)
    if b is not None:
        out = out + b[None, :, None, None]
    return out


if __name__ == "__main__":
    key = jax.random.PRNGKey(0)
    kx1, kp1, kx2, kp2 = jax.random.split(key, 4)

    # Test 1: bias=False (matches the module defaults in resnet.py usage).
    N, in_planes, H, W = 2, 4, 16, 16
    planes, ksize, stride, padding = 16, 3, 1, 1
    x1 = jax.random.normal(kx1, (N, in_planes, H, W), jnp.float32)
    conv1 = Conv(in_planes, planes, ksize, stride=stride, padding=padding,
                 bias=False, key=kp1)
    out1 = jax.block_until_ready(conv1(x1))
    ref1 = reference_conv(x1, conv1.weight, conv1.bias, stride, padding)
    np.testing.assert_allclose(np.asarray(out1), np.asarray(ref1),
                               rtol=1e-3, atol=1e-3)

    # Test 2: bias=True, different channel counts.
    N2, in2, H2, W2 = 2, 8, 8, 8
    planes2, ksize2, stride2, padding2 = 32, 3, 1, 1
    x2 = jax.random.normal(kx2, (N2, in2, H2, W2), jnp.float32)
    conv2 = Conv(in2, planes2, ksize2, stride=stride2, padding=padding2,
                 bias=True, key=kp2)
    out2 = jax.block_until_ready(conv2(x2))
    ref2 = reference_conv(x2, conv2.weight, conv2.bias, stride2, padding2)
    np.testing.assert_allclose(np.asarray(out2), np.asarray(ref2),
                               rtol=1e-3, atol=1e-3)

    print("KERNEL_OK")
</pallas_src>

<mosaic_0001>
module attributes {stable_mosaic.version = 11 : i64} {
  func.func @kernel(%arg0: i32, %arg1: memref<1x18x18x4xbf16, #tpu.memory_space<vmem>>, %arg2: memref<3x3x4x128xbf16, #tpu.memory_space<vmem>>, %arg3: memref<1x16x16x128xf32, #tpu.memory_space<vmem>>, %arg4: memref<256x128xf32, #tpu.memory_space<vmem>>) attributes {dimension_semantics = [#tpu.dimension_semantics<parallel>], iteration_bounds = array<i64: 2>, scalar_prefetch = 0 : i64, scratch_operands = 1 : i64, tpu.core_type = #tpu.core_type<tc>, window_params = [{transform_indices = @transform_0, window_bounds = array<i64: 1, 18, 18, 4>}, {pipeline_mode = #tpu.pipeline_mode<synchronous>, transform_indices = @transform_1, window_bounds = array<i64: 3, 3, 4, 128>}, {transform_indices = @transform_2, window_bounds = array<i64: 1, 16, 16, 128>}]} {
    %c0 = arith.constant 0 : index
    %c0_0 = arith.constant 0 : index
    %c0_1 = arith.constant 0 : index
    %c0_2 = arith.constant 0 : index
    %0 = vector.load %arg1[%c0, %c0_0, %c0_1, %c0_2] : memref<1x18x18x4xbf16, #tpu.memory_space<vmem>>, vector<1x16x16x4xbf16>
    %1 = vector.shape_cast %0 : vector<1x16x16x4xbf16> to vector<16x16x4xbf16>
    %2 = vector.shape_cast %1 : vector<16x16x4xbf16> to vector<256x4xbf16>
    %c0_3 = arith.constant 0 : index
    %c0_4 = arith.constant 0 : index
    %c0_5 = arith.constant 0 : index
    %c0_6 = arith.constant 0 : index
    %3 = vector.load %arg2[%c0_3, %c0_4, %c0_5, %c0_6] : memref<3x3x4x128xbf16, #tpu.memory_space<vmem>>, vector<1x1x4x128xbf16>
    %4 = vector.shape_cast %3 : vector<1x1x4x128xbf16> to vector<4x128xbf16>
    %cst = arith.constant dense<0.000000e+00> : vector<256x128xf32>
    %5 = tpu.matmul %2, %4, %cst {dimension_numbers = #tpu.dot_dimension_numbers<[1], [0], [0], [1], [0, 0, 1, 1], [], []>} : vector<256x4xbf16>, vector<4x128xbf16>, vector<256x128xf32> -> vector<256x128xf32>
    %c0_7 = arith.constant 0 : index
    %c0_8 = arith.constant 0 : index
    %6 = vector.load %arg4[%c0_7, %c0_8] : memref<256x128xf32, #tpu.memory_space<vmem>>, vector<256x128xf32>
    tpu.vector_store %arg4[%c0_7, %c0_8], %5 {strides = array<i32>} : memref<256x128xf32, #tpu.memory_space<vmem>>, vector<256x128xf32>,
    %c0_9 = arith.constant 0 : index
    %c0_10 = arith.constant 0 : index
    %c1 = arith.constant 1 : index
    %c0_11 = arith.constant 0 : index
    %7 = vector.load %arg1[%c0_9, %c0_10, %c1, %c0_11] : memref<1x18x18x4xbf16, #tpu.memory_space<vmem>>, vector<1x16x16x4xbf16>
    %8 = vector.shape_cast %7 : vector<1x16x16x4xbf16> to vector<16x16x4xbf16>
    %9 = vector.shape_cast %8 : vector<16x16x4xbf16> to vector<256x4xbf16>
    %c0_12 = arith.constant 0 : index
    %c1_13 = arith.constant 1 : index
    %c0_14 = arith.constant 0 : index
    %c0_15 = arith.constant 0 : index
    %10 = vector.load %arg2[%c0_12, %c1_13, %c0_14, %c0_15] : memref<3x3x4x128xbf16, #tpu.memory_space<vmem>>, vector<1x1x4x128xbf16>
    %11 = vector.shape_cast %10 : vector<1x1x4x128xbf16> to vector<4x128xbf16>
    %cst_16 = arith.constant dense<0.000000e+00> : vector<256x128xf32>
    %12 = tpu.matmul %9, %11, %cst_16 {dimension_numbers = #tpu.dot_dimension_numbers<[1], [0], [0], [1], [0, 0, 1, 1], [], []>} : vector<256x4xbf16>, vector<4x128xbf16>, vector<256x128xf32> -> vector<256x128xf32>
    %c0_17 = arith.constant 0 : index
    %c0_18 = arith.constant 0 : index
    %13 = vector.load %arg4[%c0_17, %c0_18] : memref<256x128xf32, #tpu.memory_space<vmem>>, vector<256x128xf32>
    %14 = arith.addf %13, %12 : vector<256x128xf32>
    %c0_19 = arith.constant 0 : index
    %c0_20 = arith.constant 0 : index
    %15 = vector.load %arg4[%c0_19, %c0_20] : memref<256x128xf32, #tpu.memory_space<vmem>>, vector<256x128xf32>
    tpu.vector_store %arg4[%c0_19, %c0_20], %14 {strides = array<i32>} : memref<256x128xf32, #tpu.memory_space<vmem>>, vector<256x128xf32>,
    %c0_21 = arith.constant 0 : index
    %c0_22 = arith.constant 0 : index
    %c2 = arith.constant 2 : index
    %c0_23 = arith.constant 0 : index
    %16 = vector.load %arg1[%c0_21, %c0_22, %c2, %c0_23] : memref<1x18x18x4xbf16, #tpu.memory_space<vmem>>, vector<1x16x16x4xbf16>
    %17 = vector.shape_cast %16 : vector<1x16x16x4xbf16> to vector<16x16x4xbf16>
    %18 = vector.shape_cast %17 : vector<16x16x4xbf16> to vector<256x4xbf16>
    %c0_24 = arith.constant 0 : index
    %c2_25 = arith.constant 2 : index
    %c0_26 = arith.constant 0 : index
    %c0_27 = arith.constant 0 : index
    %19 = vector.load %arg2[%c0_24, %c2_25, %c0_26, %c0_27] : memref<3x3x4x128xbf16, #tpu.memory_space<vmem>>, vector<1x1x4x128xbf16>
    %20 = vector.shape_cast %19 : vector<1x1x4x128xbf16> to vector<4x128xbf16>
    %cst_28 = arith.constant dense<0.000000e+00> : vector<256x128xf32>
    %21 = tpu.matmul %18, %20, %cst_28 {dimension_numbers = #tpu.dot_dimension_numbers<[1], [0], [0], [1], [0, 0, 1, 1], [], []>} : vector<256x4xbf16>, vector<4x128xbf16>, vector<256x128xf32> -> vector<256x128xf32>
    %c0_29 = arith.constant 0 : index
    %c0_30 = arith.constant 0 : index
    %22 = vector.load %arg4[%c0_29, %c0_30] : memref<256x128xf32, #tpu.memory_space<vmem>>, vector<256x128xf32>
    %23 = arith.addf %22, %21 : vector<256x128xf32>
    %c0_31 = arith.constant 0 : index
    %c0_32 = arith.constant 0 : index
    %24 = vector.load %arg4[%c0_31, %c0_32] : memref<256x128xf32, #tpu.memory_space<vmem>>, vector<256x128xf32>
    tpu.vector_store %arg4[%c0_31, %c0_32], %23 {strides = array<i32>} : memref<256x128xf32, #tpu.memory_space<vmem>>, vector<256x128xf32>,
    %c0_33 = arith.constant 0 : index
    %c1_34 = arith.constant 1 : index
    %c0_35 = arith.constant 0 : index
    %c0_36 = arith.constant 0 : index
    %25 = vector.load %arg1[%c0_33, %c1_34, %c0_35, %c0_36] : memref<1x18x18x4xbf16, #tpu.memory_space<vmem>>, vector<1x16x16x4xbf16>
    %26 = vector.shape_cast %25 : vector<1x16x16x4xbf16> to vector<16x16x4xbf16>
    %27 = vector.shape_cast %26 : vector<16x16x4xbf16> to vector<256x4xbf16>
    %c1_37 = arith.constant 1 : index
    %c0_38 = arith.constant 0 : index
    %c0_39 = arith.constant 0 : index
    %c0_40 = arith.constant 0 : index
    %28 = vector.load %arg2[%c1_37, %c0_38, %c0_39, %c0_40] : memref<3x3x4x128xbf16, #tpu.memory_space<vmem>>, vector<1x1x4x128xbf16>
    %29 = vector.shape_cast %28 : vector<1x1x4x128xbf16> to vector<4x128xbf16>
    %cst_41 = arith.constant dense<0.000000e+00> : vector<256x128xf32>
    %30 = tpu.matmul %27, %29, %cst_41 {dimension_numbers = #tpu.dot_dimension_numbers<[1], [0], [0], [1], [0, 0, 1, 1], [], []>} : vector<256x4xbf16>, vector<4x128xbf16>, vector<256x128xf32> -> vector<256x128xf32>
    %c0_42 = arith.constant 0 : index
    %c0_43 = arith.constant 0 : index
    %31 = vector.load %arg4[%c0_42, %c0_43] : memref<256x128xf32, #tpu.memory_space<vmem>>, vector<256x128xf32>
    %32 = arith.addf %31, %30 : vector<256x128xf32>
    %c0_44 = arith.constant 0 : index
    %c0_45 = arith.constant 0 : index
    %33 = vector.load %arg4[%c0_44, %c0_45] : memref<256x128xf32, #tpu.memory_space<vmem>>, vector<256x128xf32>
    tpu.vector_store %arg4[%c0_44, %c0_45], %32 {strides = array<i32>} : memref<256x128xf32, #tpu.memory_space<vmem>>, vector<256x128xf32>,
    %c0_46 = arith.constant 0 : index
    %c1_47 = arith.constant 1 : index
    %c1_48 = arith.constant 1 : index
    %c0_49 = arith.constant 0 : index
    %34 = vector.load %arg1[%c0_46, %c1_47, %c1_48, %c0_49] : memref<1x18x18x4xbf16, #tpu.memory_space<vmem>>, vector<1x16x16x4xbf16>
    %35 = vector.shape_cast %34 : vector<1x16x16x4xbf16> to vector<16x16x4xbf16>
    %36 = vector.shape_cast %35 : vector<16x16x4xbf16> to vector<256x4xbf16>
    %c1_50 = arith.constant 1 : index
    %c1_51 = arith.constant 1 : index
    %c0_52 = arith.constant 0 : index
    %c0_53 = arith.constant 0 : index
    %37 = vector.load %arg2[%c1_50, %c1_51, %c0_52, %c0_53] : memref<3x3x4x128xbf16, #tpu.memory_space<vmem>>, vector<1x1x4x128xbf16>
    %38 = vector.shape_cast %37 : vector<1x1x4x128xbf16> to vector<4x128xbf16>
    %cst_54 = arith.constant dense<0.000000e+00> : vector<256x128xf32>
    %39 = tpu.matmul %36, %38, %cst_54 {dimension_numbers = #tpu.dot_dimension_numbers<[1], [0], [0], [1], [0, 0, 1, 1], [], []>} : vector<256x4xbf16>, vector<4x128xbf16>, vector<256x128xf32> -> vector<256x128xf32>
    %c0_55 = arith.constant 0 : index
    %c0_56 = arith.constant 0 : index
    %40 = vector.load %arg4[%c0_55, %c0_56] : memref<256x128xf32, #tpu.memory_space<vmem>>, vector<256x128xf32>
    %41 = arith.addf %40, %39 : vector<256x128xf32>
    %c0_57 = arith.constant 0 : index
    %c0_58 = arith.constant 0 : index
    %42 = vector.load %arg4[%c0_57, %c0_58] : memref<256x128xf32, #tpu.memory_space<vmem>>, vector<256x128xf32>
    tpu.vector_store %arg4[%c0_57, %c0_58], %41 {strides = array<i32>} : memref<256x128xf32, #tpu.memory_space<vmem>>, vector<256x128xf32>,
    %c0_59 = arith.constant 0 : index
    %c1_60 = arith.constant 1 : index
    %c2_61 = arith.constant 2 : index
    %c0_62 = arith.constant 0 : index
    %43 = vector.load %arg1[%c0_59, %c1_60, %c2_61, %c0_62] : memref<1x18x18x4xbf16, #tpu.memory_space<vmem>>, vector<1x16x16x4xbf16>
    %44 = vector.shape_cast %43 : vector<1x16x16x4xbf16> to vector<16x16x4xbf16>
    %45 = vector.shape_cast %44 : vector<16x16x4xbf16> to vector<256x4xbf16>
    %c1_63 = arith.constant 1 : index
    %c2_64 = arith.constant 2 : index
    %c0_65 = arith.constant 0 : index
    %c0_66 = arith.constant 0 : index
    %46 = vector.load %arg2[%c1_63, %c2_64, %c0_65, %c0_66] : memref<3x3x4x128xbf16, #tpu.memory_space<vmem>>, vector<1x1x4x128xbf16>
    %47 = vector.shape_cast %46 : vector<1x1x4x128xbf16> to vector<4x128xbf16>
    %cst_67 = arith.constant dense<0.000000e+00> : vector<256x128xf32>
    %48 = tpu.matmul %45, %47, %cst_67 {dimension_numbers = #tpu.dot_dimension_numbers<[1], [0], [0], [1], [0, 0, 1, 1], [], []>} : vector<256x4xbf16>, vector<4x128xbf16>, vector<256x128xf32> -> vector<256x128xf32>
    %c0_68 = arith.constant 0 : index
    %c0_69 = arith.constant 0 : index
    %49 = vector.load %arg4[%c0_68, %c0_69] : memref<256x128xf32, #tpu.memory_space<vmem>>, vector<256x128xf32>
    %50 = arith.addf %49, %48 : vector<256x128xf32>
    %c0_70 = arith.constant 0 : index
    %c0_71 = arith.constant 0 : index
    %51 = vector.load %arg4[%c0_70, %c0_71] : memref<256x128xf32, #tpu.memory_space<vmem>>, vector<256x128xf32>
    tpu.vector_store %arg4[%c0_70, %c0_71], %50 {strides = array<i32>} : memref<256x128xf32, #tpu.memory_space<vmem>>, vector<256x128xf32>,
    %c0_72 = arith.constant 0 : index
    %c2_73 = arith.constant 2 : index
    %c0_74 = arith.constant 0 : index
    %c0_75 = arith.constant 0 : index
    %52 = vector.load %arg1[%c0_72, %c2_73, %c0_74, %c0_75] : memref<1x18x18x4xbf16, #tpu.memory_space<vmem>>, vector<1x16x16x4xbf16>
    %53 = vector.shape_cast %52 : vector<1x16x16x4xbf16> to vector<16x16x4xbf16>
    %54 = vector.shape_cast %53 : vector<16x16x4xbf16> to vector<256x4xbf16>
    %c2_76 = arith.constant 2 : index
    %c0_77 = arith.constant 0 : index
    %c0_78 = arith.constant 0 : index
    %c0_79 = arith.constant 0 : index
    %55 = vector.load %arg2[%c2_76, %c0_77, %c0_78, %c0_79] : memref<3x3x4x128xbf16, #tpu.memory_space<vmem>>, vector<1x1x4x128xbf16>
    %56 = vector.shape_cast %55 : vector<1x1x4x128xbf16> to vector<4x128xbf16>
    %cst_80 = arith.constant dense<0.000000e+00> : vector<256x128xf32>
    %57 = tpu.matmul %54, %56, %cst_80 {dimension_numbers = #tpu.dot_dimension_numbers<[1], [0], [0], [1], [0, 0, 1, 1], [], []>} : vector<256x4xbf16>, vector<4x128xbf16>, vector<256x128xf32> -> vector<256x128xf32>
    %c0_81 = arith.constant 0 : index
    %c0_82 = arith.constant 0 : index
    %58 = vector.load %arg4[%c0_81, %c0_82] : memref<256x128xf32, #tpu.memory_space<vmem>>, vector<256x128xf32>
    %59 = arith.addf %58, %57 : vector<256x128xf32>
    %c0_83 = arith.constant 0 : index
    %c0_84 = arith.constant 0 : index
    %60 = vector.load %arg4[%c0_83, %c0_84] : memref<256x128xf32, #tpu.memory_space<vmem>>, vector<256x128xf32>
    tpu.vector_store %arg4[%c0_83, %c0_84], %59 {strides = array<i32>} : memref<256x128xf32, #tpu.memory_space<vmem>>, vector<256x128xf32>,
    %c0_85 = arith.constant 0 : index
    %c2_86 = arith.constant 2 : index
    %c1_87 = arith.constant 1 : index
    %c0_88 = arith.constant 0 : index
    %61 = vector.load %arg1[%c0_85, %c2_86, %c1_87, %c0_88] : memref<1x18x18x4xbf16, #tpu.memory_space<vmem>>, vector<1x16x16x4xbf16>
    %62 = vector.shape_cast %61 : vector<1x16x16x4xbf16> to vector<16x16x4xbf16>
    %63 = vector.shape_cast %62 : vector<16x16x4xbf16> to vector<256x4xbf16>
    %c2_89 = arith.constant 2 : index
    %c1_90 = arith.constant 1 : index
    %c0_91 = arith.constant 0 : index
    %c0_92 = arith.constant 0 : index
    %64 = vector.load %arg2[%c2_89, %c1_90, %c0_91, %c0_92] : memref<3x3x4x128xbf16, #tpu.memory_space<vmem>>, vector<1x1x4x128xbf16>
    %65 = vector.shape_cast %64 : vector<1x1x4x128xbf16> to vector<4x128xbf16>
    %cst_93 = arith.constant dense<0.000000e+00> : vector<256x128xf32>
    %66 = tpu.matmul %63, %65, %cst_93 {dimension_numbers = #tpu.dot_dimension_numbers<[1], [0], [0], [1], [0, 0, 1, 1], [], []>} : vector<256x4xbf16>, vector<4x128xbf16>, vector<256x128xf32> -> vector<256x128xf32>
    %c0_94 = arith.constant 0 : index
    %c0_95 = arith.constant 0 : index
    %67 = vector.load %arg4[%c0_94, %c0_95] : memref<256x128xf32, #tpu.memory_space<vmem>>, vector<256x128xf32>
    %68 = arith.addf %67, %66 : vector<256x128xf32>
    %c0_96 = arith.constant 0 : index
    %c0_97 = arith.constant 0 : index
    %69 = vector.load %arg4[%c0_96, %c0_97] : memref<256x128xf32, #tpu.memory_space<vmem>>, vector<256x128xf32>
    tpu.vector_store %arg4[%c0_96, %c0_97], %68 {strides = array<i32>} : memref<256x128xf32, #tpu.memory_space<vmem>>, vector<256x128xf32>,
    %c0_98 = arith.constant 0 : index
    %c2_99 = arith.constant 2 : index
    %c2_100 = arith.constant 2 : index
    %c0_101 = arith.constant 0 : index
    %70 = vector.load %arg1[%c0_98, %c2_99, %c2_100, %c0_101] : memref<1x18x18x4xbf16, #tpu.memory_space<vmem>>, vector<1x16x16x4xbf16>
    %71 = vector.shape_cast %70 : vector<1x16x16x4xbf16> to vector<16x16x4xbf16>
    %72 = vector.shape_cast %71 : vector<16x16x4xbf16> to vector<256x4xbf16>
    %c2_102 = arith.constant 2 : index
    %c2_103 = arith.constant 2 : index
    %c0_104 = arith.constant 0 : index
    %c0_105 = arith.constant 0 : index
    %73 = vector.load %arg2[%c2_102, %c2_103, %c0_104, %c0_105] : memref<3x3x4x128xbf16, #tpu.memory_space<vmem>>, vector<1x1x4x128xbf16>
    %74 = vector.shape_cast %73 : vector<1x1x4x128xbf16> to vector<4x128xbf16>
    %cst_106 = arith.constant dense<0.000000e+00> : vector<256x128xf32>
    %75 = tpu.matmul %72, %74, %cst_106 {dimension_numbers = #tpu.dot_dimension_numbers<[1], [0], [0], [1], [0, 0, 1, 1], [], []>} : vector<256x4xbf16>, vector<4x128xbf16>, vector<256x128xf32> -> vector<256x128xf32>
    %c0_107 = arith.constant 0 : index
    %c0_108 = arith.constant 0 : index
    %76 = vector.load %arg4[%c0_107, %c0_108] : memref<256x128xf32, #tpu.memory_space<vmem>>, vector<256x128xf32>
    %77 = arith.addf %76, %75 : vector<256x128xf32>
    %c0_109 = arith.constant 0 : index
    %c0_110 = arith.constant 0 : index
    %78 = vector.load %arg4[%c0_109, %c0_110] : memref<256x128xf32, #tpu.memory_space<vmem>>, vector<256x128xf32>
    tpu.vector_store %arg4[%c0_109, %c0_110], %77 {strides = array<i32>} : memref<256x128xf32, #tpu.memory_space<vmem>>, vector<256x128xf32>,
    %c0_111 = arith.constant 0 : index
    %c0_112 = arith.constant 0 : index
    %79 = vector.load %arg4[%c0_111, %c0_112] : memref<256x128xf32, #tpu.memory_space<vmem>>, vector<256x128xf32>
    %80 = vector.shape_cast %79 : vector<256x128xf32> to vector<16x16x128xf32>
    %c0_113 = arith.constant 0 : index
    %c0_114 = arith.constant 0 : index
    %c0_115 = arith.constant 0 : index
    %c0_116 = arith.constant 0 : index
    %81 = vector.load %arg3[%c0_113, %c0_114, %c0_115, %c0_116] : memref<1x16x16x128xf32, #tpu.memory_space<vmem>>, vector<1x16x16x128xf32>
    %82 = vector.shape_cast %81 : vector<1x16x16x128xf32> to vector<16x16x128xf32>
    %83 = vector.shape_cast %80 : vector<16x16x128xf32> to vector<1x16x16x128xf32>
    tpu.vector_store %arg3[%c0_113, %c0_114, %c0_115, %c0_116], %83 {strides = array<i32>} : memref<1x16x16x128xf32, #tpu.memory_space<vmem>>, vector<1x16x16x128xf32>,
    return
  }
  func.func @transform_0(%arg0: i32) -> (i32, i32, i32, i32) {
    %c0_i32 = arith.constant 0 : i32
    %c0_i32_0 = arith.constant 0 : i32
    %c0_i32_1 = arith.constant 0 : i32
    %c0_i32_2 = arith.constant 0 : i32
    return %arg0, %c0_i32, %c0_i32_0, %c0_i32_1 : i32, i32, i32, i32
  }
  func.func @transform_1(%arg0: i32) -> (i32, i32, i32, i32) {
    %c0_i32 = arith.constant 0 : i32
    %c0_i32_0 = arith.constant 0 : i32
    %c0_i32_1 = arith.constant 0 : i32
    %c0_i32_2 = arith.constant 0 : i32
    %c0_i32_3 = arith.constant 0 : i32
    return %c0_i32, %c0_i32_0, %c0_i32_1, %c0_i32_2 : i32, i32, i32, i32
  }
  func.func @transform_2(%arg0: i32) -> (i32, i32, i32, i32) {
    %c0_i32 = arith.constant 0 : i32
    %c0_i32_0 = arith.constant 0 : i32
    %c0_i32_1 = arith.constant 0 : i32
    %c0_i32_2 = arith.constant 0 : i32
    return %arg0, %c0_i32, %c0_i32_0, %c0_i32_1 : i32, i32, i32, i32
  }
}

</mosaic_0001>

<bundles_post_ra>
// kernel: tpu_custom_call.1
= control target key start
LH: loop header
LB: loop body
LE: loop exit
PB: predicated region body
PF: predicated region fallthrough
CT: control target
= control target key end

     0   :  { %7 = vsyncpa [#allocation4], 0  ;;  %s8580_s0 = inlined_call_operand.vmem [shape: bf16[2,18,18,4], index: 0, kind: input, shape index: {}]   ;;  %s8581_s1 = inlined_call_operand.vmem [shape: bf16[3,3,4,128], index: 1, kind: input, shape index: {}]   ;;  %s8582_s2 = inlined_call_operand.hbm [shape: f32[2,16,16,128], index: 2, kind: output, shape index: {}]  }
   0x1   :  { %9 = vsyncpa [#allocation4 + $0x1], 0  ;;  %s6815_s9 = smov 0   ;;  %s6817_s10 = smov 0  }
   0x2   :  { %s6819_s11 = smov 0   ;;  %s6821_s12 = smov 0  }
   0x3 LB: > { %s6836_s13 = sadd.s32 4294967295, %s6795_s12   ;;  %s5562_s14 = sadd.s32 4294967294, %s6795_s12   ;;  %s6795_s12 = sphi %s6821_s12, %s8690_s12   ;;  %s6791_s11 = sphi %s6819_s11, %s8689_s11   ;;  %s6787_s10 = sphi %s6817_s10, %s8688_s10   ;;  %s6783_s9 = sphi %s6815_s9, %s8687_s9  }
   0x4   : > { %s6840_s15 = sadd.s32 1, %s6795_s12   ;;  %s69_s16 = sadd.s32 1, %s6791_s11 }
   0x5   : > { %s66_s17 = ssub.s32 %s6795_s12, %s6840_s15  ;;  %p79_p0 = scmp.ne.s32.totalorder %s6791_s11, %s6787_s10 }
   0x6   : > { %p67_p1 = scmp.eq.s32.totalorder %s66_s17, 0  ;;  %p80_p2 = scmp.eq.s32.totalorder %s6836_s13, 1 }
   0x7   : > { %p85_p3 = scmp.ne.s32.totalorder %s6787_s10, %s6783_s9  ;;  %p86_p4 = scmp.eq.s32.totalorder %s5562_s14, 1 }
   0x8   : > { %s6851_s18 = scalar_select %p67_p1, %s6791_s11, %s69_s16  }
   0x9   : > { %p6853_p5 = por %p80_p2, %p79_p0  ;;  %p6857_p6 = por %p86_p4, %p85_p3 }
   0xa   : > { %p5565_p7 = scmp.ge.s32.totalorder %s6795_s12, 1  ;;  %p115_p8 = scmp.lt.s32.totalorder %s6795_s12, 3 }
   0xc   : > { %p116_p9 = pnand %p5565_p7, %p115_p8 }
   0xe   : > { %119 = sbr.rel (%p116_p9) target bundleno = 566 (0x236), region = 28 }
  0x13   : > { %v175_v0 = vld [vmem:[%s8581_s1] sm:$0x3]  ;;  %vm305_vm0 = vcmask 1041408   ;;  %p137_p10 = scmp.lt.s32.totalorder %s6836_s13, 1  ;;  %v5600_v2 = vld [vmem:[%s8581_s1 + $0x2] sm:$0x3] }
  0x14   : > { %6636 = vmatprep.subr.msk.bf16.mxu1 %vm305_vm0, %v175_v0  ;;  %6635 = vmatprep.subr.msk.bf16.mxu0 %vm305_vm0, %v175_v0  ;;  %v307_v1 = vsel %vm305_vm0, %v175_v0, 0  ;;  %v5649_v3 = vld [vmem:[%s8581_s1 + $0x4] sm:$0x3]  ;;  %vm256_vm1 = vcmask 31744   ;;  %v5714_v8 = vld [vmem:[%s8581_s1 + $0x6] sm:$0x3] }
  0x15   : > { %6634 = vmatpush3.bf16.msra.mxu1 %v307_v1  ;;  %6328 = vmatpush3.bf16.msra.mxu0 %v307_v1  ;;  %s138_s27 = scalar_select %p137_p10, %s6836_s13, 1  ;;  %v1605_v7 = vsel %vm305_vm0, %v5649_v3, 0  ;;  %v1036_v10 = vsel %vm305_vm0, %v5600_v2, 0  ;;  %v5795_v11 = vld [vmem:[%s8581_s1 + $0x8] sm:$0x3]  ;;  %vm1391_vm2 = vcmask 1042432  }
  0x16   : > { %6637 = vmatprep.subr.msk.bf16.mxu1 %vm305_vm0, %v5600_v2  ;;  %6638 = vmatprep.subr.msk.bf16.mxu0 %vm305_vm0, %v5649_v3  ;;  %vm550_vm3 = vsmask.f32 3328  ;;  %vm551_vm4 = vsmask.f32 7440  ;;  %v6914_v18 = vld [vmem:[%s8581_s1 + $0xa] sm:$0x3] }
  0x17   : > { %s6645_s28 = smul.u32 216, %s138_s27  ;;  %vm1392_vm5 = vcmask 1046532   ;;  %v6919_v19 = vsel %vm305_vm0, %v5714_v8, 0  ;;  %v6924_v21 = vsel %vm305_vm0, %v5795_v11, 0  ;;  %v6930_v24 = vsel %vm305_vm0, %v6914_v18, 0  ;;  %vm6955_vm7 = vmor %vm550_vm3, %vm551_vm4  ;;  %s134_s25 = sand.u32 1, %s6787_s10  }
  0x18   : > { %vm6941_vm6 = vmor %vm1391_vm2, %vm1392_vm5  ;;  %s5566_s26 = sshll.u32 %s134_s25, 8  ;;  %s6797_s6 = smov [#allocation3]  }
  0x19   : > { %s6882_s3 = scalar_lea.vmem %s8580_s0, %s6645_s28  ;;  %s8434_s27 = scalar_lea.vmem [#allocation3], %s5566_s26 }
  0x1a   : > { %v6687_v4 = vld [vmem:[%s6882_s3] sm:$0xff]   ;;  %v6689_v6 = vld [vmem:[%s6882_s3 + $0xc] sm:$0xff]   ;;  %v6691_v12 = vld [vmem:[%s6882_s3 + $0x18] sm:$0xff]   ;;  %s6173_s28 = sshll.u32 %s6836_s13, 12  ;;  %s5500_s29 = sshll.u32 %s8434_s27, 4  ;;  %s8534_s29 = int_to_ptr.vmem [resolvable:$true] %s5500_s29 }
  0x1b   : > { %v6688_v5 = vld [vmem:[%s6882_s3 + $0x60] sm:$0xff]   ;;  %6329 = vmatprep.mubr.msk.bf16.mxu0 %vm256_vm1, %v6687_v4  ;;  %v6690_v9 = vld [vmem:[%s6882_s3 + $0x6c] sm:$0xff]   ;;  %v6692_v13 = vld [vmem:[%s6882_s3 + $0x78] sm:$0xff]   ;;  %s8532_s4 = scalar_lea.hbm %s8582_s2, %s6173_s28  ;;  %s8540_s13 = scalar_lea.sflag [#allocation4], %s134_s25 }
  0x1c   : > { %6345 = vmatprep.mubr.msk.bf16.mxu1 %vm256_vm1, %v6688_v5  ;;  %6330 = vmatmul.mubr.msk.bf16.vlgmr.msra.gmra.mxu0 %vm256_vm1, %v6689_v6  ;;  %v6693_v14 = vld [vmem:[%s6882_s3 + $0x24] sm:$0xff]   ;;  %v6695_v16 = vld [vmem:[%s6882_s3 + $0x30] sm:$0xff]   ;;  %v6697_v20 = vld [vmem:[%s6882_s3 + $0x3c] sm:$0xff]   ;;  %s6735_s5 = scalar_lea.vmem %s8534_s29, 4096  ;;  %s6739_s7 = sshll.u32 %s6797_s6, 4  ;;  %s6740_s7 = int_to_ptr.vmem [resolvable:$false] %s6739_s7 }
  0x1d   : > { %6346 = vmatmul.mubr.msk.bf16.vlgmr.msra.gmra.mxu1 %vm256_vm1, %v6690_v9  ;;  %6396 = vmatpush3.bf16.msra.mxu0 %v1605_v7  ;;  %v6694_v15 = vld [vmem:[%s6882_s3 + $0x84] sm:$0xff]   ;;  %v6696_v17 = vld [vmem:[%s6882_s3 + $0x90] sm:$0xff]   ;;  %v6698_v22 = vld [vmem:[%s6882_s3 + $0x9c] sm:$0xff]   ;;  %p6736_p11 = scmp.ne.s32.totalorder %s8534_s29, %s6735_s5  ;;  %s6741_s8 = scalar_lea.vmem %s6740_s7, 8192 }
  0x1e   : > { %6362 = vmatpush3.bf16.msra.mxu1 %v1036_v10  ;;  %6333 = vmatprep.mubr.msk.bf16.mxu0 %vm256_vm1, %v6691_v12  ;;  %v6699_v23 = vld [vmem:[%s6882_s3 + $0x48] sm:$0xff]   ;;  %v502_v26 = vld [vmem:[%s6882_s3] sm:$0xf]  ;;  %v503_v27 = vld [vmem:[%s6882_s3 + $0x4] sm:$0xf]  ;;  %p6742_p0 = scmp.lt.s32.totalorder %s8534_s29, %s6740_s7  ;;  %p6743_p1 = scmp.lt.s32.totalorder %s6741_s8, %s6735_s5 }
  0x1f   : > { %6349 = vmatprep.mubr.msk.bf16.mxu1 %vm256_vm1, %v6692_v13  ;;  %6639 = vmatprep.subr.msk.bf16.mxu1 %vm305_vm0, %v5714_v8  ;;  %v6700_v25 = vld [vmem:[%s6882_s3 + $0xa8] sm:$0xff]   ;;  %v554_v29 = vshrl.u32 %v502_v26, 16  ;;  %v557_v30 = vshll.u32 %v502_v26, 16  ;;  %v563_v31 = vshll.u32 %v503_v27, 16  ;;  %v567_v32 = vshrl.u32 %v503_v27, 16  ;;  %v6701_v2 = vld [vmem:[%s6882_s3 + $0x54] sm:$0xff]   ;;  %p6737_p12 = pnand %p6736_p11, %p6853_p5 }
  0x20   : > { %6640 = vmatprep.subr.msk.bf16.mxu0 %vm305_vm0, %v5795_v11  ;;  %v504_v28 = vld [vmem:[%s6882_s3 + $0x8] sm:$0x1]  ;;  %v1295_v33 = vld [vmem:[%s6882_s3] sm:$0xe]  ;;  %v1296_v35 = vld [vmem:[%s6882_s3 + $0x4] sm:$0xf]  ;;  %p6744_p2 = por %p6743_p1, %p6742_p0 }
  0x21   : > { %v573_v34 = vshll.u32 %v504_v28, 16  ;;  %v1297_v36 = vld [vmem:[%s6882_s3 + $0x8] sm:$0x1]  ;;  %v5633_v37 = vrot.slane %v1295_v33, 9  ;;  %v556_v38 = vrot.slane %v554_v29, 4  ;;  %v559_v39 = vrot.slane %v557_v30, 5  ;;  %p6738_p13 = pneg %p6737_p12 }
  0x22   : > { %v565_v40 = vrot.slane %v563_v31, 5  ;;  %v569_v41 = vrot.slane %v567_v32, 4  ;;  %v505_v43 = vld [vmem:[%s6882_s3 + $0xc] sm:$0xf]  ;;  %v1396_v45 = vrot.slane %v1296_v35, 5  ;;  %v1399_v46 = vrot.slane %v1297_v36, 5 }
  0x23   : > { %v575_v44 = vrot.slane %v573_v34, 5  ;;  %v506_v47 = vld [vmem:[%s6882_s3 + $0x10] sm:$0xf]  ;;  %v578_v48 = vshrl.u32 %v505_v43, 16  ;;  %v560_v49 = vor.u32 %v559_v39, %v556_v38  ;;  %v507_v51 = vld [vmem:[%s6882_s3 + $0x14] sm:$0x1]  ;;  %p6745_p3 = pnand %p6744_p2, %p6738_p13 }
  0x24   : > { %6334 = vmatmul.mubr.msk.bf16.gmra.mxu0 %vm256_vm1, %v6693_v14  ;;  %v570_v50 = vor.u32 %v569_v41, %v565_v40  ;;  %v581_v52 = vshll.u32 %v505_v43, 16  ;;  %v587_v53 = vshll.u32 %v506_v47, 16  ;;  %v1298_v54 = vld [vmem:[%s6882_s3 + $0xc] sm:$0xe]  ;;  %v1397_v56 = vsel %vm6941_vm6, %v5633_v37, %v1396_v45  ;;  %v1299_v60 = vld [vmem:[%s6882_s3 + $0x10] sm:$0xf] }
  0x25   : > { %6350 = vmatmul.mubr.msk.bf16.gmra.mxu1 %vm256_vm1, %v6694_v15  ;;  %6337 = vmatprep.mubr.msk.bf16.mxu0 %vm256_vm1, %v6695_v16  ;;  %v1398_v57 = vrot.slane %v1396_v45, 4  ;;  %v580_v58 = vrot.slane %v578_v48, 4  ;;  %v591_v59 = vshrl.u32 %v506_v47, 16  ;;  %v561_v61 = vrot.slane %v560_v49, 4  ;;  %v1300_v1 = vld [vmem:[%s6882_s3 + $0x14] sm:$0x1] }
  0x26   : > { %6353 = vmatprep.mubr.msk.bf16.mxu1 %vm256_vm1, %v6696_v17  ;;  %v571_v62 = vrot.slane %v570_v50, 4  ;;  %v583_v63 = vrot.slane %v581_v52, 5  ;;  %v589_v0 = vrot.slane %v587_v53, 5  ;;  %v597_v5 = vshll.u32 %v507_v51, 16  ;;  %v508_v7 = vld [vmem:[%s6882_s3 + $0x18] sm:$0xf] }
  0x27   : > { %v1400_v3 = vsel %vm6941_vm6, %v1398_v57, %v1399_v46  ;;  %v593_v4 = vrot.slane %v591_v59, 4  ;;  %v5634_v6 = vrot.slane %v1298_v54, 9  ;;  %v6702_v8 = vld [vmem:[%s6882_s3 + $0xb4] sm:$0xff]   ;;  %v566_v9 = vsel %vm6955_vm7, %v561_v61, %v565_v40  ;;  %v509_v13 = vld [vmem:[%s6882_s3 + $0x1c] sm:$0xf] }
  0x28   : > { %v576_v10 = vsel %vm6955_vm7, %v571_v62, %v575_v44  ;;  %v5650_v11 = vcombine.low %v1397_v56, %v1400_v3  ;;  %v584_v12 = vor.u32 %v583_v63, %v580_v58  ;;  %v599_v16 = vrot.slane %v597_v5, 5  ;;  %v1301_v27 = vld [vmem:[%s6882_s3 + $0x18] sm:$0xe]  ;;  %v1302_v32 = vld [vmem:[%s6882_s3 + $0x1c] sm:$0xf] }
  0x29   : > { %v5601_v14 = vcombine.low %v566_v9, %v576_v10  ;;  %v594_v15 = vor.u32 %v593_v4, %v589_v0  ;;  %v1403_v17 = vrot.slane %v1299_v60, 5  ;;  %v605_v26 = vshll.u32 %v508_v7, 16  ;;  %v1303_v37 = vld [vmem:[%s6882_s3 + $0x20] sm:$0x1]  ;;  %v511_v43 = vld [vmem:[%s6882_s3 + $0x24] sm:$0xf] }
  0x2a   : > { %v611_v31 = vshll.u32 %v509_v13, 16  ;;  %v615_v36 = vshrl.u32 %v509_v13, 16  ;;  %v512_v48 = vld [vmem:[%s6882_s3 + $0x28] sm:$0xf]  ;;  %v5635_v50 = vrot.slane %v1301_v27, 9  ;;  %v1410_v51 = vrot.slane %v1302_v32, 5 }
  0x2b   : > { %v595_v28 = vrot.slane %v594_v15, 4  ;;  %v1404_v29 = vsel %vm6941_vm6, %v5634_v6, %v1403_v17  ;;  %v1405_v30 = vrot.slane %v1403_v17, 4  ;;  %v607_v35 = vrot.slane %v605_v26, 5  ;;  %v513_v53 = vld [vmem:[%s6882_s3 + $0x2c] sm:$0x1] }
  0x2c   : > { %6338 = vmatmul.mubr.msk.bf16.gmra.mxu0 %vm256_vm1, %v6697_v20  ;;  %v510_v20 = vld [vmem:[%s6882_s3 + $0x20] sm:$0x1]  ;;  %v613_v40 = vrot.slane %v611_v31, 5  ;;  %v617_v47 = vrot.slane %v615_v36, 4  ;;  %v1413_v52 = vrot.slane %v1303_v37, 5  ;;  %v626_v57 = vshrl.u32 %v511_v43, 16 }
  0x2d   : > { %6354 = vmatmul.mubr.msk.bf16.gmra.mxu1 %vm256_vm1, %v6698_v22  ;;  %6341 = vmatprep.mubr.msk.bf16.mxu0 %vm256_vm1, %v6699_v23  ;;  %v585_v22 = vrot.slane %v584_v12, 4  ;;  %v1406_v23 = vrot.slane %v1300_v1, 5  ;;  %v600_v38 = vsel %vm6955_vm7, %v595_v28, %v599_v16  ;;  %v621_v41 = vshll.u32 %v510_v20, 16  ;;  %v1304_v59 = vld [vmem:[%s6882_s3 + $0x24] sm:$0xe] }
  0x2e   : > { %6357 = vmatprep.mubr.msk.bf16.mxu1 %vm256_vm1, %v6700_v25  ;;  %v602_v25 = vshrl.u32 %v508_v7, 16  ;;  %v618_v56 = vor.u32 %v617_v47, %v613_v40  ;;  %v629_v58 = vshll.u32 %v511_v43, 16  ;;  %v1411_v60 = vsel %vm6941_vm6, %v5635_v50, %v1410_v51  ;;  %v1306_v5 = vld [vmem:[%s6882_s3 + $0x2c] sm:$0x1]  ;;  %v514_v10 = vld [vmem:[%s6882_s3 + $0x30] sm:$0xf] }
  0x2f   : > { %v590_v33 = vsel %vm6955_vm7, %v585_v22, %v589_v0  ;;  %v1407_v39 = vsel %vm6941_vm6, %v1405_v30, %v1406_v23  ;;  %v623_v49 = vrot.slane %v621_v41, 5  ;;  %v1412_v61 = vrot.slane %v1410_v51, 4  ;;  %v1305_v0 = vld [vmem:[%s6882_s3 + $0x28] sm:$0xf]  ;;  %v515_v15 = vld [vmem:[%s6882_s3 + $0x34] sm:$0xf] }
  0x30   : > { %v604_v34 = vrot.slane %v602_v25, 4  ;;  %v5602_v44 = vcombine.low %v590_v33, %v600_v38  ;;  %v5651_v45 = vcombine.low %v1404_v29, %v1407_v39  ;;  %v635_v62 = vshll.u32 %v512_v48, 16  ;;  %v516_v23 = vld [vmem:[%s6882_s3 + $0x38] sm:$0x1]  ;;  %v1307_v28 = vld [vmem:[%s6882_s3 + $0x30] sm:$0xe] }
  0x31   : > { %v639_v63 = vshrl.u32 %v512_v48, 16  ;;  %v628_v3 = vrot.slane %v626_v57, 4  ;;  %v631_v4 = vrot.slane %v629_v58, 5  ;;  %v1414_v6 = vsel %vm6941_vm6, %v1412_v61, %v1413_v52  ;;  %v1308_v32 = vld [vmem:[%s6882_s3 + $0x34] sm:$0xf] }
  0x32   : > { %v608_v46 = vor.u32 %v607_v35, %v604_v34  ;;  %v637_v7 = vrot.slane %v635_v62, 5  ;;  %v645_v9 = vshll.u32 %v513_v53, 16  ;;  %v5652_v12 = vcombine.low %v1411_v60, %v1414_v6  ;;  %v1309_v37 = vld [vmem:[%s6882_s3 + $0x38] sm:$0x1]  ;;  %v517_v41 = vld [vmem:[%s6882_s3 + $0x3c] sm:$0xf] }
  0x33   : > { %v632_v13 = vor.u32 %v631_v4, %v628_v3  ;;  %v1417_v22 = vrot.slane %v1305_v0, 5  ;;  %v650_v26 = vshrl.u32 %v514_v10, 16  ;;  %v653_v27 = vshll.u32 %v514_v10, 16  ;;  %v518_v47 = vld [vmem:[%s6882_s3 + $0x40] sm:$0xf] }
  0x34   : > { %6342 = vmatmul.mubr.msk.bf16.gmra.mxu0 %vm256_vm1, %v6701_v2  ;;  %v609_v54 = vrot.slane %v608_v46, 4  ;;  %v619_v2 = vrot.slane %v618_v56, 4  ;;  %v647_v20 = vrot.slane %v645_v9, 5  ;;  %v659_v31 = vshll.u32 %v515_v15, 16  ;;  %v519_v52 = vld [vmem:[%s6882_s3 + $0x44] sm:$0x1] }
  0x35   : > { %6358 = vmatmul.mubr.msk.bf16.gmra.mxu1 %vm256_vm1, %v6702_v8  ;;  %6397 = vmatprep.mubr.msk.bf16.mxu0 %vm256_vm1, %v5650_v11  ;;  %v641_v8 = vrot.slane %v639_v63, 4  ;;  %v633_v25 = vrot.slane %v632_v13, 4  ;;  %v1419_v30 = vrot.slane %v1417_v22, 4  ;;  %v652_v34 = vrot.slane %v650_v26, 4  ;;  %v1310_v58 = vld [vmem:[%s6882_s3 + $0x3c] sm:$0xe] }
  0x36   : > { %6363 = vmatprep.mubr.msk.bf16.mxu1 %vm256_vm1, %v5601_v14  ;;  %v614_v1 = vsel %vm6955_vm7, %v609_v54, %v613_v40  ;;  %v624_v11 = vsel %vm6955_vm7, %v619_v2, %v623_v49  ;;  %v5636_v14 = vrot.slane %v1304_v59, 9  ;;  %v655_v35 = vrot.slane %v653_v27, 5  ;;  %v1311_v63 = vld [vmem:[%s6882_s3 + $0x40] sm:$0xf]  ;;  %v1312_v4 = vld [vmem:[%s6882_s3 + $0x44] sm:$0x1] }
  0x37   : > { %v5603_v16 = vcombine.low %v614_v1, %v624_v11  ;;  %v642_v17 = vor.u32 %v641_v8, %v637_v7  ;;  %v638_v33 = vsel %vm6955_vm7, %v633_v25, %v637_v7  ;;  %v663_v36 = vshrl.u32 %v515_v15, 16  ;;  %v520_v9 = vld [vmem:[%s6882_s3 + $0x48] sm:$0xf] }
  0x38   : > { %v1418_v29 = vsel %vm6941_vm6, %v5636_v14, %v1417_v22  ;;  %v661_v39 = vrot.slane %v659_v31, 5  ;;  %v669_v40 = vshll.u32 %v516_v23, 16  ;;  %v5637_v49 = vrot.slane %v1307_v28, 9  ;;  %v521_v14 = vld [vmem:[%s6882_s3 + $0x4c] sm:$0xf] }
  0x39   : > { %v665_v46 = vrot.slane %v663_v36, 4  ;;  %v1424_v50 = vrot.slane %v1308_v32, 5  ;;  %v1427_v51 = vrot.slane %v1309_v37, 5  ;;  %v674_v56 = vshrl.u32 %v517_v41, 16  ;;  %v522_v22 = vld [vmem:[%s6882_s3 + $0x50] sm:$0x1] }
  0x3a   : > { %v671_v48 = vrot.slane %v669_v40, 5  ;;  %v677_v57 = vshll.u32 %v517_v41, 16  ;;  %v683_v61 = vshll.u32 %v518_v47, 16  ;;  %v687_v62 = vshrl.u32 %v518_v47, 16  ;;  %v1313_v27 = vld [vmem:[%s6882_s3 + $0x48] sm:$0xe] }
  0x3b   : > { %v666_v54 = vor.u32 %v665_v46, %v661_v39  ;;  %v1425_v59 = vsel %vm6941_vm6, %v5637_v49, %v1424_v50  ;;  %v1426_v60 = vrot.slane %v1424_v50, 4  ;;  %v676_v2 = vrot.slane %v674_v56, 4  ;;  %v1314_v31 = vld [vmem:[%s6882_s3 + $0x4c] sm:$0xf]  ;;  %v1315_v36 = vld [vmem:[%s6882_s3 + $0x50] sm:$0x1] }
  0x3c   : > { %6398 = vmatmul.mubr.msk.bf16.vlgmr.msra.gmra.mxu0 %vm256_vm1, %v5651_v45  ;;  %v656_v45 = vor.u32 %v655_v35, %v652_v34  ;;  %v679_v3 = vrot.slane %v677_v57, 5  ;;  %v685_v6 = vrot.slane %v683_v61, 5  ;;  %v689_v7 = vrot.slane %v687_v62, 4  ;;  %v523_v40 = vld [vmem:[%s6882_s3 + $0x54] sm:$0xf] }
  0x3d   : > { %6364 = vmatmul.mubr.msk.bf16.vlgmr.msra.gmra.mxu1 %vm256_vm1, %v5602_v44  ;;  %6464 = vmatpush3.bf16.msra.mxu0 %v6924_v21  ;;  %v1420_v21 = vrot.slane %v1306_v5, 5  ;;  %v667_v1 = vrot.slane %v666_v54, 4  ;;  %v1428_v5 = vsel %vm6941_vm6, %v1426_v60, %v1427_v51  ;;  %v693_v8 = vshll.u32 %v519_v52, 16  ;;  %v524_v46 = vld [vmem:[%s6882_s3 + $0x58] sm:$0xf] }
  0x3e   : > { %6430 = vmatpush3.bf16.msra.mxu1 %v6919_v19  ;;  %6401 = vmatprep.mubr.msk.bf16.mxu0 %vm256_vm1, %v5652_v12  ;;  %v643_v19 = vrot.slane %v642_v17, 4  ;;  %v657_v53 = vrot.slane %v656_v45, 4  ;;  %v5654_v11 = vcombine.low %v1425_v59, %v1428_v5  ;;  %v680_v12 = vor.u32 %v679_v3, %v676_v2  ;;  %v525_v51 = vld [vmem:[%s6882_s3 + $0x5c] sm:$0x1]  ;;  %v1316_v57 = vld [vmem:[%s6882_s3 + $0x54] sm:$0xe] }
  0x3f   : > { %6641 = vmatprep.subr.msk.bf16.mxu1 %vm305_vm0, %v6914_v18  ;;  %6367 = vmatprep.mubr.msk.bf16.mxu1 %vm256_vm1, %v5603_v16  ;;  %v1421_v38 = vsel %vm6941_vm6, %v1419_v30, %v1420_v21  ;;  %v672_v10 = vsel %vm6955_vm7, %v667_v1, %v671_v48  ;;  %v5638_v13 = vrot.slane %v1310_v58, 9  ;;  %v690_v16 = vor.u32 %v689_v7, %v685_v6  ;;  %v1317_v62 = vld [vmem:[%s6882_s3 + $0x58] sm:$0xf]  ;;  %v1318_v3 = vld [vmem:[%s6882_s3 + $0x5c] sm:$0x1] }
  0x40   : > { %v648_v18 = vsel %vm6955_vm7, %v643_v19, %v647_v20  ;;  %v5653_v44 = vcombine.low %v1418_v29, %v1421_v38  ;;  %v662_v0 = vsel %vm6955_vm7, %v657_v53, %v661_v39  ;;  %v695_v17 = vrot.slane %v693_v8, 5  ;;  %v526_v8 = vld [vmem:[%s6882_s3 + $0x60] sm:$0xf] }
  0x41   : > { %v5604_v43 = vcombine.low %v638_v33, %v648_v18  ;;  %v5605_v15 = vcombine.low %v662_v0, %v672_v10  ;;  %v1431_v20 = vrot.slane %v1311_v63, 5  ;;  %v681_v23 = vrot.slane %v680_v12, 4 }
  0x42   : > { %v1434_v25 = vrot.slane %v1312_v4, 5  ;;  %v698_v21 = vshrl.u32 %v520_v9, 16  ;;  %v701_v26 = vshll.u32 %v520_v9, 16  ;;  %v691_v28 = vrot.slane %v690_v16, 4 }
  0x43   : > { %v1432_v19 = vsel %vm6941_vm6, %v5638_v13, %v1431_v20  ;;  %v1433_v29 = vrot.slane %v1431_v20, 4  ;;  %v707_v30 = vshll.u32 %v521_v14, 16  ;;  %v686_v32 = vsel %vm6955_vm7, %v681_v23, %v685_v6  ;;  %v527_v13 = vld [vmem:[%s6882_s3 + $0x64] sm:$0xf]  ;;  %v528_v20 = vld [vmem:[%s6882_s3 + $0x68] sm:$0x1] }
  0x44   : > { %6402 = vmatmul.mubr.msk.bf16.gmra.mxu0 %vm256_vm1, %v5653_v44  ;;  %v700_v33 = vrot.slane %v698_v21, 4  ;;  %v703_v34 = vrot.slane %v701_v26, 5  ;;  %v711_v35 = vshrl.u32 %v521_v14, 16  ;;  %v696_v37 = vsel %vm6955_vm7, %v691_v28, %v695_v17  ;;  %v1319_v26 = vld [vmem:[%s6882_s3 + $0x60] sm:$0xe] }
  0x45   : > { %6368 = vmatmul.mubr.msk.bf16.gmra.mxu1 %vm256_vm1, %v5604_v43  ;;  %6405 = vmatprep.mubr.msk.bf16.mxu0 %vm256_vm1, %v5654_v11  ;;  %v1435_v18 = vsel %vm6941_vm6, %v1433_v29, %v1434_v25  ;;  %v709_v38 = vrot.slane %v707_v30, 5  ;;  %v717_v39 = vshll.u32 %v522_v22, 16  ;;  %v5606_v41 = vcombine.low %v686_v32, %v696_v37  ;;  %v1320_v30 = vld [vmem:[%s6882_s3 + $0x64] sm:$0xf] }
  0x46   : > { %6371 = vmatprep.mubr.msk.bf16.mxu1 %vm256_vm1, %v5605_v15  ;;  %v5655_v43 = vcombine.low %v1432_v19, %v1435_v18  ;;  %v704_v44 = vor.u32 %v703_v34, %v700_v33  ;;  %v713_v45 = vrot.slane %v711_v35, 4  ;;  %v5639_v48 = vrot.slane %v1313_v27, 9  ;;  %v1321_v35 = vld [vmem:[%s6882_s3 + $0x68] sm:$0x1] }
  0x47   : > { %v719_v47 = vrot.slane %v717_v39, 5  ;;  %v1438_v49 = vrot.slane %v1314_v31, 5  ;;  %v1441_v50 = vrot.slane %v1315_v36, 5  ;;  %v722_v54 = vshrl.u32 %v523_v40, 16  ;;  %v529_v39 = vld [vmem:[%s6882_s3 + $0x6c] sm:$0xf] }
  0x48   : > { %v705_v52 = vrot.slane %v704_v44, 4  ;;  %v714_v53 = vor.u32 %v713_v45, %v709_v38  ;;  %v725_v56 = vshll.u32 %v523_v40, 16  ;;  %v731_v60 = vshll.u32 %v524_v46, 16  ;;  %v530_v45 = vld [vmem:[%s6882_s3 + $0x70] sm:$0xf] }
  0x49   : > { %v1439_v58 = vsel %vm6941_vm6, %v5639_v48, %v1438_v49  ;;  %v1440_v59 = vrot.slane %v1438_v49, 4  ;;  %v735_v61 = vshrl.u32 %v524_v46, 16  ;;  %v724_v1 = vrot.slane %v722_v54, 4 }
  0x4a   : > { %v710_v63 = vsel %vm6955_vm7, %v705_v52, %v709_v38  ;;  %v715_v0 = vrot.slane %v714_v53, 4  ;;  %v727_v2 = vrot.slane %v725_v56, 5  ;;  %v733_v5 = vrot.slane %v731_v60, 5  ;;  %v1322_v56 = vld [vmem:[%s6882_s3 + $0x6c] sm:$0xe] }
  0x4b   : > { %v1442_v4 = vsel %vm6941_vm6, %v1440_v59, %v1441_v50  ;;  %v737_v6 = vrot.slane %v735_v61, 4  ;;  %v741_v7 = vshll.u32 %v525_v51, 16  ;;  %v5640_v12 = vrot.slane %v1316_v57, 9  ;;  %v531_v50 = vld [vmem:[%s6882_s3 + $0x74] sm:$0x1] }
  0x4c   : > { %6406 = vmatmul.mubr.msk.bf16.gmra.mxu0 %vm256_vm1, %v5655_v43  ;;  %v720_v9 = vsel %vm6955_vm7, %v715_v0, %v719_v47  ;;  %v5656_v10 = vcombine.low %v1439_v58, %v1442_v4  ;;  %v728_v11 = vor.u32 %v727_v2, %v724_v1  ;;  %v1445_v17 = vrot.slane %v1317_v62, 5  ;;  %v1323_v61 = vld [vmem:[%s6882_s3 + $0x70] sm:$0xf]  ;;  %v1324_v2 = vld [vmem:[%s6882_s3 + $0x74] sm:$0x1] }
  0x4d   : > { %6372 = vmatmul.mubr.msk.bf16.gmra.mxu1 %vm256_vm1, %v5606_v41  ;;  %v5607_v14 = vcombine.low %v710_v63, %v720_v9  ;;  %v738_v15 = vor.u32 %v737_v6, %v733_v5  ;;  %v743_v16 = vrot.slane %v741_v7, 5  ;;  %v1448_v23 = vrot.slane %v1318_v3, 5  ;;  %v532_v7 = vld [vmem:[%s6882_s3 + $0x78] sm:$0xf] }
  0x4e   : > { %6409 = vmatprep.mubr.msk.bf16.mxu0 %vm256_vm1, %v5656_v10  ;;  %v729_v22 = vrot.slane %v728_v11, 4  ;;  %v746_v25 = vshrl.u32 %v526_v8, 16  ;;  %v749_v21 = vshll.u32 %v526_v8, 16  ;;  %v1446_v28 = vsel %vm6941_vm6, %v5640_v12, %v1445_v17  ;;  %v533_v12 = vld [vmem:[%s6882_s3 + $0x7c] sm:$0xf] }
  0x4f   : > { %6375 = vmatprep.mubr.msk.bf16.mxu1 %vm256_vm1, %v5607_v14  ;;  %v739_v27 = vrot.slane %v738_v15, 4  ;;  %v1447_v19 = vrot.slane %v1445_v17, 4  ;;  %v755_v29 = vshll.u32 %v527_v13, 16  ;;  %v759_v34 = vshrl.u32 %v527_v13, 16  ;;  %v534_v17 = vld [vmem:[%s6882_s3 + $0x80] sm:$0x1] }
  0x50   : > { %v734_v31 = vsel %vm6955_vm7, %v729_v22, %v733_v5  ;;  %v748_v32 = vrot.slane %v746_v25, 4  ;;  %v751_v33 = vrot.slane %v749_v21, 5  ;;  %v765_v38 = vshll.u32 %v528_v20, 16  ;;  %v1325_v21 = vld [vmem:[%s6882_s3 + $0x78] sm:$0xe] }
  0x51   : > { %v744_v36 = vsel %vm6955_vm7, %v739_v27, %v743_v16  ;;  %v1449_v37 = vsel %vm6941_vm6, %v1447_v19, %v1448_v23  ;;  %v757_v18 = vrot.slane %v755_v29, 5  ;;  %v761_v44 = vrot.slane %v759_v34, 4  ;;  %v1326_v29 = vld [vmem:[%s6882_s3 + $0x7c] sm:$0xf]  ;;  %v1327_v34 = vld [vmem:[%s6882_s3 + $0x80] sm:$0x1] }
  0x52   : > { %v5608_v40 = vcombine.low %v734_v31, %v744_v36  ;;  %v5657_v41 = vcombine.low %v1446_v28, %v1449_v37  ;;  %v752_v43 = vor.u32 %v751_v33, %v748_v32  ;;  %v767_v46 = vrot.slane %v765_v38, 5  ;;  %v535_v38 = vld [vmem:[%s6882_s3 + $0x84] sm:$0xf] }
  0x53   : > { %v5641_v47 = vrot.slane %v1319_v26, 9  ;;  %v1452_v48 = vrot.slane %v1320_v30, 5  ;;  %v1455_v49 = vrot.slane %v1321_v35, 5  ;;  %v762_v52 = vor.u32 %v761_v44, %v757_v18  ;;  %v536_v44 = vld [vmem:[%s6882_s3 + $0x88] sm:$0xf] }
  0x54   : > { %6410 = vmatmul.mubr.msk.bf16.gmra.mxu0 %vm256_vm1, %v5657_v41  ;;  %v753_v51 = vrot.slane %v752_v43, 4  ;;  %v770_v53 = vshrl.u32 %v529_v39, 16  ;;  %v773_v54 = vshll.u32 %v529_v39, 16  ;;  %v779_v59 = vshll.u32 %v530_v45, 16 }
  0x55   : > { %6376 = vmatmul.mubr.msk.bf16.gmra.mxu1 %vm256_vm1, %v5608_v40  ;;  %v1453_v57 = vsel %vm6941_vm6, %v5641_v47, %v1452_v48  ;;  %v1454_v58 = vrot.slane %v1452_v48, 4  ;;  %v783_v60 = vshrl.u32 %v530_v45, 16  ;;  %v763_v63 = vrot.slane %v762_v52, 4 }
  0x56   : > { %v758_v62 = vsel %vm6955_vm7, %v753_v51, %v757_v18  ;;  %v772_v0 = vrot.slane %v770_v53, 4  ;;  %v775_v1 = vrot.slane %v773_v54, 5  ;;  %v781_v4 = vrot.slane %v779_v59, 5  ;;  %v1328_v54 = vld [vmem:[%s6882_s3 + $0x84] sm:$0xe] }
  0x57   : > { %v1456_v3 = vsel %vm6941_vm6, %v1454_v58, %v1455_v49  ;;  %v785_v5 = vrot.slane %v783_v60, 4  ;;  %v789_v6 = vshll.u32 %v531_v50, 16  ;;  %v768_v8 = vsel %vm6955_vm7, %v763_v63, %v767_v46  ;;  %v537_v49 = vld [vmem:[%s6882_s3 + $0x8c] sm:$0x1]  ;;  %v1329_v60 = vld [vmem:[%s6882_s3 + $0x88] sm:$0xf] }
  0x58   : > { %v5658_v9 = vcombine.low %v1453_v57, %v1456_v3  ;;  %v776_v10 = vor.u32 %v775_v1, %v772_v0  ;;  %v5642_v11 = vrot.slane %v1322_v56, 9  ;;  %v5609_v13 = vcombine.low %v758_v62, %v768_v8  ;;  %v1330_v1 = vld [vmem:[%s6882_s3 + $0x8c] sm:$0x1] }
  0x59   : > { %v786_v14 = vor.u32 %v785_v5, %v781_v4  ;;  %v791_v15 = vrot.slane %v789_v6, 5  ;;  %v1459_v16 = vrot.slane %v1323_v61, 5  ;;  %v1462_v22 = vrot.slane %v1324_v2, 5  ;;  %v538_v6 = vld [vmem:[%s6882_s3 + $0x90] sm:$0xf] }
  0x5a   : > { %6413 = vmatprep.mubr.msk.bf16.mxu0 %vm256_vm1, %v5658_v9  ;;  %v777_v20 = vrot.slane %v776_v10, 4  ;;  %v794_v23 = vshrl.u32 %v532_v7, 16  ;;  %v797_v25 = vshll.u32 %v532_v7, 16  ;;  %6379 = vmatprep.mubr.msk.bf16.mxu1 %vm256_vm1, %v5609_v13  ;;  %v803_v19 = vshll.u32 %v533_v12, 16 }
  0x5b   : > { %v787_v26 = vrot.slane %v786_v14, 4  ;;  %v1460_v27 = vsel %vm6941_vm6, %v5642_v11, %v1459_v16  ;;  %v1461_v28 = vrot.slane %v1459_v16, 4  ;;  %v807_v33 = vshrl.u32 %v533_v12, 16  ;;  %v539_v11 = vld [vmem:[%s6882_s3 + $0x94] sm:$0xf] }
  0x5c   : > { %v782_v30 = vsel %vm6955_vm7, %v777_v20, %v781_v4  ;;  %v796_v31 = vrot.slane %v794_v23, 4  ;;  %v799_v32 = vrot.slane %v797_v25, 5  ;;  %v805_v37 = vrot.slane %v803_v19, 5  ;;  %v540_v12 = vld [vmem:[%s6882_s3 + $0x98] sm:$0x1] }
  0x5d   : > { %v792_v35 = vsel %vm6955_vm7, %v787_v26, %v791_v15  ;;  %v1463_v36 = vsel %vm6941_vm6, %v1461_v28, %v1462_v22  ;;  %v813_v18 = vshll.u32 %v534_v17, 16  ;;  %v809_v43 = vrot.slane %v807_v33, 4  ;;  %v1331_v25 = vld [vmem:[%s6882_s3 + $0x90] sm:$0xe] }
  0x5e   : > { %v5610_v39 = vcombine.low %v782_v30, %v792_v35  ;;  %v5659_v40 = vcombine.low %v1460_v27, %v1463_v36  ;;  %v800_v41 = vor.u32 %v799_v32, %v796_v31  ;;  %v5643_v46 = vrot.slane %v1325_v21, 9  ;;  %v1332_v21 = vld [vmem:[%s6882_s3 + $0x94] sm:$0xf] }
  0x5f   : > { %v815_v45 = vrot.slane %v813_v18, 5  ;;  %v1466_v47 = vrot.slane %v1326_v29, 5  ;;  %v1469_v48 = vrot.slane %v1327_v34, 5  ;;  %v810_v51 = vor.u32 %v809_v43, %v805_v37  ;;  %v1333_v29 = vld [vmem:[%s6882_s3 + $0x98] sm:$0x1] }
  0x60   : > { %6380 = vmatmul.mubr.msk.bf16.gmra.mxu1 %vm256_vm1, %v5610_v39  ;;  %6414 = vmatmul.mubr.msk.bf16.gmra.mxu0 %vm256_vm1, %v5659_v40  ;;  %v801_v50 = vrot.slane %v800_v41, 4  ;;  %v818_v52 = vshrl.u32 %v535_v38, 16  ;;  %v821_v53 = vshll.u32 %v535_v38, 16  ;;  %v827_v58 = vshll.u32 %v536_v44, 16  ;;  %v541_v34 = vld [vmem:[%s6882_s3 + $0x9c] sm:$0xf] }
  0x61   : > { %v1467_v56 = vsel %vm6941_vm6, %v5643_v46, %v1466_v47  ;;  %v1468_v57 = vrot.slane %v1466_v47, 4  ;;  %v831_v59 = vshrl.u32 %v536_v44, 16  ;;  %v811_v62 = vrot.slane %v810_v51, 4  ;;  %v542_v43 = vld [vmem:[%s6882_s3 + $0xa0] sm:$0xf] }
  0x62   : > { %v806_v61 = vsel %vm6955_vm7, %v801_v50, %v805_v37  ;;  %v820_v63 = vrot.slane %v818_v52, 4  ;;  %v823_v0 = vrot.slane %v821_v53, 5  ;;  %v829_v3 = vrot.slane %v827_v58, 5  ;;  %v543_v44 = vld [vmem:[%s6882_s3 + $0xa4] sm:$0x1] }
  0x63   : > { %v1470_v2 = vsel %vm6941_vm6, %v1468_v57, %v1469_v48  ;;  %v833_v4 = vrot.slane %v831_v59, 4  ;;  %v837_v5 = vshll.u32 %v537_v49, 16  ;;  %v816_v7 = vsel %vm6955_vm7, %v811_v62, %v815_v45  ;;  %v1334_v49 = vld [vmem:[%s6882_s3 + $0x9c] sm:$0xe] }
  0x64   : > { %v5660_v8 = vcombine.low %v1467_v56, %v1470_v2  ;;  %v824_v9 = vor.u32 %v823_v0, %v820_v63  ;;  %v5644_v10 = vrot.slane %v1328_v54, 9  ;;  %v5611_v13 = vcombine.low %v806_v61, %v816_v7  ;;  %v1335_v54 = vld [vmem:[%s6882_s3 + $0xa0] sm:$0xf]  ;;  %v7163_v56 = vld [vmem:[%s8581_s1 + $0xc] sm:$0x3] }
  0x65   : > { %v834_v14 = vor.u32 %v833_v4, %v829_v3  ;;  %v839_v15 = vrot.slane %v837_v5, 5  ;;  %v1473_v16 = vrot.slane %v1329_v60, 5  ;;  %v1476_v20 = vrot.slane %v1330_v1, 5  ;;  %v1336_v61 = vld [vmem:[%s6882_s3 + $0xa4] sm:$0x1]  ;;  %6642 = vmatprep.subr.msk.bf16.mxu0 %vm305_vm0, %v7163_v56 }
  0x66   : > { %6417 = vmatprep.mubr.msk.bf16.mxu0 %vm256_vm1, %v5660_v8  ;;  %v825_v17 = vrot.slane %v824_v9, 4  ;;  %v842_v22 = vshrl.u32 %v538_v6, 16  ;;  %v845_v23 = vshll.u32 %v538_v6, 16  ;;  %6383 = vmatprep.mubr.msk.bf16.mxu1 %vm256_vm1, %v5611_v13  ;;  %v851_v19 = vshll.u32 %v539_v11, 16  ;;  %v544_v6 = vld [vmem:[%s6882_s3 + $0xa8] sm:$0xf] }
  0x67   : > { %v835_v26 = vrot.slane %v834_v14, 4  ;;  %v1474_v27 = vsel %vm6941_vm6, %v5644_v10, %v1473_v16  ;;  %v1475_v28 = vrot.slane %v1473_v16, 4  ;;  %v855_v33 = vshrl.u32 %v539_v11, 16  ;;  %v545_v11 = vld [vmem:[%s6882_s3 + $0xac] sm:$0xf] }
  0x68   : > { %v830_v30 = vsel %vm6955_vm7, %v825_v17, %v829_v3  ;;  %v844_v31 = vrot.slane %v842_v22, 4  ;;  %v847_v32 = vrot.slane %v845_v23, 5  ;;  %v853_v37 = vrot.slane %v851_v19, 5 }
  0x69   : > { %v840_v35 = vsel %vm6955_vm7, %v835_v26, %v839_v15  ;;  %v1477_v36 = vsel %vm6941_vm6, %v1475_v28, %v1476_v20  ;;  %v861_v18 = vshll.u32 %v540_v12, 16  ;;  %v857_v41 = vrot.slane %v855_v33, 4  ;;  %v546_v12 = vld [vmem:[%s6882_s3 + $0xb0] sm:$0x1] }
  0x6a   : > { %v5612_v38 = vcombine.low %v830_v30, %v840_v35  ;;  %v5661_v39 = vcombine.low %v1474_v27, %v1477_v36  ;;  %v848_v40 = vor.u32 %v847_v32, %v844_v31  ;;  %v5645_v46 = vrot.slane %v1331_v25, 9  ;;  %v1337_v25 = vld [vmem:[%s6882_s3 + $0xa8] sm:$0xe] }
  0x6b   : > { %v863_v45 = vrot.slane %v861_v18, 5  ;;  %v1480_v47 = vrot.slane %v1332_v21, 5  ;;  %v1483_v48 = vrot.slane %v1333_v29, 5  ;;  %v858_v51 = vor.u32 %v857_v41, %v853_v37  ;;  %v1338_v21 = vld [vmem:[%s6882_s3 + $0xac] sm:$0xf] }
  0x6c   : > { %6384 = vmatmul.mubr.msk.bf16.gmra.mxu1 %vm256_vm1, %v5612_v38  ;;  %6418 = vmatmul.mubr.msk.bf16.gmra.mxu0 %vm256_vm1, %v5661_v39  ;;  %v849_v50 = vrot.slane %v848_v40, 4  ;;  %v866_v52 = vshrl.u32 %v541_v34, 16  ;;  %v869_v53 = vshll.u32 %v541_v34, 16  ;;  %v875_v59 = vshll.u32 %v542_v43, 16  ;;  %v1339_v29 = vld [vmem:[%s6882_s3 + $0xb0] sm:$0x1] }
  0x6d   : > { %v1481_v57 = vsel %vm6941_vm6, %v5645_v46, %v1480_v47  ;;  %v1482_v58 = vrot.slane %v1480_v47, 4  ;;  %v879_v60 = vshrl.u32 %v542_v43, 16  ;;  %v859_v63 = vrot.slane %v858_v51, 4  ;;  %v547_v34 = vld [vmem:[%s6882_s3 + $0xb4] sm:$0xf] }
  0x6e   : > { %v854_v62 = vsel %vm6955_vm7, %v849_v50, %v853_v37  ;;  %v868_v0 = vrot.slane %v866_v52, 4  ;;  %v871_v1 = vrot.slane %v869_v53, 5  ;;  %v877_v3 = vrot.slane %v875_v59, 5  ;;  %v548_v43 = vld [vmem:[%s6882_s3 + $0xb8] sm:$0xf] }
  0x6f   : > { %v1484_v2 = vsel %vm6941_vm6, %v1482_v58, %v1483_v48  ;;  %v881_v4 = vrot.slane %v879_v60, 4  ;;  %v885_v5 = vshll.u32 %v543_v44, 16  ;;  %v864_v7 = vsel %vm6955_vm7, %v859_v63, %v863_v45  ;;  %v549_v44 = vld [vmem:[%s6882_s3 + $0xbc] sm:$0x1] }
  0x70   : > { %v5662_v8 = vcombine.low %v1481_v57, %v1484_v2  ;;  %v872_v9 = vor.u32 %v871_v1, %v868_v0  ;;  %v5646_v10 = vrot.slane %v1334_v49, 9  ;;  %v5613_v13 = vcombine.low %v854_v62, %v864_v7  ;;  %v1340_v49 = vld [vmem:[%s6882_s3 + $0xb4] sm:$0xe]  ;;  %v1342_v1 = vld [vmem:[%s6882_s3 + $0xbc] sm:$0x1] }
  0x71   : > { %v882_v14 = vor.u32 %v881_v4, %v877_v3  ;;  %v887_v15 = vrot.slane %v885_v5, 5  ;;  %v1487_v16 = vrot.slane %v1335_v54, 5  ;;  %v1490_v20 = vrot.slane %v1336_v61, 5  ;;  %v1341_v54 = vld [vmem:[%s6882_s3 + $0xb8] sm:$0xf] }
  0x72   : > { %6421 = vmatprep.mubr.msk.bf16.mxu0 %vm256_vm1, %v5662_v8  ;;  %v873_v17 = vrot.slane %v872_v9, 4  ;;  %v890_v22 = vshrl.u32 %v544_v6, 16  ;;  %v893_v23 = vshll.u32 %v544_v6, 16  ;;  %6387 = vmatprep.mubr.msk.bf16.mxu1 %vm256_vm1, %v5613_v13  ;;  %v899_v19 = vshll.u32 %v545_v11, 16  ;;  %v5747_v6 = vld [vmem:[%s6882_s3 + $0xc] sm:$0xf] }
  0x73   : > { %v883_v26 = vrot.slane %v882_v14, 4  ;;  %v1488_v27 = vsel %vm6941_vm6, %v5646_v10, %v1487_v16  ;;  %v1489_v28 = vrot.slane %v1487_v16, 4  ;;  %v903_v33 = vshrl.u32 %v545_v11, 16  ;;  %v5748_v11 = vld [vmem:[%s6882_s3 + $0x10] sm:$0xf] }
  0x74   : > { %v878_v30 = vsel %vm6955_vm7, %v873_v17, %v877_v3  ;;  %v892_v31 = vrot.slane %v890_v22, 4  ;;  %v895_v32 = vrot.slane %v893_v23, 5  ;;  %v901_v37 = vrot.slane %v899_v19, 5  ;;  %v5749_v16 = vld [vmem:[%s6882_s3 + $0x14] sm:$0x1] }
  0x75   : > { %v888_v35 = vsel %vm6955_vm7, %v883_v26, %v887_v15  ;;  %v1491_v36 = vsel %vm6941_vm6, %v1489_v28, %v1490_v20  ;;  %v909_v18 = vshll.u32 %v546_v12, 16  ;;  %v905_v41 = vrot.slane %v903_v33, 4  ;;  %v5751_v19 = vld [vmem:[%s6882_s3 + $0x1c] sm:$0xf] }
  0x76   : > { %v5614_v38 = vcombine.low %v878_v30, %v888_v35  ;;  %v5663_v39 = vcombine.low %v1488_v27, %v1491_v36  ;;  %v896_v40 = vor.u32 %v895_v32, %v892_v31  ;;  %v5647_v46 = vrot.slane %v1337_v25, 9  ;;  %v5750_v25 = vld [vmem:[%s6882_s3 + $0x18] sm:$0xf]  ;;  %v6703_v30 = vld [vmem:[%s6882_s3 + $0xc] sm:$0xff]  }
  0x77   : > { %v911_v45 = vrot.slane %v909_v18, 5  ;;  %v1494_v47 = vrot.slane %v1338_v21, 5  ;;  %v1497_v48 = vrot.slane %v1339_v29, 5  ;;  %v906_v51 = vor.u32 %v905_v41, %v901_v37  ;;  %v5752_v18 = vld [vmem:[%s6882_s3 + $0x20] sm:$0x1] }
  0x78   : > { %6388 = vmatmul.mubr.msk.bf16.gmra.mxu1 %vm256_vm1, %v5614_v38  ;;  %6422 = vmatmul.mubr.msk.bf16.gmra.mxu0 %vm256_vm1, %v5663_v39  ;;  %v897_v50 = vrot.slane %v896_v40, 4  ;;  %v914_v52 = vshrl.u32 %v547_v34, 16  ;;  %v917_v53 = vshll.u32 %v547_v34, 16  ;;  %v923_v59 = vshll.u32 %v548_v43, 16 }
  0x79   : > { %v1495_v57 = vsel %vm6941_vm6, %v5647_v46, %v1494_v47  ;;  %v1496_v58 = vrot.slane %v1494_v47, 4  ;;  %v927_v60 = vshrl.u32 %v548_v43, 16  ;;  %v907_v62 = vrot.slane %v906_v51, 4  ;;  %v5753_v43 = vld [vmem:[%s6882_s3 + $0x24] sm:$0xf] }
  0x7a   : > { %v902_v61 = vsel %vm6955_vm7, %v897_v50, %v901_v37  ;;  %v916_v63 = vrot.slane %v914_v52, 4  ;;  %v919_v0 = vrot.slane %v917_v53, 5  ;;  %v925_v3 = vrot.slane %v923_v59, 5  ;;  %v5755_v59 = vld [vmem:[%s6882_s3 + $0x2c] sm:$0x1] }
  0x7b   : > { %v1498_v2 = vsel %vm6941_vm6, %v1496_v58, %v1497_v48  ;;  %v929_v4 = vrot.slane %v927_v60, 4  ;;  %v933_v5 = vshll.u32 %v549_v44, 16  ;;  %v912_v7 = vsel %vm6955_vm7, %v907_v62, %v911_v45  ;;  %v5754_v44 = vld [vmem:[%s6882_s3 + $0x28] sm:$0xf] }
  0x7c   : > { %v5664_v8 = vcombine.low %v1495_v57, %v1498_v2  ;;  %v920_v9 = vor.u32 %v919_v0, %v916_v63  ;;  %v5648_v10 = vrot.slane %v1340_v49, 9  ;;  %v5615_v12 = vcombine.low %v902_v61, %v912_v7  ;;  %v6704_v0 = vld [vmem:[%s6882_s3 + $0x18] sm:$0xff]  }
  0x7d   : > { %v930_v13 = vor.u32 %v929_v4, %v925_v3  ;;  %v935_v14 = vrot.slane %v933_v5, 5  ;;  %v1501_v15 = vrot.slane %v1341_v54, 5  ;;  %v1504_v20 = vrot.slane %v1342_v1, 5  ;;  %v5756_v5 = vld [vmem:[%s6882_s3 + $0x30] sm:$0xf] }
  0x7e   : > { %6425 = vmatprep.mubr.msk.bf16.mxu0 %vm256_vm1, %v5664_v8  ;;  %v921_v17 = vrot.slane %v920_v9, 4  ;;  %v2336_v22 = vshrl.u32 %v5747_v6, 16  ;;  %v2339_v23 = vshll.u32 %v5747_v6, 16  ;;  %6391 = vmatprep.mubr.msk.bf16.mxu1 %vm256_vm1, %v5615_v12  ;;  %v2345_v28 = vshll.u32 %v5748_v11, 16 }
  0x7f   : > { %v931_v21 = vrot.slane %v930_v13, 4  ;;  %v1502_v26 = vsel %vm6941_vm6, %v5648_v10, %v1501_v15  ;;  %v1503_v27 = vrot.slane %v1501_v15, 4  ;;  %v2349_v33 = vshrl.u32 %v5748_v11, 16  ;;  %v6705_v11 = vld [vmem:[%s6882_s3 + $0x24] sm:$0xff]  }
  0x80   : > { %v926_v29 = vsel %vm6955_vm7, %v921_v17, %v925_v3  ;;  %v2338_v31 = vrot.slane %v2336_v22, 4  ;;  %v2341_v32 = vrot.slane %v2339_v23, 5  ;;  %v2347_v36 = vrot.slane %v2345_v28, 5 }
  0x81   : > { %v936_v34 = vsel %vm6955_vm7, %v931_v21, %v935_v14  ;;  %v1505_v35 = vsel %vm6941_vm6, %v1503_v27, %v1504_v20  ;;  %v2355_v37 = vshll.u32 %v5749_v16, 16  ;;  %v2351_v41 = vrot.slane %v2349_v33, 4  ;;  %v5757_v14 = vld [vmem:[%s6882_s3 + $0x34] sm:$0xf] }
  0x82   : > { %v5616_v38 = vcombine.low %v926_v29, %v936_v34  ;;  %v5665_v39 = vcombine.low %v1502_v26, %v1505_v35  ;;  %v2342_v40 = vor.u32 %v2341_v32, %v2338_v31  ;;  %v2360_v46 = vshrl.u32 %v5750_v25, 16  ;;  %v5760_v35 = vld [vmem:[%s6882_s3 + $0x40] sm:$0xf] }
  0x83   : > { %v2357_v45 = vrot.slane %v2355_v37, 5  ;;  %v2363_v47 = vshll.u32 %v5750_v25, 16  ;;  %v2369_v48 = vshll.u32 %v5751_v19, 16  ;;  %v2352_v50 = vor.u32 %v2351_v41, %v2347_v36  ;;  %v5758_v25 = vld [vmem:[%s6882_s3 + $0x38] sm:$0x1] }
  0x84   : > { %6392 = vmatmul.mubr.msk.bf16.gmra.mxu1 %vm256_vm1, %v5616_v38  ;;  %6426 = vmatmul.mubr.msk.bf16.gmra.mxu0 %vm256_vm1, %v5665_v39  ;;  %v2343_v49 = vrot.slane %v2342_v40, 4  ;;  %v2373_v51 = vshrl.u32 %v5751_v19, 16  ;;  %v2379_v52 = vshll.u32 %v5752_v18, 16  ;;  %v2362_v53 = vrot.slane %v2360_v46, 4  ;;  %v5761_v39 = vld [vmem:[%s6882_s3 + $0x44] sm:$0x1] }
  0x85   : > { %6431 = vmatprep.mubr.msk.bf16.mxu1 %vm256_vm1, %v6703_v30  ;;  %v2365_v54 = vrot.slane %v2363_v47, 5  ;;  %v2371_v57 = vrot.slane %v2369_v48, 5  ;;  %v3807_v58 = vsel %vm305_vm0, %v7163_v56, 0  ;;  %v2353_v61 = vrot.slane %v2352_v50, 4  ;;  %v5759_v30 = vld [vmem:[%s6882_s3 + $0x3c] sm:$0xf] }
  0x86   : > { %v2348_v60 = vsel %vm6955_vm7, %v2343_v49, %v2347_v36  ;;  %v2375_v62 = vrot.slane %v2373_v51, 4  ;;  %v2381_v63 = vrot.slane %v2379_v52, 5  ;;  %v2384_v2 = vshrl.u32 %v5753_v43, 16  ;;  %v5762_v49 = vld [vmem:[%s6882_s3 + $0x48] sm:$0xf]  ;;  %v6707_v52 = vld [vmem:[%s6882_s3 + $0x3c] sm:$0xff]  }
  0x87   : > { %v2366_v1 = vor.u32 %v2365_v54, %v2362_v53  ;;  %v2387_v3 = vshll.u32 %v5753_v43, 16  ;;  %v2393_v4 = vshll.u32 %v5754_v44, 16  ;;  %v2358_v6 = vsel %vm6955_vm7, %v2353_v61, %v2357_v45  ;;  %v6706_v45 = vld [vmem:[%s6882_s3 + $0x30] sm:$0xff]  }
  0x88   : > { %v2376_v7 = vor.u32 %v2375_v62, %v2371_v57  ;;  %v2397_v56 = vshrl.u32 %v5754_v44, 16  ;;  %v2403_v8 = vshll.u32 %v5755_v59, 16  ;;  %v5796_v9 = vcombine.low %v2348_v60, %v2358_v6 }
  0x89   : > { %v2367_v10 = vrot.slane %v2366_v1, 4  ;;  %v2386_v12 = vrot.slane %v2384_v2, 4  ;;  %v2389_v13 = vrot.slane %v2387_v3, 5  ;;  %v2395_v16 = vrot.slane %v2393_v4, 5 }
  0x8a   : > { %v2377_v15 = vrot.slane %v2376_v7, 4  ;;  %v2399_v17 = vrot.slane %v2397_v56, 4  ;;  %v2405_v20 = vrot.slane %v2403_v8, 5  ;;  %6465 = vmatprep.mubr.msk.bf16.mxu0 %vm256_vm1, %v5796_v9  ;;  %v2408_v21 = vshrl.u32 %v5756_v5, 16  ;;  %v5765_v7 = vld [vmem:[%s6882_s3 + $0x54] sm:$0xf] }
  0x8b   : > { %v2372_v22 = vsel %vm6955_vm7, %v2367_v10, %v2371_v57  ;;  %v2390_v23 = vor.u32 %v2389_v13, %v2386_v12  ;;  %v2411_v26 = vshll.u32 %v5756_v5, 16  ;;  %v2417_v19 = vshll.u32 %v5757_v14, 16  ;;  %v5763_v57 = vld [vmem:[%s6882_s3 + $0x4c] sm:$0xf] }
  0x8c   : > { %6432 = vmatmul.mubr.msk.bf16.vlgmr.msra.gmra.mxu1 %vm256_vm1, %v6704_v0  ;;  %v2382_v27 = vsel %vm6955_vm7, %v2377_v15, %v2381_v63  ;;  %v2400_v28 = vor.u32 %v2399_v17, %v2395_v16  ;;  %v2421_v29 = vshrl.u32 %v5757_v14, 16  ;;  %v2410_v33 = vrot.slane %v2408_v21, 4  ;;  %v5764_v0 = vld [vmem:[%s6882_s3 + $0x50] sm:$0x1]  ;;  %v6708_v13 = vld [vmem:[%s6882_s3 + $0x48] sm:$0xff]  }
  0x8d   : > { %v5797_v31 = vcombine.low %v2372_v22, %v2382_v27  ;;  %6498 = vmatpush3.bf16.msra.mxu1 %v6930_v24  ;;  %6435 = vmatprep.mubr.msk.bf16.mxu1 %vm256_vm1, %v6705_v11  ;;  %v2391_v32 = vrot.slane %v2390_v23, 4  ;;  %v2413_v34 = vrot.slane %v2411_v26, 5  ;;  %v2419_v37 = vrot.slane %v2417_v19, 5  ;;  %v5766_v11 = vld [vmem:[%s6882_s3 + $0x58] sm:$0xf] }
  0x8e   : > { %v2401_v36 = vrot.slane %v2400_v28, 4  ;;  %v2423_v18 = vrot.slane %v2421_v29, 4  ;;  %v2427_v38 = vshll.u32 %v5758_v25, 16  ;;  %v2432_v41 = vshrl.u32 %v5759_v30, 16  ;;  %v6709_v22 = vld [vmem:[%s6882_s3 + $0x54] sm:$0xff]  }
  0x8f   : > { %6466 = vmatmul.mubr.msk.bf16.vlgmr.msra.gmra.mxu0 %vm256_vm1, %v5797_v31  ;;  %v2396_v40 = vsel %vm6955_vm7, %v2391_v32, %v2395_v16  ;;  %v2414_v24 = vor.u32 %v2413_v34, %v2410_v33  ;;  %v2435_v43 = vshll.u32 %v5759_v30, 16  ;;  %v2441_v48 = vshll.u32 %v5760_v35, 16  ;;  %v5767_v23 = vld [vmem:[%s6882_s3 + $0x5c] sm:$0x1]  ;;  %v5768_v29 = vld [vmem:[%s6882_s3 + $0x60] sm:$0xf] }
  0x90   : > { %6532 = vmatpush3.bf16.msra.mxu0 %v3807_v58  ;;  %v2406_v44 = vsel %vm6955_vm7, %v2401_v36, %v2405_v20  ;;  %v2424_v46 = vor.u32 %v2423_v18, %v2419_v37  ;;  %v2429_v47 = vrot.slane %v2427_v38, 5  ;;  %v2434_v53 = vrot.slane %v2432_v41, 4  ;;  %v5769_v34 = vld [vmem:[%s6882_s3 + $0x64] sm:$0xf]  ;;  %v5770_v41 = vld [vmem:[%s6882_s3 + $0x68] sm:$0x1] }
  0x91   : > { %v5798_v50 = vcombine.low %v2396_v40, %v2406_v44  ;;  %v2415_v51 = vrot.slane %v2414_v24, 4  ;;  %v2437_v54 = vrot.slane %v2435_v43, 5  ;;  %v2443_v60 = vrot.slane %v2441_v48, 5  ;;  %v5771_v43 = vld [vmem:[%s6882_s3 + $0x6c] sm:$0xf] }
  0x92   : > { %v2425_v59 = vrot.slane %v2424_v46, 4  ;;  %v2445_v61 = vshrl.u32 %v5760_v35, 16  ;;  %v2451_v58 = vshll.u32 %v5761_v39, 16  ;;  %v2456_v1 = vshrl.u32 %v5762_v49, 16  ;;  %v5772_v48 = vld [vmem:[%s6882_s3 + $0x70] sm:$0xf] }
  0x93   : > { %6469 = vmatprep.mubr.msk.bf16.mxu0 %vm256_vm1, %v5798_v50  ;;  %v2420_v62 = vsel %vm6955_vm7, %v2415_v51, %v2419_v37  ;;  %v2438_v63 = vor.u32 %v2437_v54, %v2434_v53  ;;  %v2459_v2 = vshll.u32 %v5762_v49, 16  ;;  %v2465_v6 = vshll.u32 %v5763_v57, 16 }
  0x94   : > { %6436 = vmatmul.mubr.msk.bf16.gmra.mxu1 %vm256_vm1, %v6706_v45  ;;  %v2430_v3 = vsel %vm6955_vm7, %v2425_v59, %v2429_v47  ;;  %v2447_v4 = vrot.slane %v2445_v61, 4  ;;  %v2453_v5 = vrot.slane %v2451_v58, 5  ;;  %v2458_v9 = vrot.slane %v2456_v1, 4 }
  0x95   : > { %v5799_v56 = vcombine.low %v2420_v62, %v2430_v3  ;;  %6439 = vmatprep.mubr.msk.bf16.mxu1 %vm256_vm1, %v6707_v52  ;;  %v2439_v8 = vrot.slane %v2438_v63, 4  ;;  %v2461_v10 = vrot.slane %v2459_v2, 5  ;;  %v2467_v14 = vrot.slane %v2465_v6, 5  ;;  %v6710_v63 = vld [vmem:[%s6882_s3 + $0x60] sm:$0xff]   ;;  %v5773_v3 = vld [vmem:[%s6882_s3 + $0x74] sm:$0x1] }
  0x96   : > { %v2448_v12 = vor.u32 %v2447_v4, %v2443_v60  ;;  %v2469_v15 = vshrl.u32 %v5763_v57, 16  ;;  %v2475_v16 = vshll.u32 %v5764_v0, 16  ;;  %v2480_v25 = vshrl.u32 %v5765_v7, 16  ;;  %v6711_v6 = vld [vmem:[%s6882_s3 + $0x6c] sm:$0xff]  }
  0x97   : > { %6470 = vmatmul.mubr.msk.bf16.gmra.mxu0 %vm256_vm1, %v5799_v56  ;;  %v2444_v17 = vsel %vm6955_vm7, %v2439_v8, %v2443_v60  ;;  %v2462_v20 = vor.u32 %v2461_v10, %v2458_v9  ;;  %v2483_v21 = vshll.u32 %v5765_v7, 16  ;;  %v2489_v19 = vshll.u32 %v5766_v11, 16  ;;  %v5774_v9 = vld [vmem:[%s6882_s3 + $0x78] sm:$0xf] }
  0x98   : > { %v2449_v26 = vrot.slane %v2448_v12, 4  ;;  %v2471_v27 = vrot.slane %v2469_v15, 4  ;;  %v2477_v28 = vrot.slane %v2475_v16, 5  ;;  %v2482_v31 = vrot.slane %v2480_v25, 4 }
  0x99   : > { %v2463_v30 = vrot.slane %v2462_v20, 4  ;;  %v2485_v32 = vrot.slane %v2483_v21, 5  ;;  %v2493_v33 = vshrl.u32 %v5766_v11, 16  ;;  %v2491_v37 = vrot.slane %v2489_v19, 5 }
  0x9a   : > { %v2454_v35 = vsel %vm6955_vm7, %v2449_v26, %v2453_v5  ;;  %v2472_v36 = vor.u32 %v2471_v27, %v2467_v14  ;;  %v2499_v18 = vshll.u32 %v5767_v23, 16  ;;  %v2504_v46 = vshrl.u32 %v5768_v29, 16 }
  0x9b   : > { %v5800_v38 = vcombine.low %v2444_v17, %v2454_v35  ;;  %v2468_v39 = vsel %vm6955_vm7, %v2463_v30, %v2467_v14  ;;  %v2486_v40 = vor.u32 %v2485_v32, %v2482_v31  ;;  %v2495_v24 = vrot.slane %v2493_v33, 4  ;;  %v5775_v14 = vld [vmem:[%s6882_s3 + $0x7c] sm:$0xf]  ;;  %v5777_v30 = vld [vmem:[%s6882_s3 + $0x84] sm:$0xf] }
  0x9c   : > { %6440 = vmatmul.mubr.msk.bf16.gmra.mxu1 %vm256_vm1, %v6708_v13  ;;  %v2473_v44 = vrot.slane %v2472_v36, 4  ;;  %v2501_v45 = vrot.slane %v2499_v18, 5  ;;  %v2507_v47 = vshll.u32 %v5768_v29, 16  ;;  %v2513_v51 = vshll.u32 %v5769_v34, 16  ;;  %v7312_v31 = vld [vmem:[%s8581_s1 + $0xe] sm:$0x3] }
  0x9d   : > { %6473 = vmatprep.mubr.msk.bf16.mxu0 %vm256_vm1, %v5800_v38  ;;  %6443 = vmatprep.mubr.msk.bf16.mxu1 %vm256_vm1, %v6709_v22  ;;  %v2487_v49 = vrot.slane %v2486_v40, 4  ;;  %v2496_v50 = vor.u32 %v2495_v24, %v2491_v37  ;;  %v2517_v52 = vshrl.u32 %v5769_v34, 16  ;;  %v2506_v54 = vrot.slane %v2504_v46, 4  ;;  %v5776_v22 = vld [vmem:[%s6882_s3 + $0x80] sm:$0x1]  ;;  %v6713_v46 = vld [vmem:[%s6882_s3 + $0x84] sm:$0xff]  }
  0x9e   : > { %v2478_v53 = vsel %vm6955_vm7, %v2473_v44, %v2477_v28  ;;  %v2509_v57 = vrot.slane %v2507_v47, 5  ;;  %v2523_v59 = vshll.u32 %v5770_v41, 16  ;;  %v2515_v62 = vrot.slane %v2513_v51, 5  ;;  %v5778_v36 = vld [vmem:[%s6882_s3 + $0x88] sm:$0xf]  ;;  %6643 = vmatprep.subr.msk.bf16.mxu1 %vm305_vm0, %v7312_v31 }
  0x9f   : > { %v5801_v60 = vcombine.low %v2468_v39, %v2478_v53  ;;  %v2492_v61 = vsel %vm6955_vm7, %v2487_v49, %v2491_v37  ;;  %v2497_v58 = vrot.slane %v2496_v50, 4  ;;  %v2519_v1 = vrot.slane %v2517_v52, 4  ;;  %v6712_v39 = vld [vmem:[%s6882_s3 + $0x78] sm:$0xff]   ;;  %v5779_v24 = vld [vmem:[%s6882_s3 + $0x8c] sm:$0x1] }
  0xa0   : > { %v2510_v0 = vor.u32 %v2509_v57, %v2506_v54  ;;  %v2525_v2 = vrot.slane %v2523_v59, 5  ;;  %v2528_v4 = vshrl.u32 %v5771_v43, 16  ;;  %v2531_v7 = vshll.u32 %v5771_v43, 16  ;;  %v5780_v41 = vld [vmem:[%s6882_s3 + $0x90] sm:$0xf] }
  0xa1   : > { %6474 = vmatmul.mubr.msk.bf16.gmra.mxu0 %vm256_vm1, %v5801_v60  ;;  %v2502_v5 = vsel %vm6955_vm7, %v2497_v58, %v2501_v45  ;;  %v2537_v56 = vshll.u32 %v5772_v48, 16  ;;  %v2541_v8 = vshrl.u32 %v5772_v48, 16  ;;  %v2520_v12 = vor.u32 %v2519_v1, %v2515_v62  ;;  %v7331_v52 = vld [vmem:[%s8581_s1 + $0x10] sm:$0x3]  ;;  %v5781_v60 = vld [vmem:[%s6882_s3 + $0x94] sm:$0xf] }
  0xa2   : > { %v5802_v10 = vcombine.low %v2492_v61, %v2502_v5  ;;  %v2511_v11 = vrot.slane %v2510_v0, 4  ;;  %v2530_v13 = vrot.slane %v2528_v4, 4  ;;  %v2533_v15 = vrot.slane %v2531_v7, 5  ;;  %6644 = vmatprep.subr.msk.bf16.mxu0 %vm305_vm0, %v7331_v52  ;;  %v5782_v0 = vld [vmem:[%s6882_s3 + $0x98] sm:$0x1] }
  0xa3   : > { %v2539_v16 = vrot.slane %v2537_v56, 5  ;;  %v2543_v17 = vrot.slane %v2541_v8, 4  ;;  %v2547_v20 = vshll.u32 %v5773_v3, 16  ;;  %v2521_v25 = vrot.slane %v2520_v12, 4  ;;  %v5783_v1 = vld [vmem:[%s6882_s3 + $0x9c] sm:$0xf] }
  0xa4   : > { %6477 = vmatprep.mubr.msk.bf16.mxu0 %vm256_vm1, %v5802_v10  ;;  %6444 = vmatmul.mubr.msk.bf16.gmra.mxu1 %vm256_vm1, %v6710_v63  ;;  %v2516_v23 = vsel %vm6955_vm7, %v2511_v11, %v2515_v62  ;;  %v2552_v21 = vshrl.u32 %v5774_v9, 16  ;;  %v2555_v26 = vshll.u32 %v5774_v9, 16  ;;  %v2534_v27 = vor.u32 %v2533_v15, %v2530_v13 }
  0xa5   : > { %6447 = vmatprep.mubr.msk.bf16.mxu1 %vm256_vm1, %v6711_v6  ;;  %v2544_v28 = vor.u32 %v2543_v17, %v2539_v16  ;;  %v2549_v19 = vrot.slane %v2547_v20, 5  ;;  %v2561_v29 = vshll.u32 %v5775_v14, 16  ;;  %v2526_v32 = vsel %vm6955_vm7, %v2521_v25, %v2525_v2  ;;  %v6715_v20 = vld [vmem:[%s6882_s3 + $0x9c] sm:$0xff]  }
  0xa6   : > { %v2554_v33 = vrot.slane %v2552_v21, 4  ;;  %v2557_v34 = vrot.slane %v2555_v26, 5  ;;  %v2565_v35 = vshrl.u32 %v5775_v14, 16  ;;  %v5803_v37 = vcombine.low %v2516_v23, %v2526_v32 }
  0xa7   : > { %v2535_v18 = vrot.slane %v2534_v27, 4  ;;  %v2545_v38 = vrot.slane %v2544_v28, 4  ;;  %v2563_v40 = vrot.slane %v2561_v29, 5  ;;  %v2571_v45 = vshll.u32 %v5776_v22, 16  ;;  %v5784_v22 = vld [vmem:[%s6882_s3 + $0xa0] sm:$0xf] }
  0xa8   : > { %v2558_v43 = vor.u32 %v2557_v34, %v2554_v33  ;;  %v2567_v44 = vrot.slane %v2565_v35, 4  ;;  %v2576_v47 = vshrl.u32 %v5777_v30, 16  ;;  %v2579_v50 = vshll.u32 %v5777_v30, 16  ;;  %v5785_v29 = vld [vmem:[%s6882_s3 + $0xa4] sm:$0x1] }
  0xa9   : > { %6478 = vmatmul.mubr.msk.bf16.gmra.mxu0 %vm256_vm1, %v5803_v37  ;;  %v2540_v48 = vsel %vm6955_vm7, %v2535_v18, %v2539_v16  ;;  %v2550_v49 = vsel %vm6955_vm7, %v2545_v38, %v2549_v19  ;;  %v2585_v51 = vshll.u32 %v5778_v36, 16  ;;  %v2573_v59 = vrot.slane %v2571_v45, 5  ;;  %v6714_v16 = vld [vmem:[%s6882_s3 + $0x90] sm:$0xff]  }
  0xaa   : > { %v5804_v53 = vcombine.low %v2540_v48, %v2550_v49  ;;  %v2559_v54 = vrot.slane %v2558_v43, 4  ;;  %v2568_v57 = vor.u32 %v2567_v44, %v2563_v40  ;;  %v2578_v61 = vrot.slane %v2576_v47, 4  ;;  %v5788_v48 = vld [vmem:[%s6882_s3 + $0xb0] sm:$0x1] }
  0xab   : > { %v2581_v58 = vrot.slane %v2579_v50, 5  ;;  %v2587_v62 = vrot.slane %v2585_v51, 5  ;;  %v2589_v63 = vshrl.u32 %v5778_v36, 16  ;;  %v2595_v4 = vshll.u32 %v5779_v24, 16  ;;  %v5786_v36 = vld [vmem:[%s6882_s3 + $0xa8] sm:$0xf] }
  0xac   : > { %6481 = vmatprep.mubr.msk.bf16.mxu0 %vm256_vm1, %v5804_v53  ;;  %6448 = vmatmul.mubr.msk.bf16.gmra.mxu1 %vm256_vm1, %v6712_v39  ;;  %v2564_v2 = vsel %vm6955_vm7, %v2559_v54, %v2563_v40  ;;  %v2569_v3 = vrot.slane %v2568_v57, 4  ;;  %v2600_v5 = vshrl.u32 %v5780_v41, 16  ;;  %v2603_v56 = vshll.u32 %v5780_v41, 16  ;;  %v5787_v40 = vld [vmem:[%s6882_s3 + $0xac] sm:$0xf] }
  0xad   : > { %6451 = vmatprep.mubr.msk.bf16.mxu1 %vm256_vm1, %v6713_v46  ;;  %v2582_v6 = vor.u32 %v2581_v58, %v2578_v61  ;;  %v2591_v7 = vrot.slane %v2589_v63, 4  ;;  %v2609_v8 = vshll.u32 %v5781_v60, 16  ;;  %v2597_v10 = vrot.slane %v2595_v4, 5  ;;  %v6716_v53 = vld [vmem:[%s6882_s3 + $0xa8] sm:$0xff]   ;;  %v5790_v63 = vld [vmem:[%s6882_s3 + $0xb8] sm:$0xf] }
  0xae   : > { %v2574_v9 = vsel %vm6955_vm7, %v2569_v3, %v2573_v59  ;;  %v2602_v11 = vrot.slane %v2600_v5, 4  ;;  %v2613_v12 = vshrl.u32 %v5781_v60, 16  ;;  %v2605_v17 = vrot.slane %v2603_v56, 5  ;;  %v5789_v59 = vld [vmem:[%s6882_s3 + $0xb4] sm:$0xf] }
  0xaf   : > { %v5805_v13 = vcombine.low %v2564_v2, %v2574_v9  ;;  %v2583_v14 = vrot.slane %v2582_v6, 4  ;;  %v2592_v15 = vor.u32 %v2591_v7, %v2587_v62  ;;  %v2611_v23 = vrot.slane %v2609_v8, 5  ;;  %v6717_v6 = vld [vmem:[%s6882_s3 + $0xb4] sm:$0xff]   ;;  %v5791_v7 = vld [vmem:[%s6882_s3 + $0xbc] sm:$0x1] }
  0xb0   : > { %v2615_v25 = vrot.slane %v2613_v12, 4  ;;  %v2619_v21 = vshll.u32 %v5782_v0, 16  ;;  %v2624_v26 = vshrl.u32 %v5783_v1, 16  ;;  %v2606_v19 = vor.u32 %v2605_v17, %v2602_v11 }
  0xb1   : > { %6482 = vmatmul.mubr.msk.bf16.gmra.mxu0 %vm256_vm1, %v5805_v13  ;;  %v2588_v27 = vsel %vm6955_vm7, %v2583_v14, %v2587_v62  ;;  %v2593_v28 = vrot.slane %v2592_v15, 4  ;;  %v2627_v30 = vshll.u32 %v5783_v1, 16  ;;  %v2633_v35 = vshll.u32 %v5784_v22, 16  ;;  %v5792_v13 = vld [vmem:[%s6882_s3 + $0xc0] sm:$0xf] }
  0xb2   : > { %v2616_v32 = vor.u32 %v2615_v25, %v2611_v23  ;;  %v2621_v33 = vrot.slane %v2619_v21, 5  ;;  %v2626_v34 = vrot.slane %v2624_v26, 4  ;;  %v2607_v18 = vrot.slane %v2606_v19, 4  ;;  %v5794_v26 = vld [vmem:[%s6882_s3 + $0xc8] sm:$0x1] }
  0xb3   : > { %v2598_v37 = vsel %vm6955_vm7, %v2593_v28, %v2597_v10  ;;  %v2629_v38 = vrot.slane %v2627_v30, 5  ;;  %v2637_v39 = vshrl.u32 %v5784_v22, 16  ;;  %v2635_v43 = vrot.slane %v2633_v35, 5  ;;  %v5828_v30 = vld [vmem:[%s6882_s3 + $0xc] sm:$0xe] }
  0xb4   : > { %v5806_v24 = vcombine.low %v2588_v27, %v2598_v37  ;;  %6452 = vmatmul.mubr.msk.bf16.gmra.mxu1 %vm256_vm1, %v6714_v16  ;;  %v2617_v41 = vrot.slane %v2616_v32, 4  ;;  %v2643_v44 = vshll.u32 %v5785_v29, 16  ;;  %v2612_v45 = vsel %vm6955_vm7, %v2607_v18, %v2611_v23  ;;  %v5829_v32 = vld [vmem:[%s6882_s3 + $0x10] sm:$0xf]  ;;  %v5830_v37 = vld [vmem:[%s6882_s3 + $0x14] sm:$0x1] }
  0xb5   : > { %6455 = vmatprep.mubr.msk.bf16.mxu1 %vm256_vm1, %v6715_v20  ;;  %v2630_v46 = vor.u32 %v2629_v38, %v2626_v34  ;;  %v2639_v47 = vrot.slane %v2637_v39, 4  ;;  %v2648_v49 = vshrl.u32 %v5786_v36, 16  ;;  %v2651_v54 = vshll.u32 %v5786_v36, 16  ;;  %v5793_v20 = vld [vmem:[%s6882_s3 + $0xc4] sm:$0xf] }
  0xb6   : > { %6485 = vmatprep.mubr.msk.bf16.mxu0 %vm256_vm1, %v5806_v24  ;;  %v2622_v50 = vsel %vm6955_vm7, %v2617_v41, %v2621_v33  ;;  %v2645_v51 = vrot.slane %v2643_v44, 5  ;;  %v2657_v57 = vshll.u32 %v5787_v40, 16  ;;  %v2661_v2 = vshrl.u32 %v5787_v40, 16  ;;  %v5831_v24 = vld [vmem:[%s6882_s3 + $0x18] sm:$0xe] }
  0xb7   : > { %v5807_v60 = vcombine.low %v2612_v45, %v2622_v50  ;;  %v2631_v61 = vrot.slane %v2630_v46, 4  ;;  %v2640_v58 = vor.u32 %v2639_v47, %v2635_v43  ;;  %v2650_v62 = vrot.slane %v2648_v49, 4  ;;  %v5832_v47 = vld [vmem:[%s6882_s3 + $0x1c] sm:$0xf] }
  0xb8   : > { %v2653_v0 = vrot.slane %v2651_v54, 5  ;;  %v2659_v1 = vrot.slane %v2657_v57, 5  ;;  %v2667_v3 = vshll.u32 %v5788_v48, 16  ;;  %v2672_v56 = vshrl.u32 %v5789_v59, 16  ;;  %v5833_v48 = vld [vmem:[%s6882_s3 + $0x20] sm:$0x1] }
  0xb9   : > { %6486 = vmatmul.mubr.msk.bf16.gmra.mxu0 %vm256_vm1, %v5807_v60  ;;  %v2636_v4 = vsel %vm6955_vm7, %v2631_v61, %v2635_v43  ;;  %v2641_v5 = vrot.slane %v2640_v58, 4  ;;  %v2675_v8 = vshll.u32 %v5789_v59, 16  ;;  %v2663_v10 = vrot.slane %v2661_v2, 4  ;;  %v6718_v43 = vld [vmem:[%s6882_s3 + $0xc0] sm:$0xff]   ;;  %v5835_v58 = vld [vmem:[%s6882_s3 + $0x28] sm:$0xf] }
  0xba   : > { %v2654_v9 = vor.u32 %v2653_v0, %v2650_v62  ;;  %v2669_v11 = vrot.slane %v2667_v3, 5  ;;  %v2681_v12 = vshll.u32 %v5790_v63, 16  ;;  %v2674_v15 = vrot.slane %v2672_v56, 4  ;;  %v5834_v54 = vld [vmem:[%s6882_s3 + $0x24] sm:$0xe] }
  0xbb   : > { %v2646_v14 = vsel %vm6955_vm7, %v2641_v5, %v2645_v51  ;;  %v2677_v16 = vrot.slane %v2675_v8, 5  ;;  %v2685_v17 = vshrl.u32 %v5790_v63, 16  ;;  %v2664_v25 = vor.u32 %v2663_v10, %v2659_v1  ;;  %v5836_v2 = vld [vmem:[%s6882_s3 + $0x2c] sm:$0x1]  ;;  %v5837_v3 = vld [vmem:[%s6882_s3 + $0x30] sm:$0xe] }
  0xbc   : > { %v5808_v22 = vcombine.low %v2636_v4, %v2646_v14  ;;  %6456 = vmatmul.mubr.msk.bf16.gmra.mxu1 %vm256_vm1, %v6716_v53  ;;  %v2655_v23 = vrot.slane %v2654_v9, 4  ;;  %v2683_v21 = vrot.slane %v2681_v12, 5  ;;  %v2691_v19 = vshll.u32 %v5791_v7, 16  ;;  %v5839_v12 = vld [vmem:[%s6882_s3 + $0x38] sm:$0x1] }
  0xbd   : > { %6459 = vmatprep.mubr.msk.bf16.mxu1 %vm256_vm1, %v6717_v6  ;;  %v2678_v27 = vor.u32 %v2677_v16, %v2674_v15  ;;  %v2687_v28 = vrot.slane %v2685_v17, 4  ;;  %v2696_v29 = vshrl.u32 %v5792_v13, 16  ;;  %v2665_v34 = vrot.slane %v2664_v25, 4  ;;  %v6719_v16 = vld [vmem:[%s6882_s3 + $0x18] sm:$0xff]  }
  0xbe   : > { %6489 = vmatprep.mubr.msk.bf16.mxu0 %vm256_vm1, %v5808_v22  ;;  %v2660_v33 = vsel %vm6955_vm7, %v2655_v23, %v2659_v1  ;;  %v2699_v35 = vshll.u32 %v5792_v13, 16  ;;  %v2705_v36 = vshll.u32 %v5793_v20, 16  ;;  %v2693_v39 = vrot.slane %v2691_v19, 5  ;;  %v5840_v13 = vld [vmem:[%s6882_s3 + $0x3c] sm:$0xe] }
  0xbf   : > { %v2679_v18 = vrot.slane %v2678_v27, 4  ;;  %v2688_v38 = vor.u32 %v2687_v28, %v2683_v21  ;;  %v2698_v40 = vrot.slane %v2696_v29, 4  ;;  %v2670_v41 = vsel %vm6955_vm7, %v2665_v34, %v2669_v11  ;;  %v5838_v11 = vld [vmem:[%s6882_s3 + $0x34] sm:$0xf]  ;;  %v5841_v22 = vld [vmem:[%s6882_s3 + $0x40] sm:$0xf] }
  0xc0   : > { %v2701_v44 = vrot.slane %v2699_v35, 5  ;;  %v2707_v45 = vrot.slane %v2705_v36, 5  ;;  %v2709_v46 = vshrl.u32 %v5793_v20, 16  ;;  %v5809_v49 = vcombine.low %v2660_v33, %v2670_v41  ;;  %v5842_v23 = vld [vmem:[%s6882_s3 + $0x44] sm:$0x1] }
  0xc1   : > { %v2684_v50 = vsel %vm6955_vm7, %v2679_v18, %v2683_v21  ;;  %v2689_v51 = vrot.slane %v2688_v38, 4  ;;  %v2715_v53 = vshll.u32 %v5794_v26, 16  ;;  %v5876_v60 = vrot.slane %v5828_v30, 9  ;;  %v5844_v28 = vld [vmem:[%s6882_s3 + $0x4c] sm:$0xf] }
  0xc2   : > { %v2702_v57 = vor.u32 %v2701_v44, %v2698_v40  ;;  %v2711_v59 = vrot.slane %v2709_v46, 4  ;;  %v3175_v61 = vrot.slane %v5829_v32, 5  ;;  %6490 = vmatmul.mubr.msk.bf16.gmra.mxu0 %vm256_vm1, %v5809_v49  ;;  %v3178_v0 = vrot.slane %v5830_v37, 5  ;;  %v5845_v32 = vld [vmem:[%s6882_s3 + $0x50] sm:$0x1] }
  0xc3   : > { %v2694_v62 = vsel %vm6955_vm7, %v2689_v51, %v2693_v39  ;;  %v2717_v63 = vrot.slane %v2715_v53, 5  ;;  %v5877_v1 = vrot.slane %v5831_v24, 9  ;;  %v3182_v8 = vrot.slane %v5832_v47, 5  ;;  %v5846_v37 = vld [vmem:[%s6882_s3 + $0x54] sm:$0xe] }
  0xc4   : > { %v5810_v4 = vcombine.low %v2684_v50, %v2694_v62  ;;  %6460 = vmatmul.mubr.msk.bf16.gmra.mxu1 %vm256_vm1, %v6718_v43  ;;  %v2703_v5 = vrot.slane %v2702_v57, 4  ;;  %v2712_v6 = vor.u32 %v2711_v59, %v2707_v45  ;;  %v3176_v7 = vsel %vm6941_vm6, %v5876_v60, %v3175_v61  ;;  %v5847_v18 = vld [vmem:[%s6882_s3 + $0x58] sm:$0xf]  ;;  %v5848_v41 = vld [vmem:[%s6882_s3 + $0x5c] sm:$0x1]  ;;  %v6720_v59 = vld [vmem:[%s6882_s3 + $0x24] sm:$0xff]  }
  0xc5   : > { %v3177_v56 = vrot.slane %v3175_v61, 4  ;;  %v3185_v9 = vrot.slane %v5833_v48, 5  ;;  %v4597_v10 = vsel %vm305_vm0, %v7312_v31, 0  ;;  %v7414_v17 = vsel %vm305_vm0, %v7331_v52, 0  ;;  %v5843_v31 = vld [vmem:[%s6882_s3 + $0x48] sm:$0xe] }
  0xc6   : > { %6493 = vmatprep.mubr.msk.bf16.mxu0 %vm256_vm1, %v5810_v4  ;;  %v2708_v14 = vsel %vm6955_vm7, %v2703_v5, %v2707_v45  ;;  %v2713_v15 = vrot.slane %v2712_v6, 4  ;;  %v5878_v20 = vrot.slane %v5834_v54, 9  ;;  %v3183_v21 = vsel %vm6941_vm6, %v5877_v1, %v3182_v8  ;;  %v5849_v43 = vld [vmem:[%s6882_s3 + $0x60] sm:$0xe]  ;;  %v5850_v53 = vld [vmem:[%s6882_s3 + $0x64] sm:$0xf] }
  0xc7   : > { %v3179_v25 = vsel %vm6941_vm6, %v3177_v56, %v3178_v0  ;;  %v3184_v26 = vrot.slane %v3182_v8, 4  ;;  %v3189_v27 = vrot.slane %v5835_v58, 5  ;;  %v3192_v29 = vrot.slane %v5836_v2, 5  ;;  %v5851_v54 = vld [vmem:[%s6882_s3 + $0x68] sm:$0x1] }
  0xc8   : > { %v2718_v19 = vsel %vm6955_vm7, %v2713_v15, %v2717_v63  ;;  %v5893_v52 = vcombine.low %v3176_v7, %v3179_v25  ;;  %v5879_v30 = vrot.slane %v5837_v3, 9  ;;  %v3196_v39 = vrot.slane %v5838_v11, 5  ;;  %v5852_v57 = vld [vmem:[%s6882_s3 + $0x6c] sm:$0xe]  ;;  %v5853_v63 = vld [vmem:[%s6882_s3 + $0x70] sm:$0xf] }
  0xc9   : > { %v5811_v33 = vcombine.low %v2708_v14, %v2718_v19  ;;  %v3186_v34 = vsel %vm6941_vm6, %v3184_v26, %v3185_v9  ;;  %v3190_v35 = vsel %vm6941_vm6, %v5878_v20, %v3189_v27  ;;  %v3191_v36 = vrot.slane %v3189_v27, 4  ;;  %v5854_v0 = vld [vmem:[%s6882_s3 + $0x74] sm:$0x1]  ;;  %v5855_v1 = vld [vmem:[%s6882_s3 + $0x78] sm:$0xe] }
  0xca   : > { %6499 = vmatprep.mubr.msk.bf16.mxu1 %vm256_vm1, %v5893_v52  ;;  %v5894_v38 = vcombine.low %v3183_v21, %v3186_v34  ;;  %v3199_v40 = vrot.slane %v5839_v12, 5  ;;  %v5880_v24 = vrot.slane %v5840_v13, 9  ;;  %v3203_v45 = vrot.slane %v5841_v22, 5  ;;  %v5856_v6 = vld [vmem:[%s6882_s3 + $0x7c] sm:$0xf]  ;;  %v6721_v12 = vld [vmem:[%s6882_s3 + $0x30] sm:$0xff]  }
  0xcb   : > { %6494 = vmatmul.mubr.msk.bf16.gmra.mxu0 %vm256_vm1, %v5811_v33  ;;  %v3193_v44 = vsel %vm6941_vm6, %v3191_v36, %v3192_v29  ;;  %v3206_v46 = vrot.slane %v5842_v23, 5  ;;  %v5881_v47 = vrot.slane %v5843_v31, 9  ;;  %v7443_v49 = vsel %vm6941_vm6, %v5879_v30, %v3196_v39  ;;  %v5858_v11 = vld [vmem:[%s6882_s3 + $0x84] sm:$0xe]  ;;  %v5859_v20 = vld [vmem:[%s6882_s3 + $0x88] sm:$0xf] }
  0xcc   : > { %6533 = vmatprep.mubr.msk.bf16.mxu0 %vm256_vm1, %v6719_v16  ;;  %6500 = vmatmul.mubr.msk.bf16.vlgmr.msra.gmra.mxu1 %vm256_vm1, %v5894_v38  ;;  %v5895_v48 = vcombine.low %v3190_v35, %v3193_v44  ;;  %v3198_v50 = vrot.slane %v3196_v39, 4  ;;  %v3210_v51 = vrot.slane %v5844_v28, 5  ;;  %v3204_v60 = vsel %vm6941_vm6, %v5880_v24, %v3203_v45  ;;  %v5860_v21 = vld [vmem:[%s6882_s3 + $0x8c] sm:$0x1]  ;;  %v5861_v52 = vld [vmem:[%s6882_s3 + $0x90] sm:$0xe] }
  0xcd   : > { %6566 = vmatpush3.bf16.msra.mxu1 %v4597_v10  ;;  %v3205_v61 = vrot.slane %v3203_v45, 4  ;;  %v3213_v58 = vrot.slane %v5845_v32, 5  ;;  %v5882_v62 = vrot.slane %v5846_v37, 9  ;;  %v3217_v5 = vrot.slane %v5847_v18, 5  ;;  %v5857_v10 = vld [vmem:[%s6882_s3 + $0x80] sm:$0x1] }
  0xce   : > { %6503 = vmatprep.mubr.msk.bf16.mxu1 %vm256_vm1, %v5895_v48  ;;  %v3200_v2 = vsel %vm6941_vm6, %v3198_v50, %v3199_v40  ;;  %v7459_v3 = vsel %vm6941_vm6, %v5881_v47, %v3210_v51  ;;  %v3212_v4 = vrot.slane %v3210_v51, 4  ;;  %v3220_v8 = vrot.slane %v5848_v41, 5  ;;  %v5862_v35 = vld [vmem:[%s6882_s3 + $0x94] sm:$0xf]  ;;  %v7496_v36 = vld [vmem:[%s6882_s3 + $0x98] sm:$0x1] }
  0xcf   : > { %v5896_v7 = vcombine.low %v7443_v49, %v3200_v2  ;;  %v3207_v56 = vsel %vm6941_vm6, %v3205_v61, %v3206_v46  ;;  %v5883_v9 = vrot.slane %v5849_v43, 9  ;;  %v7474_v15 = vsel %vm6941_vm6, %v5882_v62, %v3217_v5  ;;  %v5864_v37 = vld [vmem:[%s6882_s3 + $0x9c] sm:$0xe]  ;;  %v5865_v41 = vld [vmem:[%s6882_s3 + $0xa0] sm:$0xf] }
  0xd0   : > { %v5897_v13 = vcombine.low %v3204_v60, %v3207_v56  ;;  %v7470_v14 = vsel %vm6941_vm6, %v3212_v4, %v3213_v58  ;;  %v3219_v16 = vrot.slane %v3217_v5, 4  ;;  %v3224_v23 = vrot.slane %v5850_v53, 5  ;;  %v5866_v43 = vld [vmem:[%s6882_s3 + $0xa4] sm:$0x1]  ;;  %v5867_v44 = vld [vmem:[%s6882_s3 + $0xa8] sm:$0xe] }
  0xd1   : > { %v5898_v22 = vcombine.low %v7459_v3, %v7470_v14  ;;  %v3227_v31 = vrot.slane %v5851_v54, 5  ;;  %v5884_v25 = vrot.slane %v5852_v57, 9  ;;  %v3231_v27 = vrot.slane %v5853_v63, 5  ;;  %v5868_v49 = vld [vmem:[%s6882_s3 + $0xac] sm:$0xf]  ;;  %v6722_v61 = vld [vmem:[%s6882_s3 + $0x3c] sm:$0xff]  }
  0xd2   : > { %v7482_v26 = vsel %vm6941_vm6, %v3219_v16, %v3220_v8  ;;  %v3234_v28 = vrot.slane %v5854_v0, 5  ;;  %v5885_v19 = vrot.slane %v5855_v1, 9  ;;  %v7490_v30 = vsel %vm6941_vm6, %v5883_v9, %v3224_v23  ;;  %v5870_v60 = vld [vmem:[%s6882_s3 + $0xb4] sm:$0xe]  ;;  %v5871_v2 = vld [vmem:[%s6882_s3 + $0xb8] sm:$0xf] }
  0xd3   : > { %6534 = vmatmul.mubr.msk.bf16.vlgmr.msra.gmra.mxu0 %vm256_vm1, %v6720_v59  ;;  %v5899_v29 = vcombine.low %v7474_v15, %v7482_v26  ;;  %v3226_v32 = vrot.slane %v3224_v23, 4  ;;  %v3238_v34 = vrot.slane %v5856_v6, 5  ;;  %v7503_v18 = vsel %vm6941_vm6, %v5884_v25, %v3231_v27  ;;  %v5869_v59 = vld [vmem:[%s6882_s3 + $0xb0] sm:$0x1]  ;;  %v6723_v4 = vld [vmem:[%s6882_s3 + $0x48] sm:$0xff]   ;;  %v6724_v26 = vld [vmem:[%s6882_s3 + $0x54] sm:$0xff]  }
  0xd4   : > { %6600 = vmatpush3.bf16.msra.mxu0 %v7414_v17  ;;  %6537 = vmatprep.mubr.msk.bf16.mxu0 %vm256_vm1, %v6721_v12  ;;  %v3233_v38 = vrot.slane %v3231_v27, 4  ;;  %v3241_v40 = vrot.slane %v5857_v10, 5  ;;  %v5886_v24 = vrot.slane %v5858_v11, 9  ;;  %v3245_v48 = vrot.slane %v5859_v20, 5  ;;  %v5872_v9 = vld [vmem:[%s6882_s3 + $0xbc] sm:$0x1] }
  0xd5   : > { %6504 = vmatmul.mubr.msk.bf16.gmra.mxu1 %vm256_vm1, %v5896_v7  ;;  %v7513_v17 = vsel %vm6941_vm6, %v3226_v32, %v3227_v31  ;;  %v7517_v45 = vsel %vm6941_vm6, %v5885_v19, %v3238_v34  ;;  %v3240_v46 = vrot.slane %v3238_v34, 4  ;;  %v3248_v54 = vrot.slane %v5860_v21, 5  ;;  %v5873_v20 = vld [vmem:[%s6882_s3 + $0xc0] sm:$0xe]  ;;  %v6071_v15 = vld [vmem:[%s6882_s3 + $0x18] sm:$0xe] }
  0xd6   : > { %6507 = vmatprep.mubr.msk.bf16.mxu1 %vm256_vm1, %v5897_v13  ;;  %v5900_v50 = vcombine.low %v7490_v30, %v7513_v17  ;;  %v7527_v51 = vsel %vm6941_vm6, %v3233_v38, %v3234_v28  ;;  %v5887_v57 = vrot.slane %v5861_v52, 9  ;;  %v7544_v0 = vsel %vm6941_vm6, %v5886_v24, %v3245_v48  ;;  %v5874_v28 = vld [vmem:[%s6882_s3 + $0xc4] sm:$0xf]  ;;  %v5995_v14 = vld [vmem:[%s6882_s3 + $0x2c] sm:$0x1] }
  0xd7   : > { %v5901_v58 = vcombine.low %v7503_v18, %v7527_v51  ;;  %v7538_v62 = vsel %vm6941_vm6, %v3240_v46, %v3241_v40  ;;  %v3247_v1 = vrot.slane %v3245_v48, 4  ;;  %v3252_v7 = vrot.slane %v5862_v35, 5  ;;  %v5996_v51 = vld [vmem:[%s6882_s3 + $0x30] sm:$0xf] }
  0xd8   : > { %v3255_v56 = vrot.slane %v7496_v36, 5  ;;  %v5888_v8 = vrot.slane %v5864_v37, 9  ;;  %v3259_v12 = vrot.slane %v5865_v41, 5  ;;  %v3262_v13 = vrot.slane %v5866_v43, 5  ;;  %v5875_v41 = vld [vmem:[%s6882_s3 + $0xc8] sm:$0x1] }
  0xd9   : > { %v7558_v11 = vsel %vm6941_vm6, %v3247_v1, %v3248_v54  ;;  %v5889_v16 = vrot.slane %v5867_v44, 9  ;;  %v7567_v25 = vsel %vm6941_vm6, %v5887_v57, %v3252_v7  ;;  %v3254_v21 = vrot.slane %v3252_v7, 4  ;;  %v5990_v43 = vld [vmem:[%s6882_s3 + $0x18] sm:$0xf]  ;;  %v5991_v57 = vld [vmem:[%s6882_s3 + $0x1c] sm:$0xf] }
  0xda   : > { %v3266_v27 = vrot.slane %v5868_v49, 5  ;;  %v7575_v52 = vsel %vm6941_vm6, %v5888_v8, %v3259_v12  ;;  %v3261_v32 = vrot.slane %v3259_v12, 4  ;;  %v3269_v34 = vrot.slane %v5869_v59, 5  ;;  %v6725_v8 = vld [vmem:[%s6882_s3 + $0x60] sm:$0xff]  }
  0xdb   : > { %6538 = vmatmul.mubr.msk.bf16.gmra.mxu0 %vm256_vm1, %v6722_v61  ;;  %v5890_v35 = vrot.slane %v5870_v60, 9  ;;  %v7582_v37 = vsel %vm6941_vm6, %v3254_v21, %v3255_v56  ;;  %v3273_v24 = vrot.slane %v5871_v2, 5  ;;  %v3276_v49 = vrot.slane %v5872_v9, 5  ;;  %v5992_v61 = vld [vmem:[%s6882_s3 + $0x20] sm:$0x1] }
  0xdc   : > { %v7492_v33 = vpop.f32.mrf.mxu0  ;;  %6541 = vmatprep.mubr.msk.bf16.mxu0 %vm256_vm1, %v6723_v4  ;;  %v7586_v38 = vsel %vm6941_vm6, %v5889_v16, %v3266_v27  ;;  %v3268_v40 = vrot.slane %v3266_v27, 4  ;;  %v7600_v48 = vsel %vm6941_vm6, %v3261_v32, %v3262_v13  ;;  %v5891_v54 = vrot.slane %v5873_v20, 9  ;;  %v6072_v56 = vld [vmem:[%s6882_s3 + $0x1c] sm:$0xf]  ;;  %v6073_v21 = vld [vmem:[%s6882_s3 + $0x20] sm:$0x1] }
  0xdd   : > { %v7505_v39 = vpop.f32.mrf.mxu1  ;;  %6508 = vmatmul.mubr.msk.bf16.gmra.mxu1 %vm256_vm1, %v5898_v22  ;;  %v7617_v59 = vsel %vm6941_vm6, %v5890_v35, %v3273_v24  ;;  %v3275_v60 = vrot.slane %v3273_v24, 4  ;;  %v3280_v2 = vrot.slane %v5874_v28, 5  ;;  %v3283_v4 = vrot.slane %v5875_v41, 5 }
  0xde   : > { %v7519_v47 = vpop.f32.mrf.mxu0  ;;  %6511 = vmatprep.mubr.msk.bf16.mxu1 %vm256_vm1, %v5899_v29  ;;  %v7613_v22 = vsel %vm6941_vm6, %v3268_v40, %v3269_v34  ;;  %v4115_v7 = vshrl.u32 %v5990_v43, 16  ;;  %v4118_v13 = vshll.u32 %v5990_v43, 16  ;;  %v4124_v16 = vshll.u32 %v5991_v57, 16 }
  0xdf   : > { %v7529_v53 = vpop.f32.mrf.mxu1  ;;  %v7632_v12 = vsel %vm6941_vm6, %v3275_v60, %v3276_v49  ;;  %v4128_v20 = vshrl.u32 %v5991_v57, 16  ;;  %v7641_v32 = vsel %vm6941_vm6, %v5891_v54, %v3280_v2  ;;  %v3282_v34 = vrot.slane %v3280_v2, 4  ;;  %v5993_v57 = vld [vmem:[%s6882_s3 + $0x24] sm:$0xf] }
  0xe0   : > { %v7540_v63 = vpop.f32.mrf.mxu0  ;;  %v4117_v35 = vrot.slane %v4115_v7, 4  ;;  %v4120_v24 = vrot.slane %v4118_v13, 5  ;;  %v4126_v41 = vrot.slane %v4124_v16, 5  ;;  %v4134_v49 = vshll.u32 %v5992_v61, 16  ;;  %v5994_v7 = vld [vmem:[%s6882_s3 + $0x28] sm:$0xf] }
  0xe1   : > { %v7550_v6 = vpop.f32.mrf.mxu1  ;;  %v4130_v43 = vrot.slane %v4128_v20, 4  ;;  %v7651_v28 = vsel %vm6941_vm6, %v3282_v34, %v3283_v4  ;;  %v6119_v54 = vrot.slane %v6071_v15, 9  ;;  %v4954_v29 = vrot.slane %v6072_v56, 5  ;;  %v6074_v34 = vld [vmem:[%s6882_s3 + $0x24] sm:$0xe] }
  0xe2   : > { %v7554_v10 = vpop.f32.mrf.mxu0  ;;  %v4957_v2 = vrot.slane %v6073_v21, 5  ;;  %v4136_v20 = vrot.slane %v4134_v49, 5  ;;  %v4142_v21 = vshll.u32 %v5993_v57, 16  ;;  %v6076_v49 = vld [vmem:[%s6882_s3 + $0x2c] sm:$0x1]  ;;  %v4158_v18 = vshll.u32 %v5995_v14, 16 }
  0xe3   : > { %v7561_v23 = vpop.f32.mrf.mxu1  ;;  %6542 = vmatmul.mubr.msk.bf16.gmra.mxu0 %vm256_vm1, %v6724_v26  ;;  %v4121_v26 = vor.u32 %v4120_v24, %v4117_v35  ;;  %v4131_v16 = vor.u32 %v4130_v43, %v4126_v41  ;;  %v7668_v4 = vsel %vm6941_vm6, %v6119_v54, %v4954_v29  ;;  %v4956_v56 = vrot.slane %v4954_v29, 4  ;;  %v6075_v35 = vld [vmem:[%s6882_s3 + $0x28] sm:$0xf]  ;;  %v6726_v29 = vld [vmem:[%s6882_s3 + $0x6c] sm:$0xff]  }
  0xe4   : > { %8589 = vst [vmem:[#allocation6_spill] sm:$0xff] %v7561_v23  ;;  %v7571_v19 = vpop.f32.mrf.mxu0  ;;  %6545 = vmatprep.mubr.msk.bf16.mxu0 %vm256_vm1, %v6725_v8  ;;  %v4139_v8 = vshrl.u32 %v5993_v57, 16  ;;  %v4148_v24 = vshll.u32 %v5994_v7, 16  ;;  %v4152_v43 = vshrl.u32 %v5994_v7, 16  ;;  %v4144_v44 = vrot.slane %v4142_v21, 5 }
  0xe5   : > { %v7578_v36 = vpop.f32.mrf.mxu1  ;;  %6512 = vmatmul.mubr.msk.bf16.gmra.mxu1 %vm256_vm1, %v5900_v50  ;;  %v4122_v17 = vrot.slane %v4121_v26, 4  ;;  %v4132_v50 = vrot.slane %v4131_v16, 4  ;;  %v7684_v57 = vsel %vm6941_vm6, %v4956_v56, %v4957_v2  ;;  %v5997_v2 = vld [vmem:[%s6882_s3 + $0x34] sm:$0xf] }
  0xe6   : > { %8590 = vst [vmem:[#allocation7_spill] sm:$0xff] %v7578_v36  ;;  %v7596_v46 = vpop.f32.mrf.mxu0  ;;  %6515 = vmatprep.mubr.msk.bf16.mxu1 %vm256_vm1, %v5901_v58  ;;  %v4141_v61 = vrot.slane %v4139_v8, 4  ;;  %v6727_v58 = vld [vmem:[%s6882_s3 + $0x78] sm:$0xff]   ;;  %v4150_v5 = vrot.slane %v4148_v24, 5  ;;  %v4154_v21 = vrot.slane %v4152_v43, 4 }
  0xe7   : > { %v7607_v3 = vpop.f32.mrf.mxu1  ;;  %v4127_v26 = vsel %vm6955_vm7, %v4122_v17, %v4126_v41  ;;  %v4137_v7 = vsel %vm6955_vm7, %v4132_v50, %v4136_v20  ;;  %v4961_v41 = vrot.slane %v6075_v35, 5  ;;  %v4964_v17 = vrot.slane %v6076_v49, 5  ;;  %v5998_v20 = vld [vmem:[%s6882_s3 + $0x38] sm:$0x1] }
  0xe8   : > { %8591 = vst [vmem:[#allocation8_spill] sm:$0xff] %v7607_v3  ;;  %v7622_v1 = vpop.f32.mrf.mxu0  ;;  %v7699_v8 = vcombine.low %v4127_v26, %v4137_v7  ;;  %v4145_v14 = vor.u32 %v4144_v44, %v4141_v61  ;;  %v4163_v50 = vshrl.u32 %v5996_v51, 16  ;;  %v4166_v26 = vshll.u32 %v5996_v51, 16  ;;  %v6077_v44 = vld [vmem:[%s6882_s3 + $0x30] sm:$0xe] }
  0xe9   : > { %v7628_v9 = vpop.f32.mrf.mxu1  ;;  %v4172_v7 = vshll.u32 %v5997_v2, 16  ;;  %v4963_v35 = vrot.slane %v4961_v41, 4  ;;  %v4176_v49 = vshrl.u32 %v5997_v2, 16  ;;  %v8600_v2 = vcombine.low %v7544_v0, %v7558_v11 }
  0xea   : > { %8592 = vst [vmem:[#allocation9_spill] sm:$0xff] %v7628_v9  ;;  %v7635_v27 = vpop.f32.mrf.mxu0  ;;  %v4146_v16 = vrot.slane %v4145_v14, 4  ;;  %v4165_v43 = vrot.slane %v4163_v50, 4 }
  0xeb   : > { %v7643_v40 = vpop.f32.mrf.mxu1  ;;  %6546 = vmatmul.mubr.msk.bf16.gmra.mxu0 %vm256_vm1, %v6726_v29  ;;  %v6078_v29 = vld [vmem:[%s6882_s3 + $0x34] sm:$0xf] }
  0xec   : > { %8593 = vst [vmem:[#allocation10_spill] sm:$0xff] %v7643_v40  ;;  %v7647_v60 = vpop.f32.mrf.mxu0  ;;  %v4155_v40 = vor.u32 %v4154_v21, %v4150_v5  ;;  %6549 = vmatprep.mubr.msk.bf16.mxu0 %vm256_vm1, %v6727_v58  ;;  %v4151_v58 = vsel %vm6955_vm7, %v4146_v16, %v4150_v5  ;;  %v4168_v21 = vrot.slane %v4166_v26, 5  ;;  %v6121_v5 = vrot.slane %v6077_v44, 9  ;;  %v6728_v16 = vld [vmem:[%s6882_s3 + $0x84] sm:$0xff]  }
  0xed   : > { %v7655_v13 = vpop.f32.mrf.mxu1 }
  0xee   : > { %8594 = vst [vmem:[#allocation11_spill] sm:$0xff] %v7655_v13  ;;  %v7664_v15 = vpop.f32.mrf.mxu0  ;;  %v6120_v13 = vrot.slane %v6074_v34, 9  ;;  %v4156_v14 = vrot.slane %v4155_v40, 4  ;;  %v5999_v40 = vld [vmem:[%s6882_s3 + $0x3c] sm:$0xf]  ;;  %v4169_v11 = vor.u32 %v4168_v21, %v4165_v43 }
  0xef   : > { %v7676_v30 = vpop.f32.mrf.mxu1 }
  0xf0   : > { %8595 = vst [vmem:[#allocation12_spill] sm:$0xff] %v7676_v30  ;;  %v7680_v54 = vpop.f32.mrf.mxu0  ;;  %v4160_v30 = vrot.slane %v4158_v18, 5  ;;  %v7713_v34 = vsel %vm6941_vm6, %v6120_v13, %v4961_v41  ;;  %v8599_v18 = vcombine.low %v7517_v45, %v7538_v62  ;;  %v4174_v13 = vrot.slane %v4172_v7, 5  ;;  %v6079_v41 = vld [vmem:[%s6882_s3 + $0x38] sm:$0x1] }
  0xf1   : > { %v7688_v31 = vpop.f32.mrf.mxu1  ;;  %v7733_v45 = vsel %vm6941_vm6, %v4963_v35, %v4964_v17  ;;  %v4178_v62 = vrot.slane %v4176_v49, 4  ;;  %v4971_v49 = vrot.slane %v6079_v41, 5  ;;  %v4170_v3 = vrot.slane %v4169_v11, 4  ;;  %v6080_v41 = vld [vmem:[%s6882_s3 + $0x3c] sm:$0xe] }
  0xf2   : > { %8596 = vst [vmem:[#allocation13_spill] sm:$0xff] %v7688_v31  ;;  %v7697_v56 = vpop.f32.mrf.mxu0  ;;  %6516 = vmatmul.mubr.msk.bf16.gmra.mxu1 %vm256_vm1, %v8599_v18  ;;  %v4182_v18 = vshll.u32 %v5998_v20, 16  ;;  %v4161_v7 = vsel %vm6955_vm7, %v4156_v14, %v4160_v30 }
  0xf3   : > { %v7701_v31 = vpop.f32.mrf.mxu1  ;;  %6519 = vmatprep.mubr.msk.bf16.mxu1 %vm256_vm1, %v8600_v2  ;;  %v4968_v2 = vrot.slane %v6078_v29, 5  ;;  %v7747_v20 = vcombine.low %v4151_v58, %v4161_v7  ;;  %v4179_v44 = vor.u32 %v4178_v62, %v4174_v13  ;;  %v4187_v29 = vshrl.u32 %v5999_v40, 16  ;;  %6550 = vmatmul.mubr.msk.bf16.gmra.mxu0 %vm256_vm1, %v6728_v16 }
  0xf4   : > { %8597 = vst [vmem:[#allocation14_spill] sm:$0xff] %v7701_v31  ;;  %v7705_v24 = vpop.f32.mrf.mxu0  ;;  %v4184_v35 = vrot.slane %v4182_v18, 5  ;;  %v6001_v31 = vld [vmem:[%s6882_s3 + $0x44] sm:$0x1]  ;;  %v4190_v58 = vshll.u32 %v5999_v40, 16  ;;  %v4175_v11 = vsel %vm6955_vm7, %v4170_v3, %v4174_v13  ;;  %v6122_v16 = vrot.slane %v6080_v41, 9 }
  0xf5   : > { %v7709_v61 = vpop.f32.mrf.mxu1  ;;  %v7754_v30 = vsel %vm6941_vm6, %v6121_v5, %v4968_v2  ;;  %v4970_v43 = vrot.slane %v4968_v2, 4  ;;  %v4180_v21 = vrot.slane %v4179_v44, 4  ;;  %v4189_v2 = vrot.slane %v4187_v29, 4  ;;  %v6002_v13 = vld [vmem:[%s6882_s3 + $0x48] sm:$0xf] }
  0xf6   : > { %8598 = vst [vmem:[#allocation15_spill] sm:$0xff] %v7709_v61  ;;  %v7720_v51 = vpop.f32.mrf.mxu0  ;;  %v6729_v61 = vld [vmem:[%s6882_s3 + $0x90] sm:$0xff]   ;;  %v4206_v0 = vshll.u32 %v6001_v31, 16  ;;  %v4192_v44 = vrot.slane %v4190_v58, 5 }
  0xf7   : > { %v7729_v50 = vpop.f32.mrf.mxu1  ;;  %v7764_v5 = vsel %vm6941_vm6, %v4970_v43, %v4971_v49  ;;  %6553 = vmatprep.mubr.msk.bf16.mxu0 %vm256_vm1, %v6729_v61  ;;  %v8604_v49 = vcombine.low %v7567_v25, %v7582_v37 }
  0xf8   : > { %8601 = vst [vmem:[#allocation16_spill] sm:$0xff] %v7729_v50  ;;  %v7737_v26 = vpop.f32.mrf.mxu0  ;;  %v6000_v50 = vld [vmem:[%s6882_s3 + $0x40] sm:$0xf]  ;;  %v4208_v29 = vrot.slane %v4206_v0, 5  ;;  %v4211_v0 = vshrl.u32 %v6002_v13, 16 }
  0xf9   : > { %v7745_v17 = vpop.f32.mrf.mxu1  ;;  %v4196_v7 = vshll.u32 %v6000_v50, 16  ;;  %v4200_v62 = vshrl.u32 %v6000_v50, 16  ;;  %v4185_v50 = vsel %vm6955_vm7, %v4180_v21, %v4184_v35  ;;  %v8605_v21 = vcombine.low %v7575_v52, %v7600_v48 }
  0xfa   : > { %8602 = vst [vmem:[#allocation17_spill] sm:$0xff] %v7745_v17  ;;  %v7750_v9 = vpop.f32.mrf.mxu0  ;;  %v6081_v17 = vld [vmem:[%s6882_s3 + $0x40] sm:$0xf]  ;;  %6520 = vmatmul.mubr.msk.bf16.gmra.mxu1 %vm256_vm1, %v8604_v49  ;;  %v7779_v43 = vcombine.low %v4175_v11, %v4185_v50  ;;  %v6003_v50 = vld [vmem:[%s6882_s3 + $0x4c] sm:$0xf] }
  0xfb   : > { %v7756_v14 = vpop.f32.mrf.mxu1  ;;  %v4198_v3 = vrot.slane %v4196_v7, 5  ;;  %v4202_v35 = vrot.slane %v4200_v62, 4  ;;  %6523 = vmatprep.mubr.msk.bf16.mxu1 %vm256_vm1, %v8605_v21  ;;  %v4193_v7 = vor.u32 %v4192_v44, %v4189_v2  ;;  %v4975_v25 = vrot.slane %v6081_v17, 5  ;;  %v6730_v49 = vld [vmem:[%s6882_s3 + $0x9c] sm:$0xff]   ;;  %v6731_v62 = vld [vmem:[%s6882_s3 + $0xa8] sm:$0xff]  }
  0xfc   : > { %8603 = vst [vmem:[#allocation18_spill] sm:$0xff] %v7756_v14  ;;  %v6399_v18 = vpop.f32.mrf.mxu0  ;;  %v6082_v14 = vld [vmem:[%s6882_s3 + $0x44] sm:$0x1]  ;;  %v4213_v44 = vrot.slane %v4211_v0, 4  ;;  %6554 = vmatmul.mubr.msk.bf16.gmra.mxu0 %vm256_vm1, %v6730_v49 }
  0xfd   : > { %v6365_v40 = vpop.f32.mrf.mxu1  ;;  %v4978_v37 = vrot.slane %v6082_v14, 5  ;;  %v4194_v52 = vrot.slane %v4193_v7, 4  ;;  %v7793_v48 = vsel %vm6941_vm6, %v6122_v16, %v4975_v25  ;;  %v4977_v17 = vrot.slane %v4975_v25, 4  ;;  %v6004_v16 = vld [vmem:[%s6882_s3 + $0x50] sm:$0x1]  ;;  %6557 = vmatprep.mubr.msk.bf16.mxu0 %vm256_vm1, %v6731_v62 }
  0xfe   : > { %v1233_v31 = vadd.f32 %v6365_v40, %v7492_v33  ;;  %v1641_v61 = vpop.f32.mrf.mxu0  ;;  %v4203_v40 = vor.u32 %v4202_v35, %v4198_v3  ;;  %v4214_v14 = vshll.u32 %v6002_v13, 16  ;;  %v4220_v13 = vshll.u32 %v6003_v50, 16  ;;  %v6084_v25 = vld [vmem:[%s6882_s3 + $0x4c] sm:$0xf] }
  0xff   : > { %v1072_v58 = vpop.f32.mrf.mxu1  ;;  %v4199_v35 = vsel %vm6955_vm7, %v4194_v52, %v4198_v3  ;;  %v7802_v21 = vsel %vm6941_vm6, %v4977_v17, %v4978_v37  ;;  %v6085_v37 = vld [vmem:[%s6882_s3 + $0x50] sm:$0x1]  ;;  %v6005_v17 = vld [vmem:[%s6882_s3 + $0x54] sm:$0xf]  ;;  %v4230_v62 = vshll.u32 %v6004_v16, 16 }
 0x100   : > { %v7786_v36 = vadd.f32 %v6399_v18, %v1233_v31  ;;  %v1231_v33 = vadd.f32 %v1072_v58, %v7519_v47  ;;  %v6400_v11 = vpop.f32.mrf.mxu0  ;;  %v4204_v2 = vrot.slane %v4203_v40, 4  ;;  %v4216_v58 = vrot.slane %v4214_v14, 5 }
 0x101   : > { %v6366_v23 = vpop.f32.mrf.mxu1  ;;  %v6139_v3 = vcombine.low %v7793_v48, %v7802_v21  ;;  %v4222_v49 = vrot.slane %v4220_v13, 5  ;;  %v4232_v16 = vrot.slane %v4230_v62, 5  ;;  %v6006_v13 = vld [vmem:[%s6882_s3 + $0x58] sm:$0xf] }
 0x102   : > { %v7795_v41 = vadd.f32 %v1641_v61, %v1231_v33  ;;  %v1234_v18 = vadd.f32 %v6366_v23, %v7540_v63  ;;  %v1644_v47 = vpop.f32.mrf.mxu0  ;;  %v6083_v61 = vld [vmem:[%s6882_s3 + $0x48] sm:$0xe]  ;;  %v4209_v7 = vsel %vm6955_vm7, %v4204_v2, %v4208_v29  ;;  %v4217_v52 = vor.u32 %v4216_v58, %v4213_v44  ;;  %v6732_v58 = vld [vmem:[%s6882_s3 + $0xb4] sm:$0xff]  }
 0x103   : > { %v1075_v31 = vpop.f32.mrf.mxu1  ;;  %v7817_v0 = vcombine.low %v4199_v35, %v4209_v7  ;;  %v8607_v2 = vcombine.low %v7617_v59, %v7632_v12 }
 0x104   : > { %v7807_v63 = vadd.f32 %v6400_v11, %v1234_v18  ;;  %v1232_v23 = vadd.f32 %v1075_v31, %v7554_v10  ;;  %v6403_v40 = vpop.f32.mrf.mxu0  ;;  %v4224_v11 = vshrl.u32 %v6003_v50, 16  ;;  %v8606_v10 = vcombine.low %v7586_v38, %v7613_v22  ;;  %6558 = vmatmul.mubr.msk.bf16.gmra.mxu0 %vm256_vm1, %v6732_v58 }
 0x105   : > { %v6369_v33 = vpop.f32.mrf.mxu1  ;;  %v6123_v18 = vrot.slane %v6083_v61, 9  ;;  %v4218_v31 = vrot.slane %v4217_v52, 4  ;;  %v4982_v38 = vrot.slane %v6084_v25, 5  ;;  %v4985_v22 = vrot.slane %v6085_v37, 5  ;;  %v6007_v52 = vld [vmem:[%s6882_s3 + $0x5c] sm:$0x1] }
 0x106   : > { %6524 = vmatmul.mubr.msk.bf16.gmra.mxu1 %vm256_vm1, %v8606_v10  ;;  %v7824_v29 = vadd.f32 %v1644_v47, %v1232_v23  ;;  %v1237_v14 = vadd.f32 %v6369_v33, %v7571_v19  ;;  %v1657_v44 = vpop.f32.mrf.mxu0  ;;  %v4226_v35 = vrot.slane %v4224_v11, 4  ;;  %v4235_v61 = vshrl.u32 %v6005_v17, 16  ;;  %v6733_v23 = vld [vmem:[%s6882_s3 + $0xc0] sm:$0xff]  }
 0x107   : > { %6527 = vmatprep.mubr.msk.bf16.mxu1 %vm256_vm1, %v8607_v2  ;;  %v1088_v50 = vpop.f32.mrf.mxu1  ;;  %v4223_v7 = vsel %vm6955_vm7, %v4218_v31, %v4222_v49  ;;  %v7841_v25 = vsel %vm6941_vm6, %v6123_v18, %v4982_v38  ;;  %v4984_v37 = vrot.slane %v4982_v38, 4  ;;  %v4238_v10 = vshll.u32 %v6005_v17, 16  ;;  %v6087_v31 = vld [vmem:[%s6882_s3 + $0x58] sm:$0xf]  ;;  %v6088_v38 = vld [vmem:[%s6882_s3 + $0x5c] sm:$0x1]  ;;  %6561 = vmatprep.mubr.msk.bf16.mxu0 %vm256_vm1, %v6733_v23 }
 0x108   : > { %v7832_v47 = vadd.f32 %v6403_v40, %v1237_v14  ;;  %v1235_v19 = vadd.f32 %v1088_v50, %v7596_v46  ;;  %v6404_v12 = vpop.f32.mrf.mxu0  ;;  %v4227_v33 = vor.u32 %v4226_v35, %v4222_v49  ;;  %v4237_v11 = vrot.slane %v4235_v61, 4  ;;  %v6086_v14 = vld [vmem:[%s6882_s3 + $0x54] sm:$0xe] }
 0x109   : > { %v6370_v59 = vpop.f32.mrf.mxu1  ;;  %v7850_v49 = vsel %vm6941_vm6, %v4984_v37, %v4985_v22  ;;  %v4244_v50 = vshll.u32 %v6006_v13, 16  ;;  %v4248_v18 = vshrl.u32 %v6006_v13, 16  ;;  %v4240_v35 = vrot.slane %v4238_v10, 5 }
 0x10a   : > { %v7843_v40 = vadd.f32 %v1657_v44, %v1235_v19  ;;  %v1238_v46 = vadd.f32 %v6370_v59, %v7622_v1  ;;  %v4228_v2 = vrot.slane %v4227_v33, 4  ;;  %v6140_v17 = vcombine.low %v7841_v25, %v7850_v49  ;;  %v6008_v19 = vld [vmem:[%s6882_s3 + $0x60] sm:$0xf]  ;;  %v1660_v22 = vpop.f32.mrf.mxu0 }
 0x10b   : > { %v1091_v62 = vpop.f32.mrf.mxu1  ;;  %v4246_v61 = vrot.slane %v4244_v50, 5  ;;  %v4250_v59 = vrot.slane %v4248_v18, 4  ;;  %v4254_v58 = vshll.u32 %v6007_v52, 16  ;;  %v6124_v23 = vrot.slane %v6086_v14, 9 }
 0x10c   : > { %v7854_v44 = vadd.f32 %v6404_v12, %v1238_v46  ;;  %v1236_v1 = vadd.f32 %v1091_v62, %v7635_v27  ;;  %v4233_v13 = vsel %vm6955_vm7, %v4228_v2, %v4232_v16  ;;  %v6009_v12 = vld [vmem:[%s6882_s3 + $0x64] sm:$0xf]  ;;  %v8608_v27 = vcombine.low %v7641_v32, %v7651_v28  ;;  %v6734_v2 = vld [vmem:[%s6882_s3 + $0xcc] sm:$0xff]  }
 0x10d   : > { %v7871_v37 = vcombine.low %v4223_v7, %v4233_v13  ;;  %v4241_v46 = vor.u32 %v4240_v35, %v4237_v11  ;;  %v4251_v10 = vor.u32 %v4250_v59, %v4246_v61  ;;  %v4256_v16 = vrot.slane %v4254_v58, 5  ;;  %v6089_v59 = vld [vmem:[%s6882_s3 + $0x60] sm:$0xe]  ;;  %6562 = vmatmul.mubr.msk.bf16.gmra.mxu0 %vm256_vm1, %v6734_v2 }
 0x10e   : > { %6528 = vmatmul.mubr.msk.bf16.gmra.mxu1 %vm256_vm1, %v8608_v27  ;;  %v7869_v33 = vadd.f32 %v1660_v22, %v1236_v1  ;;  %v4989_v62 = vrot.slane %v6087_v31, 5  ;;  %v4992_v52 = vrot.slane %v6088_v38, 5  ;;  %v4259_v28 = vshrl.u32 %v6008_v19, 16  ;;  %v6373_v1 = vpop.f32.mrf.mxu1  ;;  %v6407_v22 = vpop.f32.mrf.mxu0  ;;  %v6010_v38 = vld [vmem:[%s6882_s3 + $0x68] sm:$0x1] }
 0x10f   : > { %6567 = vmatprep.mubr.msk.bf16.mxu1 %vm256_vm1, %v7699_v8  ;;  %v4242_v50 = vrot.slane %v4241_v46, 4  ;;  %v4262_v32 = vshll.u32 %v6008_v19, 16  ;;  %v4268_v18 = vshll.u32 %v6009_v12, 16  ;;  %v4252_v7 = vrot.slane %v4251_v10, 4 }
 0x110   : > { %v7878_v11 = vsel %vm6941_vm6, %v6124_v23, %v4989_v62  ;;  %v4991_v8 = vrot.slane %v4989_v62, 4  ;;  %v4272_v14 = vshrl.u32 %v6009_v12, 16  ;;  %v1241_v31 = vadd.f32 %v6373_v1, %v7647_v60  ;;  %v1104_v46 = vpop.f32.mrf.mxu1  ;;  %v1673_v23 = vpop.f32.mrf.mxu0  ;;  %v6090_v60 = vld [vmem:[%s6882_s3 + $0x64] sm:$0xf]  ;;  %v6091_v62 = vld [vmem:[%s6882_s3 + $0x68] sm:$0x1] }
 0x111   : > { %v4247_v35 = vsel %vm6955_vm7, %v4242_v50, %v4246_v61  ;;  %v4261_v13 = vrot.slane %v4259_v28, 4  ;;  %v4264_v19 = vrot.slane %v4262_v32, 5  ;;  %v4257_v58 = vsel %vm6955_vm7, %v4252_v7, %v4256_v16  ;;  %v6011_v32 = vld [vmem:[%s6882_s3 + $0x6c] sm:$0xf] }
 0x112   : > { %v7889_v27 = vsel %vm6941_vm6, %v4991_v8, %v4992_v52  ;;  %v4270_v12 = vrot.slane %v4268_v18, 5  ;;  %v4274_v10 = vrot.slane %v4272_v14, 4  ;;  %v7894_v61 = vadd.f32 %v6407_v22, %v1241_v31  ;;  %v6374_v18 = vpop.f32.mrf.mxu1  ;;  %v6408_v1 = vpop.f32.mrf.mxu0 }
 0x113   : > { %v7896_v50 = vcombine.low %v4247_v35, %v4257_v58  ;;  %v6141_v28 = vcombine.low %v7878_v11, %v7889_v27  ;;  %v1239_v16 = vadd.f32 %v1104_v46, %v7664_v15  ;;  %v8609_v52 = vcombine.low %v7668_v4, %v7684_v57 }
 0x114   : > { %v4265_v7 = vor.u32 %v4264_v19, %v4261_v13  ;;  %v4275_v2 = vor.u32 %v4274_v10, %v4270_v12  ;;  %v4278_v22 = vshll.u32 %v6010_v38, 16  ;;  %v6125_v8 = vrot.slane %v6089_v59, 9  ;;  %v1107_v57 = vpop.f32.mrf.mxu1  ;;  %v6012_v19 = vld [vmem:[%s6882_s3 + $0x70] sm:$0xf]  ;;  %v1676_v10 = vpop.f32.mrf.mxu0 }
 0x115   : > { %6601 = vmatprep.mubr.msk.bf16.mxu0 %vm256_vm1, %v8609_v52  ;;  %v7908_v14 = vadd.f32 %v1673_v23, %v1239_v16  ;;  %v1242_v15 = vadd.f32 %v6374_v18, %v7680_v54  ;;  %v4996_v31 = vrot.slane %v6090_v60, 5  ;;  %v4999_v4 = vrot.slane %v6091_v62, 5  ;;  %v6013_v23 = vld [vmem:[%s6882_s3 + $0x74] sm:$0x1]  ;;  %v6093_v18 = vld [vmem:[%s6882_s3 + $0x70] sm:$0xf] }
 0x116   : > { %6568 = vmatmul.mubr.msk.bf16.vlgmr.msra.gmra.mxu1 %vm256_vm1, %v7747_v20  ;;  %v4266_v35 = vrot.slane %v4265_v7, 4  ;;  %v4276_v13 = vrot.slane %v4275_v2, 4  ;;  %v4280_v38 = vrot.slane %v4278_v22, 5  ;;  %v4283_v59 = vshrl.u32 %v6011_v32, 16 }
 0x117   : > { %6571 = vmatprep.mubr.msk.bf16.mxu1 %vm256_vm1, %v7779_v43  ;;  %v7914_v20 = vadd.f32 %v6408_v1, %v1242_v15  ;;  %v1240_v58 = vadd.f32 %v1107_v57, %v7697_v56  ;;  %v7919_v54 = vsel %vm6941_vm6, %v6125_v8, %v4996_v31  ;;  %v4998_v46 = vrot.slane %v4996_v31, 4  ;;  %v6092_v43 = vld [vmem:[%s6882_s3 + $0x6c] sm:$0xe]  ;;  %v6094_v56 = vld [vmem:[%s6882_s3 + $0x74] sm:$0x1] }
 0x118   : > { %v4271_v60 = vsel %vm6955_vm7, %v4266_v35, %v4270_v12  ;;  %v4281_v62 = vsel %vm6955_vm7, %v4276_v13, %v4280_v38  ;;  %v4285_v16 = vrot.slane %v4283_v59, 4  ;;  %v4286_v52 = vshll.u32 %v6011_v32, 16  ;;  %v6014_v8 = vld [vmem:[%s6882_s3 + $0x78] sm:$0xf] }
 0x119   : > { %v7929_v1 = vadd.f32 %v1676_v10, %v1240_v58  ;;  %v7931_v7 = vcombine.low %v4271_v60, %v4281_v62  ;;  %v7935_v2 = vsel %vm6941_vm6, %v4998_v46, %v4999_v4  ;;  %v4292_v22 = vshll.u32 %v6012_v19, 16  ;;  %v6015_v58 = vld [vmem:[%s6882_s3 + $0x7c] sm:$0xf]  ;;  %v6377_v46 = vpop.f32.mrf.mxu1  ;;  %v6411_v10 = vpop.f32.mrf.mxu0 }
 0x11a   : > { %v6142_v12 = vcombine.low %v7919_v54, %v7935_v2  ;;  %v4288_v15 = vrot.slane %v4286_v52, 5  ;;  %v4296_v31 = vshrl.u32 %v6012_v19, 16  ;;  %v4302_v57 = vshll.u32 %v6013_v23, 16 }
 0x11b   : > { %v8610_v32 = vcombine.low %v7713_v34, %v7733_v45  ;;  %v4294_v35 = vrot.slane %v4292_v22, 5  ;;  %v6126_v13 = vrot.slane %v6092_v43, 9  ;;  %v5003_v38 = vrot.slane %v6093_v18, 5  ;;  %v1120_v52 = vpop.f32.mrf.mxu1  ;;  %v1689_v18 = vpop.f32.mrf.mxu0 }
 0x11c   : > { %v5006_v59 = vrot.slane %v6094_v56, 5  ;;  %v8611_v4 = vcombine.low %v7754_v30, %v7764_v5  ;;  %v4289_v19 = vor.u32 %v4288_v15, %v4285_v16  ;;  %v4298_v23 = vrot.slane %v4296_v31, 4  ;;  %v6016_v56 = vld [vmem:[%s6882_s3 + $0x80] sm:$0x1] }
 0x11d   : > { %6602 = vmatmul.mubr.msk.bf16.vlgmr.msra.gmra.mxu0 %vm256_vm1, %v8610_v32  ;;  %v4304_v60 = vrot.slane %v4302_v57, 5  ;;  %v4307_v62 = vshrl.u32 %v6014_v8, 16  ;;  %v1245_v34 = vadd.f32 %v6377_v46, %v7705_v24  ;;  %v7954_v45 = vsel %vm6941_vm6, %v6126_v13, %v5003_v38  ;;  %v6095_v57 = vld [vmem:[%s6882_s3 + $0x78] sm:$0xe]  ;;  %v6096_v32 = vld [vmem:[%s6882_s3 + $0x7c] sm:$0xf]  ;;  %v6412_v46 = vpop.f32.mrf.mxu0 }
 0x11e   : > { %6605 = vmatprep.mubr.msk.bf16.mxu0 %vm256_vm1, %v8611_v4  ;;  %6572 = vmatmul.mubr.msk.bf16.gmra.mxu1 %vm256_vm1, %v7817_v0  ;;  %v5005_v30 = vrot.slane %v5003_v38, 4  ;;  %v4310_v5 = vshll.u32 %v6014_v8, 16  ;;  %v4290_v43 = vrot.slane %v4289_v19, 4  ;;  %v4299_v16 = vor.u32 %v4298_v23, %v4294_v35  ;;  %v6378_v4 = vpop.f32.mrf.mxu1 }
 0x11f   : > { %6575 = vmatprep.mubr.msk.bf16.mxu1 %vm256_vm1, %v7871_v37  ;;  %v4309_v22 = vrot.slane %v4307_v62, 4  ;;  %v4316_v0 = vshll.u32 %v6015_v58, 16  ;;  %v7959_v15 = vadd.f32 %v6411_v10, %v1245_v34  ;;  %v1243_v31 = vadd.f32 %v1120_v52, %v7720_v51  ;;  %v6097_v62 = vld [vmem:[%s6882_s3 + $0x80] sm:$0x1] }
 0x120   : > { %v7963_v24 = vsel %vm6941_vm6, %v5005_v30, %v5006_v59  ;;  %v4312_v8 = vrot.slane %v4310_v5, 5  ;;  %v4295_v37 = vsel %vm6955_vm7, %v4290_v43, %v4294_v35  ;;  %v4300_v13 = vrot.slane %v4299_v16, 4  ;;  %v1123_v34 = vpop.f32.mrf.mxu1  ;;  %v6017_v16 = vld [vmem:[%s6882_s3 + $0x84] sm:$0xf] }
 0x121   : > { %v6143_v38 = vcombine.low %v7954_v45, %v7963_v24  ;;  %v4318_v10 = vrot.slane %v4316_v0, 5  ;;  %v7972_v19 = vadd.f32 %v1689_v18, %v1243_v31  ;;  %v1246_v59 = vadd.f32 %v6378_v4, %v7737_v26  ;;  %v6098_v31 = vld [vmem:[%s6882_s3 + $0x84] sm:$0xe]  ;;  %v6100_v4 = vld [vmem:[%s6882_s3 + $0x8c] sm:$0x1] }
 0x122   : > { %v4313_v51 = vor.u32 %v4312_v8, %v4309_v22  ;;  %v4320_v23 = vshrl.u32 %v6015_v58, 16  ;;  %v4305_v35 = vsel %vm6955_vm7, %v4300_v13, %v4304_v60  ;;  %v4326_v30 = vshll.u32 %v6016_v56, 16  ;;  %v6018_v22 = vld [vmem:[%s6882_s3 + $0x88] sm:$0xf]  ;;  %v6019_v60 = vld [vmem:[%s6882_s3 + $0x8c] sm:$0x1]  ;;  %v1692_v56 = vpop.f32.mrf.mxu0 }
 0x123   : > { %v6127_v5 = vrot.slane %v6095_v57, 9  ;;  %v5010_v43 = vrot.slane %v6096_v32, 5  ;;  %v6046_v52 = vcombine.low %v4295_v37, %v4305_v35  ;;  %v7983_v26 = vadd.f32 %v6412_v46, %v1246_v59  ;;  %v6099_v8 = vld [vmem:[%s6882_s3 + $0x88] sm:$0xf] }
 0x124   : > { %v1244_v58 = vadd.f32 %v1123_v34, %v7750_v9  ;;  %v4314_v18 = vrot.slane %v4313_v51, 4  ;;  %v4322_v0 = vrot.slane %v4320_v23, 4  ;;  %v4328_v48 = vrot.slane %v4326_v30, 5  ;;  %v6020_v23 = vld [vmem:[%s6882_s3 + $0x90] sm:$0xf]  ;;  %v6381_v34 = vpop.f32.mrf.mxu1 }
 0x125   : > { %6606 = vmatmul.mubr.msk.bf16.gmra.mxu0 %vm256_vm1, %v6139_v3  ;;  %v7994_v21 = vsel %vm6941_vm6, %v6127_v5, %v5010_v43  ;;  %v5012_v3 = vrot.slane %v5010_v43, 4  ;;  %v5013_v49 = vrot.slane %v6097_v62, 5  ;;  %v4334_v32 = vshll.u32 %v6017_v16, 16 }
 0x126   : > { %6609 = vmatprep.mubr.msk.bf16.mxu0 %vm256_vm1, %v6140_v17  ;;  %6576 = vmatmul.mubr.msk.bf16.gmra.mxu1 %vm256_vm1, %v7896_v50  ;;  %v7999_v9 = vadd.f32 %v1692_v56, %v1244_v58  ;;  %v4319_v25 = vsel %vm6955_vm7, %v4314_v18, %v4318_v10  ;;  %v4331_v17 = vshrl.u32 %v6017_v16, 16  ;;  %v4323_v57 = vor.u32 %v4322_v0, %v4318_v10  ;;  %v1136_v56 = vpop.f32.mrf.mxu1 }
 0x127   : > { %6579 = vmatprep.mubr.msk.bf16.mxu1 %vm256_vm1, %v7931_v7  ;;  %v4340_v37 = vshll.u32 %v6018_v22, 16  ;;  %v4344_v13 = vshrl.u32 %v6018_v22, 16  ;;  %v8009_v50 = vsel %vm6941_vm6, %v5012_v3, %v5013_v49  ;;  %v4350_v59 = vshll.u32 %v6019_v60, 16  ;;  %v6415_v7 = vpop.f32.mrf.mxu0  ;;  %v6021_v3 = vld [vmem:[%s6882_s3 + $0x94] sm:$0xf] }
 0x128   : > { %v4333_v46 = vrot.slane %v4331_v17, 4  ;;  %v6128_v51 = vrot.slane %v6098_v31, 9  ;;  %v4324_v62 = vrot.slane %v4323_v57, 4  ;;  %v6144_v35 = vcombine.low %v7994_v21, %v8009_v50  ;;  %v6382_v27 = vpop.f32.mrf.mxu1  ;;  %v6105_v21 = vld [vmem:[%s6882_s3 + $0xa0] sm:$0xf] }
 0x129   : > { %v4336_v10 = vrot.slane %v4334_v32, 5  ;;  %v4342_v30 = vrot.slane %v4340_v37, 5  ;;  %v1249_v5 = vadd.f32 %v6381_v34, %v7505_v39  ;;  %v4346_v43 = vrot.slane %v4344_v13, 4  ;;  %v1705_v0 = vpop.f32.mrf.mxu0  ;;  %v6022_v13 = vld [vmem:[%s6882_s3 + $0x98] sm:$0x1]  ;;  %v8612_v34 = vld [vmem:[#allocation6_spill] sm:$0xff] }
 0x12a   : > { %v4352_v16 = vrot.slane %v4350_v59, 5  ;;  %v5017_v58 = vrot.slane %v6099_v8, 5  ;;  %v4329_v18 = vsel %vm6955_vm7, %v4324_v62, %v4328_v48  ;;  %v5020_v60 = vrot.slane %v6100_v4, 5  ;;  %v6101_v59 = vld [vmem:[%s6882_s3 + $0x90] sm:$0xe] }
 0x12b   : > { %v4337_v22 = vor.u32 %v4336_v10, %v4333_v46  ;;  %v4355_v31 = vshrl.u32 %v6020_v23, 16  ;;  %v6047_v49 = vcombine.low %v4319_v25, %v4329_v18  ;;  %v8022_v39 = vadd.f32 %v6415_v7, %v1249_v5  ;;  %v6103_v10 = vld [vmem:[%s6882_s3 + $0x98] sm:$0x1]  ;;  %v6106_v50 = vld [vmem:[%s6882_s3 + $0xa4] sm:$0x1] }
 0x12c   : > { %v4347_v17 = vor.u32 %v4346_v43, %v4342_v30  ;;  %v8026_v8 = vsel %vm6941_vm6, %v6128_v51, %v5017_v58  ;;  %v5019_v57 = vrot.slane %v5017_v58, 4  ;;  %v1247_v11 = vadd.f32 %v1136_v56, %v7529_v53 }
 0x12d   : > { %6610 = vmatmul.mubr.msk.bf16.gmra.mxu0 %vm256_vm1, %v6141_v28  ;;  %v4338_v48 = vrot.slane %v4337_v22, 4  ;;  %v6416_v28 = vpop.f32.mrf.mxu0  ;;  %v4357_v25 = vrot.slane %v4355_v31, 4  ;;  %v1250_v37 = vadd.f32 %v6382_v27, %v7550_v6  ;;  %v4358_v54 = vshll.u32 %v6020_v23, 16  ;;  %v6102_v6 = vld [vmem:[%s6882_s3 + $0x94] sm:$0xf] }
 0x12e   : > { %6613 = vmatprep.mubr.msk.bf16.mxu0 %vm256_vm1, %v6142_v12  ;;  %6580 = vmatmul.mubr.msk.bf16.gmra.mxu1 %vm256_vm1, %v6046_v52  ;;  %v4348_v32 = vrot.slane %v4347_v17, 4  ;;  %v4364_v2 = vshll.u32 %v6021_v3, 16  ;;  %v8041_v12 = vsel %vm6941_vm6, %v5019_v57, %v5020_v60  ;;  %v8043_v4 = vadd.f32 %v1705_v0, %v1247_v11  ;;  %v1139_v52 = vpop.f32.mrf.mxu1 }
 0x12f   : > { %6583 = vmatprep.mubr.msk.bf16.mxu1 %vm256_vm1, %v6047_v49  ;;  %v4343_v53 = vsel %vm6955_vm7, %v4338_v48, %v4342_v30  ;;  %v4368_v46 = vshrl.u32 %v6021_v3, 16  ;;  %v6145_v23 = vcombine.low %v8026_v8, %v8041_v12  ;;  %v8051_v62 = vadd.f32 %v6416_v28, %v1250_v37  ;;  %v6023_v30 = vld [vmem:[%s6882_s3 + $0x9c] sm:$0xf]  ;;  %v1708_v43 = vpop.f32.mrf.mxu0  ;;  %v6024_v3 = vld [vmem:[%s6882_s3 + $0xa0] sm:$0xf] }
 0x130   : > { %v4353_v51 = vsel %vm6955_vm7, %v4348_v32, %v4352_v16  ;;  %v1248_v7 = vadd.f32 %v1139_v52, %v8612_v34  ;;  %v4360_v58 = vrot.slane %v4358_v54, 5  ;;  %v4366_v18 = vrot.slane %v4364_v2, 5  ;;  %v6025_v28 = vld [vmem:[%s6882_s3 + $0xa4] sm:$0x1]  ;;  %v6104_v54 = vld [vmem:[%s6882_s3 + $0x9c] sm:$0xe] }
 0x131   : > { %v6048_v5 = vcombine.low %v4343_v53, %v4353_v51  ;;  %v4370_v22 = vrot.slane %v4368_v46, 4  ;;  %v4374_v56 = vshll.u32 %v6022_v13, 16  ;;  %v6129_v0 = vrot.slane %v6101_v59, 9  ;;  %v6385_v13 = vpop.f32.mrf.mxu1  ;;  %v6419_v45 = vpop.f32.mrf.mxu0  ;;  %v8613_v53 = vld [vmem:[#allocation7_spill] sm:$0xff] }
 0x132   : > { %v8056_v60 = vadd.f32 %v1708_v43, %v1248_v7  ;;  %v5024_v16 = vrot.slane %v6102_v6, 5  ;;  %v4361_v31 = vor.u32 %v4360_v58, %v4357_v25  ;;  %v5027_v17 = vrot.slane %v6103_v10, 5 }
 0x133   : > { %v4371_v49 = vor.u32 %v4370_v22, %v4366_v18  ;;  %v4379_v48 = vshrl.u32 %v6023_v30, 16  ;;  %v4376_v57 = vrot.slane %v4374_v56, 5  ;;  %v4382_v32 = vshll.u32 %v6023_v30, 16  ;;  %v1152_v7 = vpop.f32.mrf.mxu1  ;;  %v1721_v10 = vpop.f32.mrf.mxu0  ;;  %v6026_v22 = vld [vmem:[%s6882_s3 + $0xa8] sm:$0xf] }
 0x134   : > { %v5025_v11 = vsel %vm6941_vm6, %v6129_v0, %v5024_v16  ;;  %v5026_v27 = vrot.slane %v5024_v16, 4  ;;  %v4362_v25 = vrot.slane %v4361_v31, 4  ;;  %v1253_v52 = vadd.f32 %v6385_v13, %v8613_v53  ;;  %v6027_v13 = vld [vmem:[%s6882_s3 + $0xac] sm:$0xf]  ;;  %v6028_v53 = vld [vmem:[%s6882_s3 + $0xb0] sm:$0x1] }
 0x135   : > { %6614 = vmatmul.mubr.msk.bf16.gmra.mxu0 %vm256_vm1, %v6143_v38  ;;  %v4372_v37 = vrot.slane %v4371_v49, 4  ;;  %v4381_v24 = vrot.slane %v4379_v48, 4  ;;  %v4388_v38 = vshll.u32 %v6024_v3, 16  ;;  %v4384_v46 = vrot.slane %v4382_v32, 5  ;;  %v6386_v31 = vpop.f32.mrf.mxu1  ;;  %v8614_v48 = vld [vmem:[#allocation8_spill] sm:$0xff] }
 0x136   : > { %6617 = vmatprep.mubr.msk.bf16.mxu0 %vm256_vm1, %v6144_v35  ;;  %6584 = vmatmul.mubr.msk.bf16.gmra.mxu1 %vm256_vm1, %v6048_v5  ;;  %v5028_v2 = vsel %vm6941_vm6, %v5026_v27, %v5027_v17  ;;  %v4392_v59 = vshrl.u32 %v6024_v3, 16  ;;  %v4367_v35 = vsel %vm6955_vm7, %v4362_v25, %v4366_v18  ;;  %v8081_v5 = vadd.f32 %v6419_v45, %v1253_v52  ;;  %v6420_v18 = vpop.f32.mrf.mxu0 }
 0x137   : > { %v4377_v6 = vsel %vm6955_vm7, %v4372_v37, %v4376_v57  ;;  %v6146_v51 = vcombine.low %v5025_v11, %v5028_v2  ;;  %v4390_v34 = vrot.slane %v4388_v38, 5  ;;  %v4385_v43 = vor.u32 %v4384_v46, %v4381_v24  ;;  %v8615_v11 = vld [vmem:[#allocation9_spill] sm:$0xff]  ;;  %v8616_v46 = vld [vmem:[#allocation10_spill] sm:$0xff] }
 0x138   : > { %v6049_v30 = vcombine.low %v4367_v35, %v4377_v6  ;;  %v4394_v58 = vrot.slane %v4392_v59, 4  ;;  %v4398_v56 = vshll.u32 %v6025_v28, 16  ;;  %v6130_v0 = vrot.slane %v6104_v54, 9  ;;  %v1155_v28 = vpop.f32.mrf.mxu1  ;;  %v1724_v12 = vpop.f32.mrf.mxu0 }
 0x139   : > { %v5031_v16 = vrot.slane %v6105_v21, 5  ;;  %v5034_v3 = vrot.slane %v6106_v50, 5  ;;  %v4386_v49 = vrot.slane %v4385_v43, 4  ;;  %v1251_v57 = vadd.f32 %v1152_v7, %v8614_v48  ;;  %v6107_v21 = vld [vmem:[%s6882_s3 + $0xa8] sm:$0xe] }
 0x13a   : > { %6587 = vmatprep.mubr.msk.bf16.mxu1 %vm256_vm1, %v6049_v30  ;;  %v4395_v17 = vor.u32 %v4394_v58, %v4390_v34  ;;  %v1254_v27 = vadd.f32 %v6386_v31, %v8615_v11  ;;  %v4400_v32 = vrot.slane %v4398_v56, 5  ;;  %v4403_v45 = vshrl.u32 %v6026_v22, 16  ;;  %v6108_v50 = vld [vmem:[%s6882_s3 + $0xac] sm:$0xf]  ;;  %v6029_v30 = vld [vmem:[%s6882_s3 + $0xb4] sm:$0xf]  ;;  %v6389_v48 = vpop.f32.mrf.mxu1 }
 0x13b   : > { %v5032_v25 = vsel %vm6941_vm6, %v6130_v0, %v5031_v16  ;;  %v5033_v37 = vrot.slane %v5031_v16, 4  ;;  %v4391_v24 = vsel %vm6955_vm7, %v4386_v49, %v4390_v34  ;;  %v8096_v54 = vadd.f32 %v1721_v10, %v1251_v57  ;;  %v6109_v10 = vld [vmem:[%s6882_s3 + $0xb0] sm:$0x1]  ;;  %v6030_v31 = vld [vmem:[%s6882_s3 + $0xb8] sm:$0xf]  ;;  %v6423_v57 = vpop.f32.mrf.mxu0 }
 0x13c   : > { %v4396_v38 = vrot.slane %v4395_v17, 4  ;;  %v8098_v2 = vadd.f32 %v6420_v18, %v1254_v27  ;;  %v1252_v8 = vadd.f32 %v1155_v28, %v8616_v46  ;;  %v4406_v59 = vshll.u32 %v6026_v22, 16  ;;  %v1168_v46 = vpop.f32.mrf.mxu1 }
 0x13d   : > { %6618 = vmatmul.mubr.msk.bf16.gmra.mxu0 %vm256_vm1, %v6145_v23  ;;  %v5035_v52 = vsel %vm6941_vm6, %v5033_v37, %v5034_v3  ;;  %v4405_v23 = vrot.slane %v4403_v45, 4  ;;  %v4412_v34 = vshll.u32 %v6027_v13, 16  ;;  %v4416_v7 = vshrl.u32 %v6027_v13, 16  ;;  %v8617_v37 = vld [vmem:[#allocation11_spill] sm:$0xff]  ;;  %v6031_v13 = vld [vmem:[%s6882_s3 + $0xbc] sm:$0x1] }
 0x13e   : > { %6621 = vmatprep.mubr.msk.bf16.mxu0 %vm256_vm1, %v6146_v51  ;;  %v4401_v35 = vsel %vm6955_vm7, %v4396_v38, %v4400_v32  ;;  %v6147_v6 = vcombine.low %v5032_v25, %v5035_v52  ;;  %v8111_v43 = vadd.f32 %v1724_v12, %v1252_v8  ;;  %v4408_v58 = vrot.slane %v4406_v59, 5  ;;  %v6110_v52 = vld [vmem:[%s6882_s3 + $0xb4] sm:$0xe]  ;;  %v1737_v8 = vpop.f32.mrf.mxu0 }
 0x13f   : > { %v6050_v51 = vcombine.low %v4391_v24, %v4401_v35  ;;  %v4422_v56 = vshll.u32 %v6028_v53, 16  ;;  %v4414_v0 = vrot.slane %v4412_v34, 5  ;;  %v4418_v16 = vrot.slane %v4416_v7, 4  ;;  %v6112_v35 = vld [vmem:[%s6882_s3 + $0xbc] sm:$0x1] }
 0x140   : > { %v6131_v22 = vrot.slane %v6107_v21, 9  ;;  %v5038_v3 = vrot.slane %v6108_v50, 5  ;;  %v4409_v18 = vor.u32 %v4408_v58, %v4405_v23  ;;  %v5041_v17 = vrot.slane %v6109_v10, 5  ;;  %v6111_v50 = vld [vmem:[%s6882_s3 + $0xb8] sm:$0xf]  ;;  %v6424_v58 = vpop.f32.mrf.mxu0 }
 0x141   : > { %6588 = vmatmul.mubr.msk.bf16.gmra.mxu1 %vm256_vm1, %v6050_v51  ;;  %v4424_v49 = vrot.slane %v4422_v56, 5  ;;  %v4427_v11 = vshrl.u32 %v6029_v30, 16  ;;  %v4419_v27 = vor.u32 %v4418_v16, %v4414_v0  ;;  %v1257_v28 = vadd.f32 %v6389_v48, %v8617_v37  ;;  %v6390_v51 = vpop.f32.mrf.mxu1  ;;  %v6032_v48 = vld [vmem:[%s6882_s3 + $0xc0] sm:$0xf] }
 0x142   : > { %v5039_v32 = vsel %vm6941_vm6, %v6131_v22, %v5038_v3  ;;  %v5040_v25 = vrot.slane %v5038_v3, 4  ;;  %v4410_v45 = vrot.slane %v4409_v18, 4  ;;  %v4430_v38 = vshll.u32 %v6029_v30, 16 }
 0x143   : > { %v4429_v24 = vrot.slane %v4427_v11, 4  ;;  %v4436_v53 = vshll.u32 %v6030_v31, 16  ;;  %v4420_v12 = vrot.slane %v4419_v27, 4  ;;  %v8123_v59 = vadd.f32 %v6423_v57, %v1257_v28  ;;  %v8618_v27 = vld [vmem:[#allocation12_spill] sm:$0xff] }
 0x144   : > { %v5042_v23 = vsel %vm6941_vm6, %v5040_v25, %v5041_v17  ;;  %v4440_v21 = vshrl.u32 %v6030_v31, 16  ;;  %v4415_v34 = vsel %vm6955_vm7, %v4410_v45, %v4414_v0  ;;  %v4432_v10 = vrot.slane %v4430_v38, 5  ;;  %v1171_v0 = vpop.f32.mrf.mxu1  ;;  %v8619_v25 = vld [vmem:[#allocation13_spill] sm:$0xff]  ;;  %v8620_v45 = vld [vmem:[#allocation14_spill] sm:$0xff]  ;;  %v1740_v38 = vpop.f32.mrf.mxu0 }
 0x145   : > { %6622 = vmatmul.mubr.msk.bf16.gmra.mxu0 %vm256_vm1, %v6147_v6  ;;  %v6148_v7 = vcombine.low %v5039_v32, %v5042_v23  ;;  %v4438_v30 = vrot.slane %v4436_v53, 5  ;;  %v4425_v6 = vsel %vm6955_vm7, %v4420_v12, %v4424_v49  ;;  %v4446_v16 = vshll.u32 %v6031_v13, 16  ;;  %v6033_v53 = vld [vmem:[%s6882_s3 + $0xc4] sm:$0xf] }
 0x146   : > { %v4442_v56 = vrot.slane %v4440_v21, 4  ;;  %v6132_v22 = vrot.slane %v6110_v52, 9  ;;  %v6051_v3 = vcombine.low %v4415_v34, %v4425_v6  ;;  %v4433_v31 = vor.u32 %v4432_v10, %v4429_v24  ;;  %v6115_v6 = vld [vmem:[%s6882_s3 + $0xc8] sm:$0x1] }
 0x147   : > { %6625 = vmatprep.mubr.msk.bf16.mxu0 %vm256_vm1, %v6148_v7  ;;  %v5045_v18 = vrot.slane %v6111_v50, 5  ;;  %v5048_v17 = vrot.slane %v6112_v35, 5  ;;  %v4448_v11 = vrot.slane %v4446_v16, 5  ;;  %v1255_v32 = vadd.f32 %v1168_v46, %v8618_v27  ;;  %v6034_v46 = vld [vmem:[%s6882_s3 + $0xc8] sm:$0x1] }
 0x148   : > { %v4443_v57 = vor.u32 %v4442_v56, %v4438_v30  ;;  %v1258_v49 = vadd.f32 %v6390_v51, %v8619_v25  ;;  %6591 = vmatprep.mubr.msk.bf16.mxu1 %vm256_vm1, %v6051_v3  ;;  %v4434_v37 = vrot.slane %v4433_v31, 4  ;;  %v1256_v24 = vadd.f32 %v1171_v0, %v8620_v45  ;;  %v6113_v50 = vld [vmem:[%s6882_s3 + $0xc0] sm:$0xe]  ;;  %v6114_v51 = vld [vmem:[%s6882_s3 + $0xc4] sm:$0xf]  ;;  %v6427_v0 = vpop.f32.mrf.mxu0 }
 0x149   : > { %v5046_v28 = vsel %vm6941_vm6, %v6132_v22, %v5045_v18  ;;  %v5047_v13 = vrot.slane %v5045_v18, 4  ;;  %v8140_v12 = vadd.f32 %v1737_v8, %v1255_v32  ;;  %v4451_v21 = vshrl.u32 %v6032_v48, 16  ;;  %v6393_v18 = vpop.f32.mrf.mxu1  ;;  %v6036_v25 = vld [vmem:[%s6882_s3 + $0xd0] sm:$0xf] }
 0x14a   : > { %v4444_v52 = vrot.slane %v4443_v57, 4  ;;  %v8142_v23 = vadd.f32 %v6424_v58, %v1258_v49  ;;  %v4439_v35 = vsel %vm6955_vm7, %v4434_v37, %v4438_v30  ;;  %v8150_v7 = vadd.f32 %v1740_v38, %v1256_v24  ;;  %v6035_v57 = vld [vmem:[%s6882_s3 + $0xcc] sm:$0xf]  ;;  %v1753_v24 = vpop.f32.mrf.mxu0 }
 0x14b   : > { %v5049_v34 = vsel %vm6941_vm6, %v5047_v13, %v5048_v17  ;;  %v4454_v10 = vshll.u32 %v6032_v48, 16  ;;  %v4453_v56 = vrot.slane %v4451_v21, 4  ;;  %v4460_v16 = vshll.u32 %v6033_v53, 16  ;;  %v1184_v45 = vpop.f32.mrf.mxu1 }
 0x14c   : > { %v4449_v8 = vsel %vm6955_vm7, %v4444_v52, %v4448_v11  ;;  %v6149_v58 = vcombine.low %v5046_v28, %v5049_v34  ;;  %v4464_v31 = vshrl.u32 %v6033_v53, 16  ;;  %v4470_v30 = vshll.u32 %v6034_v46, 16  ;;  %v8621_v28 = vld [vmem:[#allocation15_spill] sm:$0xff]  ;;  %v6037_v52 = vld [vmem:[%s6882_s3 + $0xd4] sm:$0x1] }
 0x14d   : > { %v6052_v22 = vcombine.low %v4439_v35, %v4449_v8  ;;  %v4456_v3 = vrot.slane %v4454_v10, 5  ;;  %v4462_v17 = vrot.slane %v4460_v16, 5  ;;  %v6133_v48 = vrot.slane %v6113_v50, 9  ;;  %v6394_v8 = vpop.f32.mrf.mxu1 }
 0x14e   : > { %6626 = vmatmul.mubr.msk.bf16.gmra.mxu0 %vm256_vm1, %v6149_v58  ;;  %v5052_v27 = vrot.slane %v6114_v51, 5  ;;  %v5055_v32 = vrot.slane %v6115_v6, 5  ;;  %v4466_v49 = vrot.slane %v4464_v31, 4  ;;  %v4472_v37 = vrot.slane %v4470_v30, 5  ;;  %v6116_v51 = vld [vmem:[%s6882_s3 + $0xcc] sm:$0xe]  ;;  %v6428_v58 = vpop.f32.mrf.mxu0 }
 0x14f   : > { %6592 = vmatmul.mubr.msk.bf16.gmra.mxu1 %vm256_vm1, %v6052_v22  ;;  %v4457_v11 = vor.u32 %v4456_v3, %v4453_v56  ;;  %v1261_v13 = vadd.f32 %v6393_v18, %v8621_v28  ;;  %v4475_v46 = vshrl.u32 %v6035_v57, 16  ;;  %v4478_v21 = vshll.u32 %v6035_v57, 16  ;;  %v6117_v6 = vld [vmem:[%s6882_s3 + $0xd0] sm:$0xf]  ;;  %v6118_v31 = vld [vmem:[%s6882_s3 + $0xd4] sm:$0x1] }
 0x150   : > { %v5053_v38 = vsel %vm6941_vm6, %v6133_v48, %v5052_v27  ;;  %v5054_v53 = vrot.slane %v5052_v27, 4  ;;  %v4467_v35 = vor.u32 %v4466_v49, %v4462_v17  ;;  %v4484_v10 = vshll.u32 %v6036_v25, 16 }
 0x151   : > { %v4458_v50 = vrot.slane %v4457_v11, 4  ;;  %v8164_v34 = vadd.f32 %v6427_v0, %v1261_v13  ;;  %v4477_v16 = vrot.slane %v4475_v46, 4  ;;  %v4480_v22 = vrot.slane %v4478_v21, 5  ;;  %v1187_v0 = vpop.f32.mrf.mxu1  ;;  %v1756_v13 = vpop.f32.mrf.mxu0 }
 0x152   : > { %v5056_v56 = vsel %vm6941_vm6, %v5054_v53, %v5055_v32  ;;  %v4488_v3 = vshrl.u32 %v6036_v25, 16  ;;  %v4468_v18 = vrot.slane %v4467_v35, 4  ;;  %v4486_v48 = vrot.slane %v4484_v10, 5  ;;  %v8623_v53 = vld [vmem:[#allocation16_spill] sm:$0xff] }
 0x153   : > { %8622 = vst [vmem:[#allocation6_spill] sm:$0xff] %v8164_v34  ;;  %v4463_v30 = vsel %vm6955_vm7, %v4458_v50, %v4462_v17  ;;  %v6150_v57 = vcombine.low %v5053_v38, %v5056_v56  ;;  %v4481_v27 = vor.u32 %v4480_v22, %v4477_v16  ;;  %v4494_v49 = vshll.u32 %v6037_v52, 16  ;;  %v6433_v21 = vpop.f32.mrf.mxu1  ;;  %v8624_v56 = vld [vmem:[#allocation17_spill] sm:$0xff]  ;;  %v8625_v22 = vld [vmem:[#allocation18_spill] sm:$0xff] }
 0x154   : > { %v4490_v11 = vrot.slane %v4488_v3, 4  ;;  %v6134_v28 = vrot.slane %v6116_v51, 9  ;;  %v4473_v34 = vsel %vm6955_vm7, %v4468_v18, %v4472_v37  ;;  %v5059_v32 = vrot.slane %v6117_v6, 5 }
 0x155   : > { %6629 = vmatprep.mubr.msk.bf16.mxu0 %vm256_vm1, %v6150_v57  ;;  %v5062_v25 = vrot.slane %v6118_v31, 5  ;;  %v1259_v46 = vadd.f32 %v1184_v45, %v8623_v53  ;;  %v6053_v17 = vcombine.low %v4463_v30, %v4473_v34  ;;  %v4482_v50 = vrot.slane %v4481_v27, 4  ;;  %v2064_v37 = vpop.f32.mrf.mxu1  ;;  %v6467_v31 = vpop.f32.mrf.mxu0 }
 0x156   : > { %v4491_v38 = vor.u32 %v4490_v11, %v4486_v48  ;;  %v4496_v35 = vrot.slane %v4494_v49, 5  ;;  %v5060_v10 = vsel %vm6941_vm6, %v6134_v28, %v5059_v32  ;;  %v5061_v52 = vrot.slane %v5059_v32, 4 }
 0x157   : > { %v8179_v51 = vadd.f32 %v1753_v24, %v1259_v46  ;;  %v1262_v16 = vadd.f32 %v6394_v8, %v8624_v56  ;;  %6595 = vmatprep.mubr.msk.bf16.mxu1 %vm256_vm1, %v6053_v17  ;;  %v4487_v6 = vsel %vm6955_vm7, %v4482_v50, %v4486_v48  ;;  %v1260_v34 = vadd.f32 %v1187_v0, %v8625_v22  ;;  %v6434_v8 = vpop.f32.mrf.mxu1  ;;  %v2854_v0 = vpop.f32.mrf.mxu0 }
 0x158   : > { %v4492_v45 = vrot.slane %v4491_v38, 4  ;;  %v2225_v3 = vadd.f32 %v6433_v21, %v7786_v36  ;;  %v5063_v30 = vsel %vm6941_vm6, %v5061_v52, %v5062_v25  ;;  %v2223_v24 = vadd.f32 %v2064_v37, %v7795_v41 }
 0x159   : > { %v8189_v18 = vadd.f32 %v6428_v58, %v1262_v16  ;;  %v6151_v27 = vcombine.low %v5060_v10, %v5063_v30  ;;  %v8194_v11 = vadd.f32 %v1756_v13, %v1260_v34  ;;  %v2226_v42 = vadd.f32 %v6434_v8, %v7807_v63  ;;  %v2067_v28 = vpop.f32.mrf.mxu1  ;;  %v6468_v58 = vpop.f32.mrf.mxu0 }
 0x15a   : > { %v4497_v57 = vsel %vm6955_vm7, %v4492_v45, %v4496_v35  ;;  %v8196_v48 = vadd.f32 %v6467_v31, %v2225_v3  ;;  %v8198_v36 = vadd.f32 %v2854_v0, %v2223_v24  ;;  %v2224_v41 = vadd.f32 %v2067_v28, %v7824_v29 }
 0x15b   : > { %v6054_v49 = vcombine.low %v4487_v6, %v4497_v57  ;;  %6630 = vmatmul.mubr.msk.bf16.gmra.mxu0 %vm256_vm1, %v6151_v27  ;;  %v8204_v55 = vadd.f32 %v6468_v58, %v2226_v42  ;;  %v6437_v13 = vpop.f32.mrf.mxu1  ;;  %v2857_v32 = vpop.f32.mrf.mxu0 }
 0x15c   : > { %v2229_v25 = vadd.f32 %v6437_v13, %v7832_v47  ;;  %v8207_v53 = vadd.f32 %v2857_v32, %v2224_v41 }
 0x15d   : > { %6596 = vmatmul.mubr.msk.bf16.gmra.mxu1 %vm256_vm1, %v6054_v49  ;;  %v2080_v46 = vpop.f32.mrf.mxu1  ;;  %v6471_v21 = vpop.f32.mrf.mxu0 }
 0x15e   : > { %v2227_v63 = vadd.f32 %v2080_v46, %v7843_v40  ;;  %v8210_v17 = vadd.f32 %v6471_v21, %v2229_v25 }
 0x15f   : > { %v6438_v50 = vpop.f32.mrf.mxu1  ;;  %v2870_v38 = vpop.f32.mrf.mxu0 }
 0x160   : > { %v2230_v29 = vadd.f32 %v6438_v50, %v7854_v44  ;;  %v8213_v35 = vadd.f32 %v2870_v38, %v2227_v63 }
 0x161   : > { %v2083_v10 = vpop.f32.mrf.mxu1  ;;  %v6472_v52 = vpop.f32.mrf.mxu0 }
 0x162   : > { %v2228_v56 = vadd.f32 %v2083_v10, %v7869_v33  ;;  %v8216_v16 = vadd.f32 %v6472_v52, %v2230_v29 }
 0x163   : > { %v6441_v47 = vpop.f32.mrf.mxu1  ;;  %v2873_v37 = vpop.f32.mrf.mxu0 }
 0x164   : > { %v2233_v6 = vadd.f32 %v6441_v47, %v7894_v61  ;;  %v8219_v45 = vadd.f32 %v2873_v37, %v2228_v56 }
 0x165   : > { %v2096_v40 = vpop.f32.mrf.mxu1  ;;  %v6475_v3 = vpop.f32.mrf.mxu0 }
 0x166   : > { %v2231_v22 = vadd.f32 %v2096_v40, %v7908_v14  ;;  %v8223_v31 = vadd.f32 %v6475_v3, %v2233_v6 }
 0x167   : > { %v6442_v34 = vpop.f32.mrf.mxu1  ;;  %v2886_v24 = vpop.f32.mrf.mxu0 }
 0x168   : > { %v2234_v44 = vadd.f32 %v6442_v34, %v7914_v20  ;;  %v8226_v8 = vadd.f32 %v2886_v24, %v2231_v22 }
 0x169   : > { %v2099_v30 = vpop.f32.mrf.mxu1  ;;  %v6476_v27 = vpop.f32.mrf.mxu0 }
 0x16a   : > { %v2232_v33 = vadd.f32 %v2099_v30, %v7929_v1  ;;  %v8229_v0 = vadd.f32 %v6476_v27, %v2234_v44 }
 0x16b   : > { %v6445_v57 = vpop.f32.mrf.mxu1  ;;  %v2889_v14 = vpop.f32.mrf.mxu0 }
 0x16c   : > { %v2237_v61 = vadd.f32 %v6445_v57, %v7959_v15  ;;  %v8232_v28 = vadd.f32 %v2889_v14, %v2232_v33 }
 0x16d   : > { %v2112_v49 = vpop.f32.mrf.mxu1  ;;  %v6479_v58 = vpop.f32.mrf.mxu0 }
 0x16e   : > { %v2235_v42 = vadd.f32 %v2112_v49, %v7972_v19  ;;  %v8235_v13 = vadd.f32 %v6479_v58, %v2237_v61 }
 0x16f   : > { %v6446_v20 = vpop.f32.mrf.mxu1  ;;  %v2902_v32 = vpop.f32.mrf.mxu0 }
 0x170   : > { %v2238_v41 = vadd.f32 %v6446_v20, %v7983_v26  ;;  %v8238_v46 = vadd.f32 %v2902_v32, %v2235_v42 }
 0x171   : > { %v2115_v1 = vpop.f32.mrf.mxu1  ;;  %v6480_v21 = vpop.f32.mrf.mxu0 }
 0x172   : > { %v2236_v25 = vadd.f32 %v2115_v1, %v7999_v9  ;;  %v8241_v50 = vadd.f32 %v6480_v21, %v2238_v41 }
 0x173   : > { %v6449_v15 = vpop.f32.mrf.mxu1  ;;  %v2905_v38 = vpop.f32.mrf.mxu0 }
 0x174   : > { %v2241_v63 = vadd.f32 %v6449_v15, %v8022_v39  ;;  %8626 = vst [vmem:[#allocation7_spill] sm:$0xff] %v8241_v50  ;;  %v8244_v10 = vadd.f32 %v2905_v38, %v2236_v25 }
 0x175   : > { %v2128_v19 = vpop.f32.mrf.mxu1  ;;  %v6483_v52 = vpop.f32.mrf.mxu0 }
 0x176   : > { %v2239_v29 = vadd.f32 %v2128_v19, %v8043_v4  ;;  %8627 = vst [vmem:[#allocation8_spill] sm:$0xff] %v8244_v10  ;;  %v8247_v47 = vadd.f32 %v6483_v52, %v2241_v63 }
 0x177   : > { %v6450_v26 = vpop.f32.mrf.mxu1  ;;  %v2918_v37 = vpop.f32.mrf.mxu0 }
 0x178   : > { %v2242_v56 = vadd.f32 %v6450_v26, %v8051_v62  ;;  %8628 = vst [vmem:[#allocation9_spill] sm:$0xff] %v8247_v47  ;;  %v8250_v40 = vadd.f32 %v2918_v37, %v2239_v29 }
 0x179   : > { %v2131_v9 = vpop.f32.mrf.mxu1  ;;  %v6484_v22 = vpop.f32.mrf.mxu0 }
 0x17a   : > { %v2240_v6 = vadd.f32 %v2131_v9, %v8056_v60  ;;  %8629 = vst [vmem:[#allocation10_spill] sm:$0xff] %v8250_v40  ;;  %v8253_v3 = vadd.f32 %v6484_v22, %v2242_v56 }
 0x17b   : > { %v6453_v39 = vpop.f32.mrf.mxu1  ;;  %v2921_v44 = vpop.f32.mrf.mxu0 }
 0x17c   : > { %v2245_v34 = vadd.f32 %v6453_v39, %v8081_v5  ;;  %8630 = vst [vmem:[#allocation11_spill] sm:$0xff] %v8253_v3  ;;  %v8256_v24 = vadd.f32 %v2921_v44, %v2240_v6 }
 0x17d   : > { %v2144_v4 = vpop.f32.mrf.mxu1  ;;  %v6487_v33 = vpop.f32.mrf.mxu0 }
 0x17e   : > { %v2243_v30 = vadd.f32 %v2144_v4, %v8096_v54  ;;  %8631 = vst [vmem:[#allocation12_spill] sm:$0xff] %v8256_v24  ;;  %v8259_v27 = vadd.f32 %v6487_v33, %v2245_v34 }
 0x17f   : > { %v6454_v62 = vpop.f32.mrf.mxu1  ;;  %v2934_v61 = vpop.f32.mrf.mxu0 }
 0x180   : > { %v2246_v57 = vadd.f32 %v6454_v62, %v8098_v2  ;;  %8632 = vst [vmem:[#allocation13_spill] sm:$0xff] %v8259_v27  ;;  %v8262_v14 = vadd.f32 %v2934_v61, %v2243_v30 }
 0x181   : > { %v2147_v60 = vpop.f32.mrf.mxu1  ;;  %v6488_v42 = vpop.f32.mrf.mxu0 }
 0x182   : > { %v2244_v49 = vadd.f32 %v2147_v60, %v8111_v43  ;;  %8633 = vst [vmem:[#allocation14_spill] sm:$0xff] %v8262_v14  ;;  %v8265_v58 = vadd.f32 %v6488_v42, %v2246_v57 }
 0x183   : > { %v6457_v5 = vpop.f32.mrf.mxu1  ;;  %v2937_v41 = vpop.f32.mrf.mxu0 }
 0x184   : > { %v2249_v20 = vadd.f32 %v6457_v5, %v8123_v59  ;;  %8634 = vst [vmem:[#allocation15_spill] sm:$0xff] %v8265_v58  ;;  %v8268_v32 = vadd.f32 %v2937_v41, %v2244_v49  ;;  %v8636_v59 = vld [vmem:[#allocation6_spill] sm:$0xff] }
 0x185   : > { %v2160_v54 = vpop.f32.mrf.mxu1  ;;  %v6491_v21 = vpop.f32.mrf.mxu0 }
 0x186   : > { %v2247_v1 = vadd.f32 %v2160_v54, %v8140_v12  ;;  %8635 = vst [vmem:[#allocation16_spill] sm:$0xff] %v8268_v32  ;;  %v8272_v63 = vadd.f32 %v6491_v21, %v2249_v20 }
 0x187   : > { %v6458_v2 = vpop.f32.mrf.mxu1  ;;  %v2950_v38 = vpop.f32.mrf.mxu0 }
 0x188   : > { %v2250_v25 = vadd.f32 %v6458_v2, %v8142_v23  ;;  %v8275_v26 = vadd.f32 %v2950_v38, %v2247_v1 }
 0x189   : > { %v2163_v15 = vpop.f32.mrf.mxu1  ;;  %v6492_v56 = vpop.f32.mrf.mxu0 }
 0x18a   : > { %v2248_v43 = vadd.f32 %v2163_v15, %v8150_v7  ;;  %v8278_v9 = vadd.f32 %v6492_v56, %v2250_v25 }
 0x18b   : > { %v6461_v19 = vpop.f32.mrf.mxu1  ;;  %v2953_v23 = vpop.f32.mrf.mxu0 }
 0x18c   : > { %v2253_v29 = vadd.f32 %v6461_v19, %v8636_v59  ;;  %v8281_v39 = vadd.f32 %v2953_v23, %v2248_v43 }
 0x18d   : > { %v2176_v52 = vpop.f32.mrf.mxu1  ;;  %v6495_v22 = vpop.f32.mrf.mxu0 }
 0x18e   : > { %v2251_v12 = vadd.f32 %v2176_v52, %v8179_v51  ;;  %v8284_v4 = vadd.f32 %v6495_v22, %v2253_v29 }
 0x18f   : > { %v6462_v37 = vpop.f32.mrf.mxu1  ;;  %v2966_v30 = vpop.f32.mrf.mxu0 }
 0x190   : > { %v2254_v6 = vadd.f32 %v6462_v37, %v8189_v18  ;;  %v8288_v62 = vadd.f32 %v2966_v30, %v2251_v12 }
 0x191   : > { %v2179_v7 = vpop.f32.mrf.mxu1  ;;  %v6496_v33 = vpop.f32.mrf.mxu0 }
 0x192   : > { %v2252_v34 = vadd.f32 %v2179_v7, %v8194_v11  ;;  %v8292_v57 = vadd.f32 %v6496_v33, %v2254_v6 }
 0x193   : > { %v8286_v44 = vpop.f32.mrf.mxu1  ;;  %v2969_v18 = vpop.f32.mrf.mxu0 }
 0x194   : > { %v8296_v61 = vadd.f32 %v2969_v18, %v2252_v34 }
 0x195   : > { %v8290_v51 = vpop.f32.mrf.mxu1  ;;  %v8300_v11 = vpop.f32.mrf.mxu0 }
 0x197   : > { %v8294_v60 = vpop.f32.mrf.mxu1  ;;  %v8302_v5 = vpop.f32.mrf.mxu0 }
 0x199   : > { %v8298_v49 = vpop.f32.mrf.mxu1  ;;  %v8306_v20 = vpop.f32.mrf.mxu0 }
 0x19b   : > { %v8304_v42 = vpop.f32.mrf.mxu1  ;;  %v8310_v41 = vpop.f32.mrf.mxu0 }
 0x19d   : > { %v8308_v54 = vpop.f32.mrf.mxu1  ;;  %v8314_v2 = vpop.f32.mrf.mxu0 }
 0x19f   : > { %v8312_v1 = vpop.f32.mrf.mxu1  ;;  %v8318_v15 = vpop.f32.mrf.mxu0 }
 0x1a1   : > { %v8316_v25 = vpop.f32.mrf.mxu1  ;;  %v8322_v43 = vpop.f32.mrf.mxu0 }
 0x1a3   : > { %v8320_v21 = vpop.f32.mrf.mxu1  ;;  %v8326_v38 = vpop.f32.mrf.mxu0 }
 0x1a5   : > { %v8324_v19 = vpop.f32.mrf.mxu1  ;;  %v8330_v29 = vpop.f32.mrf.mxu0 }
 0x1a7   : > { %v8328_v59 = vpop.f32.mrf.mxu1  ;;  %v8334_v56 = vpop.f32.mrf.mxu0 }
 0x1a9   : > { %v8332_v52 = vpop.f32.mrf.mxu1  ;;  %v8338_v37 = vpop.f32.mrf.mxu0 }
 0x1ab   : > { %v8336_v12 = vpop.f32.mrf.mxu1  ;;  %v8342_v6 = vpop.f32.mrf.mxu0 }
 0x1ad   : > { %v8340_v23 = vpop.f32.mrf.mxu1  ;;  %v8346_v22 = vpop.f32.mrf.mxu0 }
 0x1af   : > { %v8344_v7 = vpop.f32.mrf.mxu1  ;;  %v8350_v30 = vpop.f32.mrf.mxu0 }
 0x1b0   : > { %8637 = vst [vmem:[#allocation17_spill] sm:$0xff] %v8344_v7  ;;  %8639 = vst [vmem:[#allocation6_spill] sm:$0xff] %v8350_v30 }
 0x1b1   : > { %v8348_v34 = vpop.f32.mrf.mxu1  ;;  %v8354_v18 = vpop.f32.mrf.mxu0 }
 0x1b2   : > { %8638 = vst [vmem:[#allocation18_spill] sm:$0xff] %v8348_v34  ;;  %8641 = vst [vmem:[#allocation20_spill] sm:$0xff] %v8354_v18 }
 0x1b3   : > { %v8352_v33 = vpop.f32.mrf.mxu1  ;;  %v8358_v58 = vpop.f32.mrf.mxu0 }
 0x1b4   : > { %8640 = vst [vmem:[#allocation19_spill] sm:$0xff] %v8352_v33  ;;  %8643 = vst [vmem:[#allocation22_spill] sm:$0xff] %v8358_v58 }
 0x1b5   : > { %v8356_v32 = vpop.f32.mrf.mxu1  ;;  %v8362_v27 = vpop.f32.mrf.mxu0 }
 0x1b6   : > { %8642 = vst [vmem:[#allocation21_spill] sm:$0xff] %v8356_v32  ;;  %8645 = vst [vmem:[#allocation24_spill] sm:$0xff] %v8362_v27 }
 0x1b7   : > { %v8360_v14 = vpop.f32.mrf.mxu1  ;;  %v8366_v3 = vpop.f32.mrf.mxu0 }
 0x1b8   : > { %8644 = vst [vmem:[#allocation23_spill] sm:$0xff] %v8360_v14  ;;  %8647 = vst [vmem:[#allocation26_spill] sm:$0xff] %v8366_v3 }
 0x1b9   : > { %v8364_v24 = vpop.f32.mrf.mxu1  ;;  %v8370_v47 = vpop.f32.mrf.mxu0 }
 0x1ba   : > { %8646 = vst [vmem:[#allocation25_spill] sm:$0xff] %v8364_v24  ;;  %8649 = vst [vmem:[#allocation28_spill] sm:$0xff] %v8370_v47 }
 0x1bb   : > { %v8368_v40 = vpop.f32.mrf.mxu1  ;;  %v8374_v33 = vpop.f32.mrf.mxu0 }
 0x1bc   : > { %8648 = vst [vmem:[#allocation27_spill] sm:$0xff] %v8368_v40  ;;  %8651 = vst [vmem:[#allocation30_spill] sm:$0xff] %v8374_v33 }
 0x1bd   : > { %v8372_v34 = vpop.f32.mrf.mxu1  ;;  %v8378_v32 = vpop.f32.mrf.mxu0 }
 0x1be   : > { %8650 = vst [vmem:[#allocation29_spill] sm:$0xff] %v8372_v34  ;;  %8653 = vst [vmem:[#allocation32_spill] sm:$0xff] %v8378_v32 }
 0x1bf   : > { %v8376_v18 = vpop.f32.mrf.mxu1  ;;  %v8382_v14 = vpop.f32.mrf.mxu0 }
 0x1c0   : > { %8652 = vst [vmem:[#allocation31_spill] sm:$0xff] %v8376_v18  ;;  %8655 = vst [vmem:[#allocation34_spill] sm:$0xff] %v8382_v14 }
 0x1c1   : > { %v8380_v58 = vpop.f32.mrf.mxu1  ;;  %v8385_v3 = vpop.f32.mrf.mxu0 }
 0x1c2   : > { %8654 = vst [vmem:[#allocation33_spill] sm:$0xff] %v8380_v58 }
 0x1c3   : > { %v8388_v10 = vpop.f32.mrf.mxu0 }
 0x1c4   : > { %8656 = vst [vmem:[#allocation35_spill] sm:$0xff] %v8388_v10 }
 0x1c5   : > { %v6559_v18 = vpop.f32.mrf.mxu0 }
 0x1c6   : > { %v6525_v27 = vpop.f32.mrf.mxu1 }
 0x1c7   : > { %v3605_v24 = vadd.f32 %v6525_v27, %v8272_v63  ;;  %v3939_v14 = vpop.f32.mrf.mxu0 }
 0x1c8   : > { %v3516_v40 = vpop.f32.mrf.mxu1 }
 0x1c9   : > { %v3603_v47 = vadd.f32 %v3516_v40, %v8275_v26  ;;  %v8391_v32 = vadd.f32 %v6559_v18, %v3605_v24  ;;  %v6560_v63 = vpop.f32.mrf.mxu0  ;;  %v3581_v24 = vadd.f32 %v8286_v44, %v8196_v48  ;;  %v3582_v48 = vadd.f32 %v8294_v60, %v8204_v55 }
 0x1ca   : > { %v6526_v34 = vpop.f32.mrf.mxu1  ;;  %v3585_v55 = vadd.f32 %v8304_v42, %v8210_v17 }
 0x1cb   : > { %v3606_v33 = vadd.f32 %v6526_v34, %v8278_v9  ;;  %v8394_v50 = vadd.f32 %v3939_v14, %v3603_v47  ;;  %v3942_v9 = vpop.f32.mrf.mxu0 }
 0x1cc   : > { %v3519_v30 = vpop.f32.mrf.mxu1 }
 0x1cd   : > { %v3604_v58 = vadd.f32 %v3519_v30, %v8281_v39  ;;  %v8397_v26 = vadd.f32 %v6560_v63, %v3606_v33  ;;  %v6563_v47 = vpop.f32.mrf.mxu0  ;;  %v4004_v63 = vadd.f32 %v8300_v11, %v3581_v24  ;;  %v4005_v11 = vadd.f32 %v8306_v20, %v3582_v48 }
 0x1ce   : > { %v6529_v7 = vpop.f32.mrf.mxu1  ;;  %v3586_v20 = vadd.f32 %v8312_v1, %v8216_v16 }
 0x1cf   : > { %v3609_v27 = vadd.f32 %v6529_v7, %v8284_v4  ;;  %v8402_v18 = vadd.f32 %v3942_v9, %v3604_v58  ;;  %v3579_v4 = vadd.f32 %v8290_v51, %v8198_v36  ;;  %v3580_v36 = vadd.f32 %v8298_v49, %v8207_v53 }
 0x1d0   : > { %v3532_v40 = vpop.f32.mrf.mxu1  ;;  %v3583_v53 = vadd.f32 %v8308_v54, %v8213_v35  ;;  %v3584_v54 = vadd.f32 %v8316_v25, %v8219_v45  ;;  %v3587_v45 = vadd.f32 %v8324_v19, %v8226_v8  ;;  %v3588_v8 = vadd.f32 %v8332_v52, %v8232_v28 }
 0x1d1   : > { %v3607_v10 = vadd.f32 %v3532_v40, %v8288_v62  ;;  %v8407_v7 = vadd.f32 %v6563_v47, %v3609_v27  ;;  %v3955_v62 = vpop.f32.mrf.mxu0  ;;  %v4002_v40 = vadd.f32 %v8302_v5, %v3579_v4  ;;  %v4003_v24 = vadd.f32 %v8310_v41, %v3580_v36 }
 0x1d2   : > { %v6530_v34 = vpop.f32.mrf.mxu1  ;;  %v4008_v4 = vadd.f32 %v8314_v2, %v3585_v55  ;;  %v4006_v35 = vadd.f32 %v8318_v15, %v3583_v53  ;;  %v4010_v55 = vadd.f32 %v8334_v56, %v3587_v45  ;;  %v3591_v28 = vadd.f32 %v8340_v23, %v8238_v46  ;;  %v8661_v46 = vld [vmem:[#allocation18_spill] sm:$0xff] }
 0x1d3   : > { %v3610_v39 = vadd.f32 %v6530_v34, %v8292_v57  ;;  %v8414_v58 = vadd.f32 %v3955_v62, %v3607_v10  ;;  %v6564_v44 = vpop.f32.mrf.mxu0  ;;  %v8665_v45 = vld [vmem:[#allocation22_spill] sm:$0xff] }
 0x1d4   : > { %v3535_v14 = vpop.f32.mrf.mxu1 }
 0x1d5   : > { %v3608_v30 = vadd.f32 %v3535_v14, %v8296_v61  ;;  %v8419_v51 = vadd.f32 %v6564_v44, %v3610_v39  ;;  %v3958_v27 = vpop.f32.mrf.mxu0 }
 0x1d6   : > { %v6569_v33 = vpop.f32.mrf.mxu1 }
 0x1d7   : > { %v4794_v61 = vadd.f32 %v6569_v33, %v4004_v63  ;;  %v8426_v10 = vadd.f32 %v3958_v27, %v3608_v30  ;;  %v4009_v33 = vadd.f32 %v8322_v43, %v3586_v20  ;;  %v3589_v63 = vadd.f32 %v8320_v21, %v8223_v31 }
 0x1d8   : > { %v4633_v57 = vpop.f32.mrf.mxu1  ;;  %v3590_v31 = vadd.f32 %v8328_v59, %v8229_v0  ;;  %v3593_v0 = vadd.f32 %v8336_v12, %v8235_v13  ;;  %v8658_v13 = vld [vmem:[#allocation17_spill] sm:$0xff] }
 0x1d9   : > { %v4792_v60 = vadd.f32 %v4633_v57, %v4002_v40  ;;  %v4007_v40 = vadd.f32 %v8326_v38, %v3584_v54  ;;  %v4012_v27 = vadd.f32 %v8330_v29, %v3589_v63  ;;  %v8664_v63 = vld [vmem:[#allocation19_spill] sm:$0xff] }
 0x1da   : > { %v6570_v9 = vpop.f32.mrf.mxu1 }
 0x1db   : > { %v4795_v39 = vadd.f32 %v6570_v9, %v4005_v11 }
 0x1dc   : > { %v4636_v5 = vpop.f32.mrf.mxu1 }
 0x1dd   : > { %v6603_v34 = vpop.f32.mrf.mxu0  ;;  %v4793_v42 = vadd.f32 %v4636_v5, %v4003_v24  ;;  %v4013_v5 = vadd.f32 %v8338_v37, %v3590_v31 }
 0x1de   : > { %v5360_v49 = vadd.f32 %v6603_v34, %v4794_v61  ;;  %v6573_v14 = vpop.f32.mrf.mxu1 }
 0x1df   : > { %v5199_v47 = vpop.f32.mrf.mxu0  ;;  %v4798_v62 = vadd.f32 %v6573_v14, %v4008_v4  ;;  %v4016_v14 = vadd.f32 %v8346_v22, %v3593_v0  ;;  %v8657_v4 = vld [vmem:[#allocation7_spill] sm:$0xff]  ;;  %v8671_v0 = vld [vmem:[#allocation26_spill] sm:$0xff] }
 0x1e0   : > { %5456 = vst [vmem:[%s8434_s27 + $0x10] sm:$0xff] %v5360_v49  ;;  %v5358_v17 = vadd.f32 %v5199_v47, %v4792_v60  ;;  %v4649_v30 = vpop.f32.mrf.mxu1  ;;  %v4011_v49 = vadd.f32 %v8342_v6, %v3588_v8  ;;  %v3594_v12 = vadd.f32 %v8658_v13, %v8657_v4  ;;  %v8670_v8 = vld [vmem:[#allocation23_spill] sm:$0xff]  ;;  %v8675_v13 = vld [vmem:[#allocation13_spill] sm:$0xff] }
 0x1e1   : > { %v6604_v41 = vpop.f32.mrf.mxu0  ;;  %v4796_v44 = vadd.f32 %v4649_v30, %v4006_v35  ;;  %v8660_v35 = vld [vmem:[#allocation8_spill] sm:$0xff] }
 0x1e2   : > { %5454 = vst [vmem:[%s8434_s27] sm:$0xff] %v5358_v17  ;;  %v5361_v2 = vadd.f32 %v6604_v41, %v4795_v39  ;;  %v6574_v1 = vpop.f32.mrf.mxu1  ;;  %v8659_v41 = vld [vmem:[#allocation6_spill] sm:$0xff]  ;;  %v3592_v23 = vadd.f32 %v8661_v46, %v8660_v35 }
 0x1e3   : > { %v5202_v16 = vpop.f32.mrf.mxu0  ;;  %v4799_v36 = vadd.f32 %v6574_v1, %v4009_v33  ;;  %v4014_v30 = vadd.f32 %v8659_v41, %v3591_v28  ;;  %v8663_v33 = vld [vmem:[#allocation9_spill] sm:$0xff]  ;;  %v8678_v46 = vld [vmem:[#allocation14_spill] sm:$0xff] }
 0x1e4   : > { %5457 = vst [vmem:[%s8434_s27 + $0x18] sm:$0xff] %v5361_v2  ;;  %v5359_v48 = vadd.f32 %v5202_v16, %v4793_v42  ;;  %v4652_v15 = vpop.f32.mrf.mxu1  ;;  %v8662_v16 = vld [vmem:[#allocation20_spill] sm:$0xff] }
 0x1e5   : > { %v6607_v57 = vpop.f32.mrf.mxu0  ;;  %v4797_v9 = vadd.f32 %v4652_v15, %v4007_v40  ;;  %v4017_v1 = vadd.f32 %v8662_v16, %v3594_v12  ;;  %v8676_v12 = vld [vmem:[#allocation27_spill] sm:$0xff]  ;;  %v8680_v16 = vld [vmem:[#allocation32_spill] sm:$0xff] }
 0x1e6   : > { %5455 = vst [vmem:[%s8434_s27 + $0x8] sm:$0xff] %v5359_v48  ;;  %v5364_v25 = vadd.f32 %v6607_v57, %v4798_v62  ;;  %v6577_v43 = vpop.f32.mrf.mxu1  ;;  %v3597_v48 = vadd.f32 %v8664_v63, %v8663_v33  ;;  %v8681_v33 = vld [vmem:[#allocation15_spill] sm:$0xff] }
 0x1e7   : > { %v5215_v61 = vpop.f32.mrf.mxu0  ;;  %v4802_v60 = vadd.f32 %v6577_v43, %v4012_v27  ;;  %v8682_v63 = vld [vmem:[#allocation31_spill] sm:$0xff] }
 0x1e8   : > { %5460 = vst [vmem:[%s8434_s27 + $0x30] sm:$0xff] %v5364_v25  ;;  %v5362_v21 = vadd.f32 %v5215_v61, %v4796_v44  ;;  %v4665_v38 = vpop.f32.mrf.mxu1  ;;  %v4015_v25 = vadd.f32 %v8665_v45, %v3592_v23  ;;  %v8667_v61 = vld [vmem:[#allocation21_spill] sm:$0xff] }
 0x1e9   : > { %v6608_v11 = vpop.f32.mrf.mxu0  ;;  %v4800_v24 = vadd.f32 %v4665_v38, %v4010_v55  ;;  %v8669_v55 = vld [vmem:[#allocation11_spill] sm:$0xff]  ;;  %v8679_v23 = vld [vmem:[#allocation29_spill] sm:$0xff] }
 0x1ea   : > { %5458 = vst [vmem:[%s8434_s27 + $0x20] sm:$0xff] %v5362_v21  ;;  %v5365_v19 = vadd.f32 %v6608_v11, %v4799_v36  ;;  %v6578_v29 = vpop.f32.mrf.mxu1  ;;  %v8666_v36 = vld [vmem:[#allocation10_spill] sm:$0xff]  ;;  %v8668_v11 = vld [vmem:[#allocation24_spill] sm:$0xff] }
 0x1eb   : > { %v5218_v34 = vpop.f32.mrf.mxu0  ;;  %v4803_v39 = vadd.f32 %v6578_v29, %v4013_v5  ;;  %v3595_v43 = vadd.f32 %v8667_v61, %v8666_v36  ;;  %v4020_v38 = vadd.f32 %v8668_v11, %v3597_v48  ;;  %v3602_v48 = vadd.f32 %v8682_v63, %v8681_v33  ;;  %v8685_v36 = vld [vmem:[#allocation33_spill] sm:$0xff] }
 0x1ec   : > { %5461 = vst [vmem:[%s8434_s27 + $0x38] sm:$0xff] %v5365_v19  ;;  %v5363_v59 = vadd.f32 %v5218_v34, %v4797_v9  ;;  %v4668_v56 = vpop.f32.mrf.mxu1  ;;  %v3598_v19 = vadd.f32 %v8670_v8, %v8669_v55 }
 0x1ed   : > { %v6611_v53 = vpop.f32.mrf.mxu0  ;;  %v4801_v17 = vadd.f32 %v4668_v56, %v4011_v49 }
 0x1ee   : > { %5459 = vst [vmem:[%s8434_s27 + $0x28] sm:$0xff] %v5363_v59  ;;  %v5368_v52 = vadd.f32 %v6611_v53, %v4802_v60  ;;  %v6581_v37 = vpop.f32.mrf.mxu1  ;;  %v4018_v59 = vadd.f32 %v8671_v0, %v3595_v43  ;;  %v8673_v53 = vld [vmem:[#allocation25_spill] sm:$0xff] }
 0x1ef   : > { %v5231_v47 = vpop.f32.mrf.mxu0  ;;  %v4806_v2 = vadd.f32 %v6581_v37, %v4016_v14 }
 0x1f0   : > { %5464 = vst [vmem:[%s8434_s27 + $0x50] sm:$0xff] %v5368_v52  ;;  %v5366_v20 = vadd.f32 %v5231_v47, %v4800_v24  ;;  %v4681_v6 = vpop.f32.mrf.mxu1  ;;  %v8672_v24 = vld [vmem:[#allocation12_spill] sm:$0xff] }
 0x1f1   : > { %v6612_v42 = vpop.f32.mrf.mxu0  ;;  %v4804_v57 = vadd.f32 %v4681_v6, %v4014_v30  ;;  %v3596_v56 = vadd.f32 %v8673_v53, %v8672_v24  ;;  %v8674_v47 = vld [vmem:[#allocation28_spill] sm:$0xff]  ;;  %v8677_v6 = vld [vmem:[#allocation30_spill] sm:$0xff] }
 0x1f2   : > { %5462 = vst [vmem:[%s8434_s27 + $0x40] sm:$0xff] %v5366_v20  ;;  %v5369_v54 = vadd.f32 %v6612_v42, %v4803_v39  ;;  %v6582_v22 = vpop.f32.mrf.mxu1  ;;  %v4021_v37 = vadd.f32 %v8674_v47, %v3598_v19  ;;  %v3601_v20 = vadd.f32 %v8676_v12, %v8675_v13  ;;  %v8686_v19 = vld [vmem:[#allocation35_spill] sm:$0xff] }
 0x1f3   : > { %v5234_v62 = vpop.f32.mrf.mxu0  ;;  %v4807_v31 = vadd.f32 %v6582_v22, %v4017_v1  ;;  %v4019_v41 = vadd.f32 %v8677_v6, %v3596_v56 }
 0x1f4   : > { %5465 = vst [vmem:[%s8434_s27 + $0x58] sm:$0xff] %v5369_v54  ;;  %v5367_v44 = vadd.f32 %v5234_v62, %v4801_v17  ;;  %v4684_v40 = vpop.f32.mrf.mxu1  ;;  %v3599_v54 = vadd.f32 %v8679_v23, %v8678_v46  ;;  %v4024_v1 = vadd.f32 %v8680_v16, %v3601_v20 }
 0x1f5   : > { %v6615_v15 = vpop.f32.mrf.mxu0  ;;  %v4805_v34 = vadd.f32 %v4684_v40, %v4015_v25  ;;  %v8683_v40 = vld [vmem:[#allocation34_spill] sm:$0xff]  ;;  %v8684_v25 = vld [vmem:[#allocation16_spill] sm:$0xff] }
 0x1f6   : > { %5463 = vst [vmem:[%s8434_s27 + $0x48] sm:$0xff] %v5367_v44  ;;  %v5372_v27 = vadd.f32 %v6615_v15, %v4806_v2  ;;  %v6585_v9 = vpop.f32.mrf.mxu1  ;;  %v4022_v45 = vadd.f32 %v8683_v40, %v3599_v54  ;;  %v3600_v61 = vadd.f32 %v8685_v36, %v8684_v25 }
 0x1f7   : > { %v5247_v21 = vpop.f32.mrf.mxu0  ;;  %v4810_v28 = vadd.f32 %v6585_v9, %v4020_v38  ;;  %v4025_v9 = vadd.f32 %v8385_v3, %v3602_v48 }
 0x1f8   : > { %5468 = vst [vmem:[%s8434_s27 + $0x70] sm:$0xff] %v5372_v27  ;;  %v5370_v60 = vadd.f32 %v5247_v21, %v4804_v57  ;;  %v4697_v5 = vpop.f32.mrf.mxu1 }
 0x1f9   : > { %v6616_v29 = vpop.f32.mrf.mxu0  ;;  %v4808_v4 = vadd.f32 %v4697_v5, %v4018_v59 }
 0x1fa   : > { %5466 = vst [vmem:[%s8434_s27 + $0x60] sm:$0xff] %v5370_v60  ;;  %v5373_v49 = vadd.f32 %v6616_v29, %v4807_v31  ;;  %v6586_v39 = vpop.f32.mrf.mxu1  ;;  %v4023_v60 = vadd.f32 %v8686_v19, %v3600_v61 }
 0x1fb   : > { %v5250_v52 = vpop.f32.mrf.mxu0  ;;  %v4811_v35 = vadd.f32 %v6586_v39, %v4021_v37 }
 0x1fc   : > { %5469 = vst [vmem:[%s8434_s27 + $0x78] sm:$0xff] %v5373_v49  ;;  %v5371_v14 = vadd.f32 %v5250_v52, %v4805_v34  ;;  %v4700_v42 = vpop.f32.mrf.mxu1 }
 0x1fd   : > { %v6619_v17 = vpop.f32.mrf.mxu0  ;;  %v4809_v22 = vadd.f32 %v4700_v42, %v4019_v41 }
 0x1fe   : > { %5467 = vst [vmem:[%s8434_s27 + $0x68] sm:$0xff] %v5371_v14  ;;  %v5376_v30 = vadd.f32 %v6619_v17, %v4810_v28 }
 0x1ff   : > { %v5263_v2 = vpop.f32.mrf.mxu0 }
 0x200   : > { %5472 = vst [vmem:[%s8434_s27 + $0x90] sm:$0xff] %v5376_v30  ;;  %v5374_v62 = vadd.f32 %v5263_v2, %v4808_v4 }
 0x201   : > { %v6620_v44 = vpop.f32.mrf.mxu0  ;;  %v6589_v15 = vpop.f32.mrf.mxu1 }
 0x202   : > { %5470 = vst [vmem:[%s8434_s27 + $0x80] sm:$0xff] %v5374_v62  ;;  %v5377_v57 = vadd.f32 %v6620_v44, %v4811_v35  ;;  %v4814_v27 = vadd.f32 %v6589_v15, %v4024_v1 }
 0x203   : > { %v5266_v43 = vpop.f32.mrf.mxu0  ;;  %v4713_v21 = vpop.f32.mrf.mxu1 }
 0x204   : > { %5473 = vst [vmem:[%s8434_s27 + $0x98] sm:$0xff] %v5377_v57  ;;  %v5375_v31 = vadd.f32 %v5266_v43, %v4809_v22  ;;  %v4812_v38 = vadd.f32 %v4713_v21, %v4022_v45 }
 0x205   : > { %v6623_v11 = vpop.f32.mrf.mxu0  ;;  %v6590_v8 = vpop.f32.mrf.mxu1 }
 0x206   : > { %5471 = vst [vmem:[%s8434_s27 + $0x88] sm:$0xff] %v5375_v31  ;;  %v5380_v55 = vadd.f32 %v6623_v11, %v4814_v27  ;;  %v4815_v29 = vadd.f32 %v6590_v8, %v4025_v9 }
 0x207   : > { %v5279_v34 = vpop.f32.mrf.mxu0  ;;  %v4716_v0 = vpop.f32.mrf.mxu1 }
 0x208   : > { %5476 = vst [vmem:[%s8434_s27 + $0xb0] sm:$0xff] %v5380_v55  ;;  %v5378_v5 = vadd.f32 %v5279_v34, %v4812_v38  ;;  %v4813_v24 = vadd.f32 %v4716_v0, %v4023_v60 }
 0x209   : > { %v6624_v59 = vpop.f32.mrf.mxu0 }
 0x20a   : > { %5474 = vst [vmem:[%s8434_s27 + $0xa0] sm:$0xff] %v5378_v5  ;;  %v5381_v53 = vadd.f32 %v6624_v59, %v4815_v29 }
 0x20b   : > { %v5282_v3 = vpop.f32.mrf.mxu0 }
 0x20c   : > { %5477 = vst [vmem:[%s8434_s27 + $0xb8] sm:$0xff] %v5381_v53  ;;  %v5379_v56 = vadd.f32 %v5282_v3, %v4813_v24 }
 0x20e   : > { %5475 = vst [vmem:[%s8434_s27 + $0xa8] sm:$0xff] %v5379_v56  ;;  %v6627_v49 = vpop.f32.mrf.mxu0 }
 0x20f   : > { %v6593_v28 = vpop.f32.mrf.mxu1 }
 0x210   : > { %v4818_v52 = vadd.f32 %v6593_v28, %v8391_v32  ;;  %v5295_v39 = vpop.f32.mrf.mxu0 }
 0x211   : > { %v4729_v47 = vpop.f32.mrf.mxu1 }
 0x212   : > { %v5384_v37 = vadd.f32 %v6627_v49, %v4818_v52  ;;  %v4816_v14 = vadd.f32 %v4729_v47, %v8394_v50  ;;  %v6628_v13 = vpop.f32.mrf.mxu0 }
 0x213   : > { %v6594_v4 = vpop.f32.mrf.mxu1 }
 0x214   : > { %5480 = vst [vmem:[%s8434_s27 + $0xd0] sm:$0xff] %v5384_v37  ;;  %v5382_v12 = vadd.f32 %v5295_v39, %v4816_v14  ;;  %v4819_v20 = vadd.f32 %v6594_v4, %v8397_v26  ;;  %v5298_v41 = vpop.f32.mrf.mxu0 }
 0x215   : > { %v4732_v17 = vpop.f32.mrf.mxu1 }
 0x216   : > { %5478 = vst [vmem:[%s8434_s27 + $0xc0] sm:$0xff] %v5382_v12  ;;  %v5385_v42 = vadd.f32 %v6628_v13, %v4819_v20  ;;  %v4817_v6 = vadd.f32 %v4732_v17, %v8402_v18 }
 0x218   : > { %5481 = vst [vmem:[%s8434_s27 + $0xd8] sm:$0xff] %v5385_v42  ;;  %v5383_v32 = vadd.f32 %v5298_v41, %v4817_v6 }
 0x21a   : > { %5479 = vst [vmem:[%s8434_s27 + $0xc8] sm:$0xff] %v5383_v32 }
 0x21b   : > { %v6631_v50 = vpop.f32.mrf.mxu0 }
 0x21d   : > { %v6597_v30 = vpop.f32.mrf.mxu1  ;;  %v5311_v46 = vpop.f32.mrf.mxu0 }
 0x21e   : > { %v4822_v35 = vadd.f32 %v6597_v30, %v8407_v7 }
 0x21f   : > { %v4745_v23 = vpop.f32.mrf.mxu1  ;;  %v6632_v18 = vpop.f32.mrf.mxu0 }
 0x220   : > { %v5388_v26 = vadd.f32 %v6631_v50, %v4822_v35  ;;  %v4820_v54 = vadd.f32 %v4745_v23, %v8414_v58 }
 0x221   : > { %v6598_v2 = vpop.f32.mrf.mxu1  ;;  %v5314_v33 = vpop.f32.mrf.mxu0 }
 0x222   : > { %5484 = vst [vmem:[%s8434_s27 + $0xf0] sm:$0xff] %v5388_v26  ;;  %v5386_v62 = vadd.f32 %v5311_v46, %v4820_v54  ;;  %v4823_v22 = vadd.f32 %v6598_v2, %v8419_v51 }
 0x223   : > { %v4748_v16 = vpop.f32.mrf.mxu1 }
 0x224   : > { %5482 = vst [vmem:[%s8434_s27 + $0xe0] sm:$0xff] %v5386_v62  ;;  %v5389_v7 = vadd.f32 %v6632_v18, %v4823_v22  ;;  %v4821_v1 = vadd.f32 %v4748_v16, %v8426_v10 }
 0x226   : > { %5485 = vst [vmem:[%s8434_s27 + $0xf8] sm:$0xff] %v5389_v7  ;;  %v5387_v58 = vadd.f32 %v5314_v33, %v4821_v1 }
 0x228   : > { %5483 = vst [vmem:[%s8434_s27 + $0xe8] sm:$0xff] %v5387_v58 }
 0x229   : > { %6748 = shalt.err (!%p6745_p3)
}
 0x22a   : > { %s6749_s14 = scalar_lea.hbm %s8532_s4, 4096  ;;  %s6753_s21 = scalar_lea.hbm %s8582_s2, 8192 }
 0x22b   : > { %p6750_p4 = scmp.ne.s32.totalorder %s8532_s4, %s6749_s14  ;;  %p6754_p9 = scmp.lt.s32.totalorder %s8532_s4, %s8582_s2 }
 0x22c   : > { %p6755_p10 = scmp.lt.s32.totalorder %s6753_s21, %s6749_s14 }
 0x22d   : > { %p6751_p7 = pnand %p6750_p4, %p6853_p5 }
 0x22e   : > { %p6756_p11 = por %p6755_p10, %p6754_p9 }
 0x22f   : > { %p6752_p8 = pneg %p6751_p7 }
 0x231   : > { %p6757_p12 = pnand %p6756_p11, %p6752_p8 }
 0x233   : > { %6760 = shalt.err (!%p6757_p12)
}
 0x234   : > { %s6798_s24 = smov 128   ;;  %s6799_s25 = smov 8  }
 0x235   : > { %6646 = dma.vmem_to_hbm [thread:$0]  (%p6853_p5), %s8534_s29, 4096, %s8532_s4, %s8540_s13, %s6798_s24, %s6798_s24, %s6799_s25  }
 0x236 PF: > { %p6652_p13 = scmp.ge.s32.totalorder %s6795_s12, 2  ;;  %s5515_s26 = sand.u32 1, %s6783_s9  }
 0x237   : > { %s5516_s27 = scalar_lea.sflag [#allocation4], %s5515_s26 }
 0x238   : > { %p6649_p0 = pnand %p6652_p13, %p6857_p6 }
 0x23a   : > { %p6650_p1 = pneg %p6649_p0 }
 0x23c   : > { %6778 = dma.done.wait (%p6650_p1), %s5516_s27, 4096  }
 0x23d   : > { %6780 = vsyncadd (%p6650_p1), %s5516_s27, 4294963200  ;;  %p12_p2 = scmp.ge.s32.totalorder %s6840_s15, 4   ;;  %s8687_s9 = smov %s6787_s10 }
 0x23e   : > { %s8688_s10 = smov %s6791_s11  ;;  %s8689_s11 = smov %s6851_s18 }
 0x23f   : > { %s8690_s12 = smov %s6840_s15  ;;  %14 = sbr.rel (!%p12_p2) target bundleno = 3 (0x3), region = 73 }
 0x244   :  { %5521 = vsyncpa [#allocation4], 1 }
 0x245   :  { %5523 = vsyncpa [#allocation4 + $0x1], 1 }

</bundles_post_ra>
